<compile_context>
chip_gen: v7x
topology: tpu7x:2x2x1
jax: 0.10.0
libtpu: 0.0.40
codegen_flags: <defaults>
</compile_context>

<pallas_src>
import functools

import jax
import jax.numpy as jnp
from jax.experimental import pallas as pl
from jax.experimental.pallas import tpu as pltpu


def _softplus(v):
    # Numerically stable softplus (beta=1), matches torch.nn.Softplus:
    #   softplus(v) = max(v, 0) + log(1 + exp(-|v|))
    # exp / log run on the EUP; when v is bf16 (v6e/v7x) the bf16 EUP path is
    # used.  log(1 + e) is used instead of log1p for robust Mosaic lowering.
    return jnp.maximum(v, 0.0) + jnp.log(1.0 + jnp.exp(-jnp.abs(v)))


def energy_kernel(x_ref, y_ref, w1_ref, b1_ref, w2_ref, b2_ref,
                  B_ref, c1_ref, c2_ref, out_ref, *, act_dtype):
    x = x_ref[...]                     # (T, F)   bf16
    y = y_ref[...]                     # (T, L)   bf16
    b1 = b1_ref[...]                   # (1, H1)  f32   (read once / hoisted)
    b2 = b2_ref[...]                   # (1, H2)  f32
    c2 = c2_ref[...]                   # (1, P)   f32

    # fc1 / fc2: bf16 MXU matmuls, f32 accumulation; softplus in act_dtype
    # (bf16 on v6e/v7x -> bf16 EUP path, f32 on v5e).
    z1 = jnp.dot(x, w1_ref[...], preferred_element_type=jnp.float32) + b1
    h1 = _softplus(z1.astype(act_dtype))
    z2 = jnp.dot(h1.astype(jnp.bfloat16), w2_ref[...],
                 preferred_element_type=jnp.float32) + b2
    h2 = _softplus(z2.astype(act_dtype))

    # Local energy: sum_j y_ij * (h2 @ B)_ij           (f32 reduction)
    e_loc = jnp.dot(h2.astype(jnp.bfloat16), B_ref[...],
                    preferred_element_type=jnp.float32)            # (T, L)
    e_local = jnp.sum(y.astype(jnp.float32) * e_loc, axis=1)       # (T,)

    # Label (pairwise) energy: softplus(y @ C1) @ c2   (f32 reduction)
    z3 = jnp.dot(y, c1_ref[...], preferred_element_type=jnp.float32)  # (T, P)
    e_lab = _softplus(z3.astype(act_dtype)).astype(jnp.float32)
    e_label = jnp.sum(e_lab * c2, axis=1)                              # (T,)

    # Lane-dense store: batch lives on the lane axis of the (1, 1, T) block.
    out_ref[0, 0, :] = (e_label + e_local).astype(out_ref.dtype)


def _round_up(n, m):
    return ((n + m - 1) // m) * m


def _pad2d(a, rows, cols, dtype):
    a = a.astype(dtype)
    pr, pc = rows - a.shape[0], cols - a.shape[1]
    if pr or pc:
        a = jnp.pad(a, ((0, pr), (0, pc)))   # zero padding (load-bearing)
    return a


def _has_bf16_transcendentals():
    """True on chips with a bf16 VPU/EUP path (v6e, v7x); False on v5e/older."""
    try:
        kind = jax.devices()[0].device_kind.lower()
    except Exception:
        return False
    if "tpu" not in kind:
        return False
    for old in ("v2", "v3", "v4", "v5"):
        if old in kind:
            return False
    return True


def _make_in_specs(tile_b, fp, lp, hp1, hp2, pp, single_buffer_weights):
    def batched(cols):
        # x / y: streamed per batch tile (default double-buffered pipeline).
        return pl.BlockSpec((tile_b, cols), lambda i: (i, 0))

    def resident(rows, cols):
        # Weights/biases: constant index_map -> fetched once, VMEM-resident.
        # One buffer is enough; default double-buffering wastes weight VMEM.
        if single_buffer_weights and hasattr(pl, "Buffered"):
            try:
                return pl.BlockSpec((rows, cols), lambda i: (0, 0),
                                    pipeline_mode=pl.Buffered(1))
            except TypeError:
                pass
        return pl.BlockSpec((rows, cols), lambda i: (0, 0))

    return [
        batched(fp),          # x
        batched(lp),          # y
        resident(fp, hp1),    # W1
        resident(1, hp1),     # b1
        resident(hp1, hp2),   # W2
        resident(1, hp2),     # b2
        resident(hp2, lp),    # B
        resident(lp, pp),     # C1
        resident(1, pp),      # c2
    ]


@functools.partial(
    jax.jit, static_argnames=("tile_b", "single_buffer_weights", "bf16_act"))
def _forward(x, y, params, *, tile_b, single_buffer_weights, bf16_act):
    batch, feature_dim = x.shape
    label_dim = y.shape[1]
    h1_in, h1_dim = params["w1"].shape
    h2_in, h2_dim = params["w2"].shape
    num_pairwise = params["C1"].shape[1]

    assert h1_in == feature_dim
    assert h2_in == h1_dim, "fc2 input dim must equal fc1 output dim"
    assert params["B"].shape[0] == h2_dim, "B rows must equal fc2 output dim"
    assert params["C1"].shape[0] == label_dim

    # Pad every lane dimension to a multiple of 128 (zero padding contributes
    # exactly 0 to every reduction -- see module docstring invariant).
    fp = _round_up(feature_dim, 128)
    hp1 = _round_up(h1_dim, 128)
    hp2 = _round_up(h2_dim, 128)
    lp = _round_up(label_dim, 128)
    pp = _round_up(num_pairwise, 128)

    # Batch tiling: clamp to the real (128-padded) batch so small batches do
    # not pay for dead rows; when possible split into >= 2 tiles so v7x's
    # second TensorCore gets work via the "parallel" grid axis.
    bp128 = _round_up(batch, 128)
    tb = max(128, min(int(tile_b), bp128))
    if bp128 >= 256:
        tb = min(tb, max(128, (bp128 // 2) // 128 * 128))
    bp = _round_up(batch, tb)
    num_tiles = bp // tb

    # bf16 for matmul operands (MXU), f32 for biases / c2 (f32 epilogue math).
    xb = _pad2d(x, bp, fp, jnp.bfloat16)
    yb = _pad2d(y, bp, lp, jnp.bfloat16)
    w1 = _pad2d(params["w1"], fp, hp1, jnp.bfloat16)
    b1 = _pad2d(params["b1"], 1, hp1, jnp.float32)
    w2 = _pad2d(params["w2"], hp1, hp2, jnp.bfloat16)
    b2 = _pad2d(params["b2"], 1, hp2, jnp.float32)
    Bm = _pad2d(params["B"], hp2, lp, jnp.bfloat16)
    c1 = _pad2d(params["C1"], lp, pp, jnp.bfloat16)
    c2 = _pad2d(params["c2"], 1, pp, jnp.float32)

    flops = 2 * bp * (fp * hp1 + hp1 * hp2 + hp2 * lp + lp * pp)
    transcendentals = 2 * bp * (hp1 + hp2 + pp)     # exp + log per softplus elem
    bytes_accessed = (bp * (fp + lp) * 2                              # x, y
                      + (fp * hp1 + hp1 * hp2 + hp2 * lp + lp * pp) * 2  # weights
                      + (hp1 + hp2 + pp) * 4                          # biases, c2
                      + bp * 4)                                       # output

    # Explicit scoped-VMEM budget from actual buffer sizes (+ slack); capped at
    # 64 MiB so the same config still fits v7x's per-core VMEM.
    wbytes = ((fp * hp1 + hp1 * hp2 + hp2 * lp + lp * pp) * 2
              + (hp1 + hp2 + pp) * 4)
    wbufs = 1 if (single_buffer_weights and hasattr(pl, "Buffered")) else 2
    vmem_need = (wbufs * wbytes
                 + 2 * tb * (fp + lp) * 2          # double-buffered x / y tiles
                 + 2 * tb * 4                      # double-buffered out tile
                 + tb * (hp1 + hp2 + lp + pp) * 4)  # f32 intermediates
    vmem_limit = int(min(64 * 2**20, max(16 * 2**20, 2 * vmem_need + (4 << 20))))

    kernel = functools.partial(
        energy_kernel,
        act_dtype=jnp.bfloat16 if bf16_act else jnp.float32)

    out = pl.pallas_call(
        kernel,
        out_shape=jax.ShapeDtypeStruct((num_tiles, 1, tb), jnp.float32),
        grid=(num_tiles,),
        in_specs=_make_in_specs(tb, fp, lp, hp1, hp2, pp, single_buffer_weights),
        out_specs=pl.BlockSpec((1, 1, tb), lambda i: (i, 0, 0)),
        compiler_params=pltpu.CompilerParams(
            dimension_semantics=("parallel",),
            vmem_limit_bytes=vmem_limit),
        cost_estimate=pl.CostEstimate(
            flops=flops,
            transcendentals=transcendentals,
            bytes_accessed=bytes_accessed),
    )(xb, yb, w1, b1, w2, b2, Bm, c1, c2)

    return out.reshape(bp, 1)[:batch]


def energy_network_forward(x, y, params, *, tile_b=512, bf16_act=None):
    """Batched-grid Pallas forward. Returns (batch, 1) float32 energies."""
    if bf16_act is None:
        bf16_act = _has_bf16_transcendentals()
    try:
        return _forward(x, y, params, tile_b=int(tile_b),
                        single_buffer_weights=True, bf16_act=bool(bf16_act))
    except Exception:
        # pl.Buffered(1) (single-buffered resident weights) not supported on
        # this jax/Mosaic build -> fall back to default double buffering.
        return _forward(x, y, params, tile_b=int(tile_b),
                        single_buffer_weights=False, bf16_act=bool(bf16_act))


def init_params(key, feature_dim, label_dim, num_hidden, num_pairwise):
    """Deterministic synthetic init (add_second_layer=True variant)."""
    ks = jax.random.split(key, 7)
    std = lambda fan_in: jnp.sqrt(2.0 / fan_in)
    return {
        # fc1 / fc2 weights stored as (in, out) so the kernel does x @ W
        "w1": jax.random.normal(ks[0], (feature_dim, num_hidden), jnp.float32) * std(feature_dim),
        "b1": jax.random.normal(ks[1], (1, num_hidden), jnp.float32) * 0.01,
        "w2": jax.random.normal(ks[2], (num_hidden, num_hidden), jnp.float32) * std(num_hidden),
        "b2": jax.random.normal(ks[3], (1, num_hidden), jnp.float32) * 0.01,
        "B":  jax.random.normal(ks[4], (num_hidden, label_dim), jnp.float32) * std(num_hidden),
        "C1": jax.random.normal(ks[5], (label_dim, num_pairwise), jnp.float32) * std(label_dim),
        # c2 is (num_pairwise, 1) in torch; stored as its transpose (1, num_pairwise)
        "c2": jax.random.normal(ks[6], (1, num_pairwise), jnp.float32) * std(num_pairwise),
    }


def reference_forward(x, y, p):
    """Pure-JAX f32 reference mirroring the PyTorch forward exactly."""
    h1 = jax.nn.softplus(x @ p["w1"] + p["b1"])
    h2 = jax.nn.softplus(h1 @ p["w2"] + p["b2"])
    e_local = jnp.sum(y * (h2 @ p["B"]), axis=1, keepdims=True)
    e_label = jax.nn.softplus(y @ p["C1"]) @ p["c2"].T
    return e_label + e_local


def reference_forward_like_kernel(x, y, p, *, bf16_act):
    """Reference mirroring the kernel's exact cast / accumulation points."""
    act = jnp.bfloat16 if bf16_act else jnp.float32
    bf = lambda a: a.astype(jnp.bfloat16)
    f32 = jnp.float32
    sp = lambda z: _softplus(z.astype(act))
    z1 = jnp.dot(bf(x), bf(p["w1"]), preferred_element_type=f32) + p["b1"]
    h1 = sp(z1)
    z2 = jnp.dot(bf(h1), bf(p["w2"]), preferred_element_type=f32) + p["b2"]
    h2 = sp(z2)
    e_loc = jnp.dot(bf(h2), bf(p["B"]), preferred_element_type=f32)
    e_local = jnp.sum(bf(y).astype(f32) * e_loc, axis=1, keepdims=True)
    z3 = jnp.dot(bf(y), bf(p["C1"]), preferred_element_type=f32)
    e_lab = sp(z3).astype(f32)
    e_label = jnp.sum(e_lab * p["c2"], axis=1, keepdims=True)
    return e_label + e_local


if __name__ == "__main__":
    # Small shapes (non-multiples of 128 to exercise the padding path).
    batch = 6
    feature_dim = 100
    label_dim = 30
    num_hidden = 56
    num_pairwise = 16

    key = jax.random.PRNGKey(0)
    kx, ky, kp = jax.random.split(key, 3)
    x = jax.random.normal(kx, (batch, feature_dim), jnp.float32)
    # y is a (relaxed) multilabel assignment in [0, 1]
    y = jax.random.uniform(ky, (batch, label_dim), jnp.float32)
    params = init_params(kp, feature_dim, label_dim, num_hidden, num_pairwise)

    bf16_act = _has_bf16_transcendentals()
    try:
        out = jax.block_until_ready(
            energy_network_forward(x, y, params, bf16_act=bf16_act))
    except Exception:
        # Capability fallback: keep all activation math in f32 (always lowers).
        bf16_act = False
        out = jax.block_until_ready(
            energy_network_forward(x, y, params, bf16_act=bf16_act))

    assert out.shape == (batch, 1)

    # Tight check against a reference with identical cast / rounding points.
    ref_mirror = reference_forward_like_kernel(x, y, params, bf16_act=bf16_act)
    assert jnp.allclose(out, ref_mirror, atol=5e-2, rtol=3e-2), (out, ref_mirror)

    # Loose sanity check against the full-f32 reference (quantization only).
    ref_f32 = reference_forward(x, y, params)
    rel = jnp.max(jnp.abs(out - ref_f32)) / (jnp.max(jnp.abs(ref_f32)) + 1e-6)
    assert rel < 0.08, (out, ref_f32, rel)

    print("KERNEL_OK")
</pallas_src>

<mosaic_0001>
module attributes {stable_mosaic.version = 11 : i64} {
  func.func @energy_kernel(%arg0: i32, %arg1: memref<128x128xbf16, #tpu.memory_space<vmem>>, %arg2: memref<128x128xbf16, #tpu.memory_space<vmem>>, %arg3: memref<128x128xbf16, #tpu.memory_space<vmem>>, %arg4: memref<1x128xf32, #tpu.memory_space<vmem>>, %arg5: memref<128x128xbf16, #tpu.memory_space<vmem>>, %arg6: memref<1x128xf32, #tpu.memory_space<vmem>>, %arg7: memref<128x128xbf16, #tpu.memory_space<vmem>>, %arg8: memref<128x128xbf16, #tpu.memory_space<vmem>>, %arg9: memref<1x128xf32, #tpu.memory_space<vmem>>, %arg10: memref<1x1x128xf32, #tpu.memory_space<vmem>>) attributes {dimension_semantics = [#tpu.dimension_semantics<parallel>], iteration_bounds = array<i64: 1>, scalar_prefetch = 0 : i64, scratch_operands = 0 : i64, tpu.core_type = #tpu.core_type<tc>, window_params = [{transform_indices = @transform_0, window_bounds = array<i64: 128, 128>}, {transform_indices = @transform_1, window_bounds = array<i64: 128, 128>}, {pipeline_mode = #tpu.pipeline_mode<synchronous>, transform_indices = @transform_2, window_bounds = array<i64: 128, 128>}, {pipeline_mode = #tpu.pipeline_mode<synchronous>, transform_indices = @transform_3, window_bounds = array<i64: 1, 128>}, {pipeline_mode = #tpu.pipeline_mode<synchronous>, transform_indices = @transform_4, window_bounds = array<i64: 128, 128>}, {pipeline_mode = #tpu.pipeline_mode<synchronous>, transform_indices = @transform_5, window_bounds = array<i64: 1, 128>}, {pipeline_mode = #tpu.pipeline_mode<synchronous>, transform_indices = @transform_6, window_bounds = array<i64: 128, 128>}, {pipeline_mode = #tpu.pipeline_mode<synchronous>, transform_indices = @transform_7, window_bounds = array<i64: 128, 128>}, {pipeline_mode = #tpu.pipeline_mode<synchronous>, transform_indices = @transform_8, window_bounds = array<i64: 1, 128>}, {transform_indices = @transform_9, window_bounds = array<i64: 1, 1, 128>}]} {
    %c0 = arith.constant 0 : index
    %c0_0 = arith.constant 0 : index
    %0 = vector.load %arg1[%c0, %c0_0] : memref<128x128xbf16, #tpu.memory_space<vmem>>, vector<128x128xbf16>
    %c0_1 = arith.constant 0 : index
    %c0_2 = arith.constant 0 : index
    %1 = vector.load %arg2[%c0_1, %c0_2] : memref<128x128xbf16, #tpu.memory_space<vmem>>, vector<128x128xbf16>
    %c0_3 = arith.constant 0 : index
    %c0_4 = arith.constant 0 : index
    %2 = vector.load %arg4[%c0_3, %c0_4] : memref<1x128xf32, #tpu.memory_space<vmem>>, vector<1x128xf32>
    %c0_5 = arith.constant 0 : index
    %c0_6 = arith.constant 0 : index
    %3 = vector.load %arg6[%c0_5, %c0_6] : memref<1x128xf32, #tpu.memory_space<vmem>>, vector<1x128xf32>
    %c0_7 = arith.constant 0 : index
    %c0_8 = arith.constant 0 : index
    %4 = vector.load %arg9[%c0_7, %c0_8] : memref<1x128xf32, #tpu.memory_space<vmem>>, vector<1x128xf32>
    %c0_9 = arith.constant 0 : index
    %c0_10 = arith.constant 0 : index
    %5 = vector.load %arg3[%c0_9, %c0_10] : memref<128x128xbf16, #tpu.memory_space<vmem>>, vector<128x128xbf16>
    %cst = arith.constant dense<0.000000e+00> : vector<128x128xf32>
    %6 = tpu.matmul %0, %5, %cst {dimension_numbers = #tpu.dot_dimension_numbers<[1], [0], [0], [1], [0, 0, 1, 1], [], []>} : vector<128x128xbf16>, vector<128x128xbf16>, vector<128x128xf32> -> vector<128x128xf32>
    %7 = vector.broadcast %2 : vector<1x128xf32> to vector<128x128xf32>
    %8 = arith.addf %6, %7 : vector<128x128xf32>
    %cst_11 = arith.constant 0.000000e+00 : f32
    %9 = vector.broadcast %cst_11 : f32 to vector<128x128xf32>
    %10 = arith.maximumf %8, %9 : vector<128x128xf32>
    %11 = math.absf %8 : vector<128x128xf32>
    %cst_12 = arith.constant 0.000000e+00 : f32
    %12 = vector.broadcast %cst_12 : f32 to vector<128x128xf32>
    %13 = arith.subf %12, %11 : vector<128x128xf32>
    %14 = math.exp %13 : vector<128x128xf32>
    %cst_13 = arith.constant 1.000000e+00 : f32
    %15 = vector.broadcast %cst_13 : f32 to vector<128x128xf32>
    %16 = arith.addf %15, %14 : vector<128x128xf32>
    %17 = math.log %16 : vector<128x128xf32>
    %18 = arith.addf %10, %17 : vector<128x128xf32>
    %19 = arith.truncf %18 : vector<128x128xf32> to vector<128x128xbf16>
    %c0_14 = arith.constant 0 : index
    %c0_15 = arith.constant 0 : index
    %20 = vector.load %arg5[%c0_14, %c0_15] : memref<128x128xbf16, #tpu.memory_space<vmem>>, vector<128x128xbf16>
    %cst_16 = arith.constant dense<0.000000e+00> : vector<128x128xf32>
    %21 = tpu.matmul %19, %20, %cst_16 {dimension_numbers = #tpu.dot_dimension_numbers<[1], [0], [0], [1], [0, 0, 1, 1], [], []>} : vector<128x128xbf16>, vector<128x128xbf16>, vector<128x128xf32> -> vector<128x128xf32>
    %22 = vector.broadcast %3 : vector<1x128xf32> to vector<128x128xf32>
    %23 = arith.addf %21, %22 : vector<128x128xf32>
    %cst_17 = arith.constant 0.000000e+00 : f32
    %24 = vector.broadcast %cst_17 : f32 to vector<128x128xf32>
    %25 = arith.maximumf %23, %24 : vector<128x128xf32>
    %26 = math.absf %23 : vector<128x128xf32>
    %cst_18 = arith.constant 0.000000e+00 : f32
    %27 = vector.broadcast %cst_18 : f32 to vector<128x128xf32>
    %28 = arith.subf %27, %26 : vector<128x128xf32>
    %29 = math.exp %28 : vector<128x128xf32>
    %cst_19 = arith.constant 1.000000e+00 : f32
    %30 = vector.broadcast %cst_19 : f32 to vector<128x128xf32>
    %31 = arith.addf %30, %29 : vector<128x128xf32>
    %32 = math.log %31 : vector<128x128xf32>
    %33 = arith.addf %25, %32 : vector<128x128xf32>
    %34 = arith.truncf %33 : vector<128x128xf32> to vector<128x128xbf16>
    %c0_20 = arith.constant 0 : index
    %c0_21 = arith.constant 0 : index
    %35 = vector.load %arg7[%c0_20, %c0_21] : memref<128x128xbf16, #tpu.memory_space<vmem>>, vector<128x128xbf16>
    %cst_22 = arith.constant dense<0.000000e+00> : vector<128x128xf32>
    %36 = tpu.matmul %34, %35, %cst_22 {dimension_numbers = #tpu.dot_dimension_numbers<[1], [0], [0], [1], [0, 0, 1, 1], [], []>} : vector<128x128xbf16>, vector<128x128xbf16>, vector<128x128xf32> -> vector<128x128xf32>
    %37 = arith.extf %1 : vector<128x128xbf16> to vector<128x128xf32>
    %38 = arith.mulf %37, %36 : vector<128x128xf32>
    %cst_23 = arith.constant dense<0.000000e+00> : vector<128xf32>
    %39 = vector.multi_reduction <add>, %38, %cst_23 [1] : vector<128x128xf32> to vector<128xf32>
    %c0_24 = arith.constant 0 : index
    %c0_25 = arith.constant 0 : index
    %40 = vector.load %arg8[%c0_24, %c0_25] : memref<128x128xbf16, #tpu.memory_space<vmem>>, vector<128x128xbf16>
    %cst_26 = arith.constant dense<0.000000e+00> : vector<128x128xf32>
    %41 = tpu.matmul %1, %40, %cst_26 {dimension_numbers = #tpu.dot_dimension_numbers<[1], [0], [0], [1], [0, 0, 1, 1], [], []>} : vector<128x128xbf16>, vector<128x128xbf16>, vector<128x128xf32> -> vector<128x128xf32>
    %cst_27 = arith.constant 0.000000e+00 : f32
    %42 = vector.broadcast %cst_27 : f32 to vector<128x128xf32>
    %43 = arith.maximumf %41, %42 : vector<128x128xf32>
    %44 = math.absf %41 : vector<128x128xf32>
    %cst_28 = arith.constant 0.000000e+00 : f32
    %45 = vector.broadcast %cst_28 : f32 to vector<128x128xf32>
    %46 = arith.subf %45, %44 : vector<128x128xf32>
    %47 = math.exp %46 : vector<128x128xf32>
    %cst_29 = arith.constant 1.000000e+00 : f32
    %48 = vector.broadcast %cst_29 : f32 to vector<128x128xf32>
    %49 = arith.addf %48, %47 : vector<128x128xf32>
    %50 = math.log %49 : vector<128x128xf32>
    %51 = arith.addf %43, %50 : vector<128x128xf32>
    %52 = vector.broadcast %4 : vector<1x128xf32> to vector<128x128xf32>
    %53 = arith.mulf %51, %52 : vector<128x128xf32>
    %cst_30 = arith.constant dense<0.000000e+00> : vector<128xf32>
    %54 = vector.multi_reduction <add>, %53, %cst_30 [1] : vector<128x128xf32> to vector<128xf32>
    %55 = arith.addf %54, %39 : vector<128xf32>
    %c0_31 = arith.constant 0 : index
    %c0_32 = arith.constant 0 : index
    %c0_33 = arith.constant 0 : index
    %56 = vector.load %arg10[%c0_31, %c0_32, %c0_33] : memref<1x1x128xf32, #tpu.memory_space<vmem>>, vector<1x1x128xf32>
    %57 = vector.shape_cast %56 : vector<1x1x128xf32> to vector<128xf32>
    %58 = vector.shape_cast %55 : vector<128xf32> to vector<1x1x128xf32>
    tpu.vector_store %arg10[%c0_31, %c0_32, %c0_33], %58 {strides = array<i32>} : memref<1x1x128xf32, #tpu.memory_space<vmem>>, vector<1x1x128xf32>,
    return
  }
  func.func @transform_0(%arg0: i32) -> (i32, i32) {
    %c0_i32 = arith.constant 0 : i32
    %c0_i32_0 = arith.constant 0 : i32
    return %arg0, %c0_i32 : i32, i32
  }
  func.func @transform_1(%arg0: i32) -> (i32, i32) {
    %c0_i32 = arith.constant 0 : i32
    %c0_i32_0 = arith.constant 0 : i32
    return %arg0, %c0_i32 : i32, i32
  }
  func.func @transform_2(%arg0: i32) -> (i32, i32) {
    %c0_i32 = arith.constant 0 : i32
    %c0_i32_0 = arith.constant 0 : i32
    %c0_i32_1 = arith.constant 0 : i32
    return %c0_i32, %c0_i32_0 : i32, i32
  }
  func.func @transform_3(%arg0: i32) -> (i32, i32) {
    %c0_i32 = arith.constant 0 : i32
    %c0_i32_0 = arith.constant 0 : i32
    %c0_i32_1 = arith.constant 0 : i32
    return %c0_i32, %c0_i32_0 : i32, i32
  }
  func.func @transform_4(%arg0: i32) -> (i32, i32) {
    %c0_i32 = arith.constant 0 : i32
    %c0_i32_0 = arith.constant 0 : i32
    %c0_i32_1 = arith.constant 0 : i32
    return %c0_i32, %c0_i32_0 : i32, i32
  }
  func.func @transform_5(%arg0: i32) -> (i32, i32) {
    %c0_i32 = arith.constant 0 : i32
    %c0_i32_0 = arith.constant 0 : i32
    %c0_i32_1 = arith.constant 0 : i32
    return %c0_i32, %c0_i32_0 : i32, i32
  }
  func.func @transform_6(%arg0: i32) -> (i32, i32) {
    %c0_i32 = arith.constant 0 : i32
    %c0_i32_0 = arith.constant 0 : i32
    %c0_i32_1 = arith.constant 0 : i32
    return %c0_i32, %c0_i32_0 : i32, i32
  }
  func.func @transform_7(%arg0: i32) -> (i32, i32) {
    %c0_i32 = arith.constant 0 : i32
    %c0_i32_0 = arith.constant 0 : i32
    %c0_i32_1 = arith.constant 0 : i32
    return %c0_i32, %c0_i32_0 : i32, i32
  }
  func.func @transform_8(%arg0: i32) -> (i32, i32) {
    %c0_i32 = arith.constant 0 : i32
    %c0_i32_0 = arith.constant 0 : i32
    %c0_i32_1 = arith.constant 0 : i32
    return %c0_i32, %c0_i32_0 : i32, i32
  }
  func.func @transform_9(%arg0: i32) -> (i32, i32, i32) {
    %c0_i32 = arith.constant 0 : i32
    %c0_i32_0 = arith.constant 0 : i32
    %c0_i32_1 = arith.constant 0 : i32
    return %arg0, %c0_i32, %c0_i32_0 : i32, i32, i32
  }
}

module attributes {stable_mosaic.version = 11 : i64} {
  func.func @energy_kernel(%arg0: i32, %arg1: memref<128x128xbf16, #tpu.memory_space<vmem>>, %arg2: memref<128x128xbf16, #tpu.memory_space<vmem>>, %arg3: memref<128x128xbf16, #tpu.memory_space<vmem>>, %arg4: memref<1x128xf32, #tpu.memory_space<vmem>>, %arg5: memref<128x128xbf16, #tpu.memory_space<vmem>>, %arg6: memref<1x128xf32, #tpu.memory_space<vmem>>, %arg7: memref<128x128xbf16, #tpu.memory_space<vmem>>, %arg8: memref<128x128xbf16, #tpu.memory_space<vmem>>, %arg9: memref<1x128xf32, #tpu.memory_space<vmem>>, %arg10: memref<1x1x128xf32, #tpu.memory_space<vmem>>) attributes {dimension_semantics = [#tpu.dimension_semantics<parallel>], iteration_bounds = array<i64: 1>, scalar_prefetch = 0 : i64, scratch_operands = 0 : i64, tpu.core_type = #tpu.core_type<tc>, window_params = [{transform_indices = @transform_0, window_bounds = array<i64: 128, 128>}, {transform_indices = @transform_1, window_bounds = array<i64: 128, 128>}, {pipeline_mode = #tpu.pipeline_mode<synchronous>, transform_indices = @transform_2, window_bounds = array<i64: 128, 128>}, {pipeline_mode = #tpu.pipeline_mode<synchronous>, transform_indices = @transform_3, window_bounds = array<i64: 1, 128>}, {pipeline_mode = #tpu.pipeline_mode<synchronous>, transform_indices = @transform_4, window_bounds = array<i64: 128, 128>}, {pipeline_mode = #tpu.pipeline_mode<synchronous>, transform_indices = @transform_5, window_bounds = array<i64: 1, 128>}, {pipeline_mode = #tpu.pipeline_mode<synchronous>, transform_indices = @transform_6, window_bounds = array<i64: 128, 128>}, {pipeline_mode = #tpu.pipeline_mode<synchronous>, transform_indices = @transform_7, window_bounds = array<i64: 128, 128>}, {pipeline_mode = #tpu.pipeline_mode<synchronous>, transform_indices = @transform_8, window_bounds = array<i64: 1, 128>}, {transform_indices = @transform_9, window_bounds = array<i64: 1, 1, 128>}]} {
    %c0 = arith.constant 0 : index
    %c0_0 = arith.constant 0 : index
    %0 = vector.load %arg1[%c0, %c0_0] : memref<128x128xbf16, #tpu.memory_space<vmem>>, vector<128x128xbf16>
    %c0_1 = arith.constant 0 : index
    %c0_2 = arith.constant 0 : index
    %1 = vector.load %arg2[%c0_1, %c0_2] : memref<128x128xbf16, #tpu.memory_space<vmem>>, vector<128x128xbf16>
    %c0_3 = arith.constant 0 : index
    %c0_4 = arith.constant 0 : index
    %2 = vector.load %arg4[%c0_3, %c0_4] : memref<1x128xf32, #tpu.memory_space<vmem>>, vector<1x128xf32>
    %c0_5 = arith.constant 0 : index
    %c0_6 = arith.constant 0 : index
    %3 = vector.load %arg6[%c0_5, %c0_6] : memref<1x128xf32, #tpu.memory_space<vmem>>, vector<1x128xf32>
    %c0_7 = arith.constant 0 : index
    %c0_8 = arith.constant 0 : index
    %4 = vector.load %arg9[%c0_7, %c0_8] : memref<1x128xf32, #tpu.memory_space<vmem>>, vector<1x128xf32>
    %c0_9 = arith.constant 0 : index
    %c0_10 = arith.constant 0 : index
    %5 = vector.load %arg3[%c0_9, %c0_10] : memref<128x128xbf16, #tpu.memory_space<vmem>>, vector<128x128xbf16>
    %cst = arith.constant dense<0.000000e+00> : vector<128x128xf32>
    %6 = tpu.matmul %0, %5, %cst {dimension_numbers = #tpu.dot_dimension_numbers<[1], [0], [0], [1], [0, 0, 1, 1], [], []>} : vector<128x128xbf16>, vector<128x128xbf16>, vector<128x128xf32> -> vector<128x128xf32>
    %7 = vector.broadcast %2 : vector<1x128xf32> to vector<128x128xf32>
    %8 = arith.addf %6, %7 : vector<128x128xf32>
    %cst_11 = arith.constant 0.000000e+00 : f32
    %9 = vector.broadcast %cst_11 : f32 to vector<128x128xf32>
    %10 = arith.maximumf %8, %9 : vector<128x128xf32>
    %11 = math.absf %8 : vector<128x128xf32>
    %cst_12 = arith.constant 0.000000e+00 : f32
    %12 = vector.broadcast %cst_12 : f32 to vector<128x128xf32>
    %13 = arith.subf %12, %11 : vector<128x128xf32>
    %14 = math.exp %13 : vector<128x128xf32>
    %cst_13 = arith.constant 1.000000e+00 : f32
    %15 = vector.broadcast %cst_13 : f32 to vector<128x128xf32>
    %16 = arith.addf %15, %14 : vector<128x128xf32>
    %17 = math.log %16 : vector<128x128xf32>
    %18 = arith.addf %10, %17 : vector<128x128xf32>
    %19 = arith.truncf %18 : vector<128x128xf32> to vector<128x128xbf16>
    %c0_14 = arith.constant 0 : index
    %c0_15 = arith.constant 0 : index
    %20 = vector.load %arg5[%c0_14, %c0_15] : memref<128x128xbf16, #tpu.memory_space<vmem>>, vector<128x128xbf16>
    %cst_16 = arith.constant dense<0.000000e+00> : vector<128x128xf32>
    %21 = tpu.matmul %19, %20, %cst_16 {dimension_numbers = #tpu.dot_dimension_numbers<[1], [0], [0], [1], [0, 0, 1, 1], [], []>} : vector<128x128xbf16>, vector<128x128xbf16>, vector<128x128xf32> -> vector<128x128xf32>
    %22 = vector.broadcast %3 : vector<1x128xf32> to vector<128x128xf32>
    %23 = arith.addf %21, %22 : vector<128x128xf32>
    %cst_17 = arith.constant 0.000000e+00 : f32
    %24 = vector.broadcast %cst_17 : f32 to vector<128x128xf32>
    %25 = arith.maximumf %23, %24 : vector<128x128xf32>
    %26 = math.absf %23 : vector<128x128xf32>
    %cst_18 = arith.constant 0.000000e+00 : f32
    %27 = vector.broadcast %cst_18 : f32 to vector<128x128xf32>
    %28 = arith.subf %27, %26 : vector<128x128xf32>
    %29 = math.exp %28 : vector<128x128xf32>
    %cst_19 = arith.constant 1.000000e+00 : f32
    %30 = vector.broadcast %cst_19 : f32 to vector<128x128xf32>
    %31 = arith.addf %30, %29 : vector<128x128xf32>
    %32 = math.log %31 : vector<128x128xf32>
    %33 = arith.addf %25, %32 : vector<128x128xf32>
    %34 = arith.truncf %33 : vector<128x128xf32> to vector<128x128xbf16>
    %c0_20 = arith.constant 0 : index
    %c0_21 = arith.constant 0 : index
    %35 = vector.load %arg7[%c0_20, %c0_21] : memref<128x128xbf16, #tpu.memory_space<vmem>>, vector<128x128xbf16>
    %cst_22 = arith.constant dense<0.000000e+00> : vector<128x128xf32>
    %36 = tpu.matmul %34, %35, %cst_22 {dimension_numbers = #tpu.dot_dimension_numbers<[1], [0], [0], [1], [0, 0, 1, 1], [], []>} : vector<128x128xbf16>, vector<128x128xbf16>, vector<128x128xf32> -> vector<128x128xf32>
    %37 = arith.extf %1 : vector<128x128xbf16> to vector<128x128xf32>
    %38 = arith.mulf %37, %36 : vector<128x128xf32>
    %cst_23 = arith.constant dense<0.000000e+00> : vector<128xf32>
    %39 = vector.multi_reduction <add>, %38, %cst_23 [1] : vector<128x128xf32> to vector<128xf32>
    %c0_24 = arith.constant 0 : index
    %c0_25 = arith.constant 0 : index
    %40 = vector.load %arg8[%c0_24, %c0_25] : memref<128x128xbf16, #tpu.memory_space<vmem>>, vector<128x128xbf16>
    %cst_26 = arith.constant dense<0.000000e+00> : vector<128x128xf32>
    %41 = tpu.matmul %1, %40, %cst_26 {dimension_numbers = #tpu.dot_dimension_numbers<[1], [0], [0], [1], [0, 0, 1, 1], [], []>} : vector<128x128xbf16>, vector<128x128xbf16>, vector<128x128xf32> -> vector<128x128xf32>
    %cst_27 = arith.constant 0.000000e+00 : f32
    %42 = vector.broadcast %cst_27 : f32 to vector<128x128xf32>
    %43 = arith.maximumf %41, %42 : vector<128x128xf32>
    %44 = math.absf %41 : vector<128x128xf32>
    %cst_28 = arith.constant 0.000000e+00 : f32
    %45 = vector.broadcast %cst_28 : f32 to vector<128x128xf32>
    %46 = arith.subf %45, %44 : vector<128x128xf32>
    %47 = math.exp %46 : vector<128x128xf32>
    %cst_29 = arith.constant 1.000000e+00 : f32
    %48 = vector.broadcast %cst_29 : f32 to vector<128x128xf32>
    %49 = arith.addf %48, %47 : vector<128x128xf32>
    %50 = math.log %49 : vector<128x128xf32>
    %51 = arith.addf %43, %50 : vector<128x128xf32>
    %52 = vector.broadcast %4 : vector<1x128xf32> to vector<128x128xf32>
    %53 = arith.mulf %51, %52 : vector<128x128xf32>
    %cst_30 = arith.constant dense<0.000000e+00> : vector<128xf32>
    %54 = vector.multi_reduction <add>, %53, %cst_30 [1] : vector<128x128xf32> to vector<128xf32>
    %55 = arith.addf %54, %39 : vector<128xf32>
    %c0_31 = arith.constant 0 : index
    %c0_32 = arith.constant 0 : index
    %c0_33 = arith.constant 0 : index
    %56 = vector.load %arg10[%c0_31, %c0_32, %c0_33] : memref<1x1x128xf32, #tpu.memory_space<vmem>>, vector<1x1x128xf32>
    %57 = vector.shape_cast %56 : vector<1x1x128xf32> to vector<128xf32>
    %58 = vector.shape_cast %55 : vector<128xf32> to vector<1x1x128xf32>
    tpu.vector_store %arg10[%c0_31, %c0_32, %c0_33], %58 {strides = array<i32>} : memref<1x1x128xf32, #tpu.memory_space<vmem>>, vector<1x1x128xf32>,
    return
  }
  func.func @transform_0(%arg0: i32) -> (i32, i32) {
    %c0_i32 = arith.constant 0 : i32
    %c0_i32_0 = arith.constant 0 : i32
    return %arg0, %c0_i32 : i32, i32
  }
  func.func @transform_1(%arg0: i32) -> (i32, i32) {
    %c0_i32 = arith.constant 0 : i32
    %c0_i32_0 = arith.constant 0 : i32
    return %arg0, %c0_i32 : i32, i32
  }
  func.func @transform_2(%arg0: i32) -> (i32, i32) {
    %c0_i32 = arith.constant 0 : i32
    %c0_i32_0 = arith.constant 0 : i32
    %c0_i32_1 = arith.constant 0 : i32
    return %c0_i32, %c0_i32_0 : i32, i32
  }
  func.func @transform_3(%arg0: i32) -> (i32, i32) {
    %c0_i32 = arith.constant 0 : i32
    %c0_i32_0 = arith.constant 0 : i32
    %c0_i32_1 = arith.constant 0 : i32
    return %c0_i32, %c0_i32_0 : i32, i32
  }
  func.func @transform_4(%arg0: i32) -> (i32, i32) {
    %c0_i32 = arith.constant 0 : i32
    %c0_i32_0 = arith.constant 0 : i32
    %c0_i32_1 = arith.constant 0 : i32
    return %c0_i32, %c0_i32_0 : i32, i32
  }
  func.func @transform_5(%arg0: i32) -> (i32, i32) {
    %c0_i32 = arith.constant 0 : i32
    %c0_i32_0 = arith.constant 0 : i32
    %c0_i32_1 = arith.constant 0 : i32
    return %c0_i32, %c0_i32_0 : i32, i32
  }
  func.func @transform_6(%arg0: i32) -> (i32, i32) {
    %c0_i32 = arith.constant 0 : i32
    %c0_i32_0 = arith.constant 0 : i32
    %c0_i32_1 = arith.constant 0 : i32
    return %c0_i32, %c0_i32_0 : i32, i32
  }
  func.func @transform_7(%arg0: i32) -> (i32, i32) {
    %c0_i32 = arith.constant 0 : i32
    %c0_i32_0 = arith.constant 0 : i32
    %c0_i32_1 = arith.constant 0 : i32
    return %c0_i32, %c0_i32_0 : i32, i32
  }
  func.func @transform_8(%arg0: i32) -> (i32, i32) {
    %c0_i32 = arith.constant 0 : i32
    %c0_i32_0 = arith.constant 0 : i32
    %c0_i32_1 = arith.constant 0 : i32
    return %c0_i32, %c0_i32_0 : i32, i32
  }
  func.func @transform_9(%arg0: i32) -> (i32, i32, i32) {
    %c0_i32 = arith.constant 0 : i32
    %c0_i32_0 = arith.constant 0 : i32
    %c0_i32_1 = arith.constant 0 : i32
    return %arg0, %c0_i32, %c0_i32_0 : i32, i32, i32
  }
}

</mosaic_0001>

<bundles_post_ra>
// kernel: _forward.1
= control target key start
LH: loop header
LB: loop body
LE: loop exit
PB: predicated region body
PF: predicated region fallthrough
CT: control target
= control target key end

     0   :  { %vm1429_vm0 = vcmask 130112   ;;  %vm1436_vm1 = vcmask 195712   ;;  %vm1443_vm2 = vcmask 261312   ;;  %vm1450_vm3 = vcmask 326912   ;;  %s2571_s2 = inlined_call_operand.vmem [shape: bf16[128,128], index: 2, kind: input, shape index: {}]   ;;  %s2572_s0 = inlined_call_operand.vmem [shape: bf16[128,128], index: 0, kind: input, shape index: {}]   ;;  %s2573_s4 = inlined_call_operand.vmem [shape: bf16[128,128], index: 4, kind: input, shape index: {}]   ;;  %s2574_s7 = inlined_call_operand.vmem [shape: bf16[128,128], index: 7, kind: input, shape index: {}]   ;;  %s2575_s3 = inlined_call_operand.vmem [shape: f32[1,128], index: 3, kind: input, shape index: {}]   ;;  %s2576_s1 = inlined_call_operand.vmem [shape: bf16[128,128], index: 1, kind: input, shape index: {}]   ;;  %s2577_s6 = inlined_call_operand.vmem [shape: bf16[128,128], index: 6, kind: input, shape index: {}]   ;;  %s2578_s5 = inlined_call_operand.vmem [shape: f32[1,128], index: 5, kind: input, shape index: {}]   ;;  %s2579_s8 = inlined_call_operand.vmem [shape: f32[1,128], index: 8, kind: input, shape index: {}]   ;;  %s2580_s9 = inlined_call_operand.vmem [shape: f32[1,1,128], index: 9, kind: output, shape index: {}]  }
   0x1   :  { %v1778_v0 = vld [vmem:[%s2571_s2] sm:$0xff]   ;;  %v1779_v1 = vld [vmem:[%s2571_s2 + $0x8] sm:$0xff]   ;;  %v1780_v2 = vld [vmem:[%s2571_s2 + $0x10] sm:$0xff]   ;;  %vm1457_vm4 = vcmask 392512   ;;  %vm1464_vm5 = vcmask 458112   ;;  %vm1471_vm6 = vcmask 523712  }
   0x2   :  { %1650 = vmatprep.subr.bf16.mxu0 %v1778_v0  ;;  %v1781_v3 = vld [vmem:[%s2571_s2 + $0x18] sm:$0xff]   ;;  %v1786_v4 = vld [vmem:[%s2572_s0] sm:$0xff]   ;;  %v1783_v6 = vld [vmem:[%s2571_s2 + $0x28] sm:$0xff]   ;;  %vm1478_vm7 = vcmask 589312   ;;  %vm1485_vm8 = vcmask 654912   ;;  %vm1492_vm9 = vcmask 720512  }
   0x3   :  { %1651 = vmatpush3.bf16.msra.mxu0 %v1778_v0  ;;  %1666 = vmatprep.mubr.bf16.mxu0 %v1786_v4  ;;  %v1782_v5 = vld [vmem:[%s2571_s2 + $0x20] sm:$0xff]   ;;  %v1784_v7 = vld [vmem:[%s2571_s2 + $0x30] sm:$0xff]   ;;  %v1785_v8 = vld [vmem:[%s2571_s2 + $0x38] sm:$0xff]   ;;  %vm1499_vm10 = vcmask 786112   ;;  %vm1506_vm11 = vcmask 851712   ;;  %vm1513_vm12 = vcmask 917312  }
   0x4   :  { %1652 = vmatprep.subr.bf16.mxu0 %v1779_v1  ;;  %v1787_v9 = vld [vmem:[%s2572_s0 + $0x8] sm:$0xff]   ;;  %v1788_v10 = vld [vmem:[%s2572_s0 + $0x10] sm:$0xff]   ;;  %v1789_v11 = vld [vmem:[%s2572_s0 + $0x18] sm:$0xff]   ;;  %vm1520_vm13 = vcmask 982912   ;;  %vm1527_vm14 = vcmask 1048512  }
   0x5   :  { %v1790_v12 = vld [vmem:[%s2572_s0 + $0x20] sm:$0xff]   ;;  %v1791_v13 = vld [vmem:[%s2572_s0 + $0x28] sm:$0xff]   ;;  %v1792_v14 = vld [vmem:[%s2572_s0 + $0x30] sm:$0xff]  }
   0x6   :  { %v1793_v15 = vld [vmem:[%s2572_s0 + $0x38] sm:$0xff]   ;;  %v1794_v16 = vld [vmem:[%s2573_s4] sm:$0xff]   ;;  %v1795_v17 = vld [vmem:[%s2573_s4 + $0x8] sm:$0xff]  }
   0x7   :  { %1653 = vmatpush3.bf16.msra.mxu0 %v1779_v1  ;;  %1682 = vmatprep.subr.bf16.mxu1 %v1794_v16  ;;  %v1796_v18 = vld [vmem:[%s2573_s4 + $0x10] sm:$0xff]   ;;  %v1797_v19 = vld [vmem:[%s2573_s4 + $0x18] sm:$0xff]   ;;  %v1798_v20 = vld [vmem:[%s2573_s4 + $0x20] sm:$0xff]  }
   0x8   :  { %1654 = vmatprep.subr.bf16.mxu0 %v1780_v2  ;;  %1683 = vmatpush3.bf16.msra.mxu1 %v1794_v16  ;;  %v1799_v21 = vld [vmem:[%s2573_s4 + $0x28] sm:$0xff]   ;;  %v1800_v22 = vld [vmem:[%s2573_s4 + $0x30] sm:$0xff]   ;;  %v1801_v23 = vld [vmem:[%s2573_s4 + $0x38] sm:$0xff]  }
   0x9   :  { %1684 = vmatprep.subr.bf16.mxu1 %v1795_v17  ;;  %v2159_v24 = vld [vmem:[%s2574_s7] sm:$0xff]  }
   0xa   :  { %v2165_v25 = vld [vmem:[%s2575_s3] ss:$0 sm:$0xff] }
   0xb   :  { %1655 = vmatpush3.bf16.msra.mxu0 %v1780_v2 }
   0xc   :  { %1656 = vmatprep.subr.bf16.mxu0 %v1781_v3  ;;  %1685 = vmatpush3.bf16.msra.mxu1 %v1795_v17 }
   0xd   :  { %1686 = vmatprep.subr.bf16.mxu1 %v1796_v18 }
   0xf   :  { %1657 = vmatpush3.bf16.msra.mxu0 %v1781_v3 }
  0x10   :  { %1658 = vmatprep.subr.bf16.mxu0 %v1782_v5  ;;  %1687 = vmatpush3.bf16.msra.mxu1 %v1796_v18 }
  0x11   :  { %1688 = vmatprep.subr.bf16.mxu1 %v1797_v19 }
  0x13   :  { %1659 = vmatpush3.bf16.msra.mxu0 %v1782_v5 }
  0x14   :  { %1660 = vmatprep.subr.bf16.mxu0 %v1783_v6  ;;  %1689 = vmatpush3.bf16.msra.mxu1 %v1797_v19 }
  0x15   :  { %1690 = vmatprep.subr.bf16.mxu1 %v1798_v20 }
  0x17   :  { %1661 = vmatpush3.bf16.msra.mxu0 %v1783_v6 }
  0x18   :  { %1662 = vmatprep.subr.bf16.mxu0 %v1784_v7  ;;  %1691 = vmatpush3.bf16.msra.mxu1 %v1798_v20 }
  0x19   :  { %1692 = vmatprep.subr.bf16.mxu1 %v1799_v21 }
  0x1b   :  { %1663 = vmatpush3.bf16.msra.mxu0 %v1784_v7 }
  0x1c   :  { %1664 = vmatprep.subr.bf16.mxu0 %v1785_v8  ;;  %1693 = vmatpush3.bf16.msra.mxu1 %v1799_v21 }
  0x1d   :  { %1694 = vmatprep.subr.bf16.mxu1 %v1800_v22 }
  0x1f   :  { %1665 = vmatpush3.bf16.msra.mxu0 %v1785_v8 }
  0x20   :  { %1695 = vmatpush3.bf16.msra.mxu1 %v1800_v22 }
  0x21   :  { %1696 = vmatprep.subr.bf16.mxu1 %v1801_v23 }
  0x22   :  { %1667 = vmatmul.mubr.bf16.vlgmr.msra.gmra.mrb[0].mxu0 %v1787_v9 }
  0x23   :  { %1670 = vmatprep.mubr.bf16.mxu0 %v1788_v10 }
  0x24   :  { %1697 = vmatpush3.bf16.msra.mxu1 %v1801_v23 }
  0x25   :  { %1746 = vmatprep.subr.bf16.mxu1 %v2159_v24 }
  0x2a   :  { %1671 = vmatmul.mubr.bf16.gmra.mrb[4].mxu0 %v1789_v11 }
  0x2b   :  { %1674 = vmatprep.mubr.bf16.mxu0 %v1790_v12 }
  0x32   :  { %1675 = vmatmul.mubr.bf16.gmra.mrb[8].mxu0 %v1791_v13 }
  0x33   :  { %1678 = vmatprep.mubr.bf16.mxu0 %v1792_v14 }
  0x3a   :  { %1679 = vmatmul.mubr.bf16.gmra.mrb[12].mxu0 %v1793_v15 }
  0xf5   :  { %v1668_v26 = vpop.f32.mrb[0].mxu0 }
  0xf6   :  { %v2168_v27 = vadd.f32 %v1668_v26, %v2165_v25  ;;  %v220_v28 = vpop.f32.mrb[1].mxu0 }
  0xf7   :  { %v2171_v29 = vadd.f32 %v2165_v25, %v220_v28  ;;  %v1669_v30 = vpop.f32.mrb[2].mxu0 }
  0xf8   :  { %v301_v31 = vand.u32 2147483647, %v2168_v27  ;;  %v2175_v32 = vadd.f32 %v1669_v30, %v2165_v25  ;;  %v223_v33 = vpop.f32.mrb[3].mxu0 }
  0xf9   :  { %v299_v34 = vand.u32 2147483647, %v2171_v29  ;;  %v2180_v40 = vadd.f32 %v2165_v25, %v223_v33 }
  0xfa   :  { %v317_v35 = vsub.f32 0.0, %v301_v31  ;;  %v302_v36 = vand.u32 2147483647, %v2175_v32 }
  0xfb   :  { %v315_v37 = vsub.f32 0.0, %v299_v34  ;;  %v300_v48 = vand.u32 2147483647, %v2180_v40 }
  0xfc   :  { %v335_v38 = vmul.f32 1.442695, %v317_v35  ;;  %v318_v39 = vsub.f32 0.0, %v302_v36 }
  0xfd   :  { %v331_v41 = vmul.f32 1.442695, %v315_v37  ;;  %v1672_v42 = vpop.f32.mrb[4].mxu0  ;;  %v316_v58 = vsub.f32 0.0, %v300_v48 }
  0xfe   :  { %1834 = vpow2.f32 %v335_v38  ;;  %v337_v43 = vmul.f32 1.442695, %v318_v39  ;;  %v2183_v44 = vadd.f32 %v1672_v42, %v2165_v25  ;;  %v236_v45 = vpop.f32.mrb[5].mxu0 }
  0xff   :  { %1836 = vpow2.f32 %v331_v41  ;;  %v2186_v46 = vadd.f32 %v2165_v25, %v236_v45  ;;  %v1673_v47 = vpop.f32.mrb[6].mxu0  ;;  %v333_v7 = vmul.f32 1.442695, %v316_v58 }
 0x100   :  { %1838 = vpow2.f32 %v337_v43  ;;  %v305_v49 = vand.u32 2147483647, %v2183_v44  ;;  %v2191_v50 = vadd.f32 %v1673_v47, %v2165_v25  ;;  %v239_v51 = vpop.f32.mrb[7].mxu0 }
 0x101   :  { %v303_v52 = vand.u32 2147483647, %v2186_v46  ;;  %v2195_v53 = vadd.f32 %v2165_v25, %v239_v51 }
 0x102   :  { %v321_v54 = vsub.f32 0.0, %v305_v49  ;;  %v306_v55 = vand.u32 2147483647, %v2191_v50 }
 0x103   :  { %v319_v56 = vsub.f32 0.0, %v303_v52  ;;  %v304_v57 = vand.u32 2147483647, %v2195_v53 }
 0x104   :  { %v343_v59 = vmul.f32 1.442695, %v321_v54  ;;  %v322_v60 = vsub.f32 0.0, %v306_v55 }
 0x105   :  { %v339_v61 = vmul.f32 1.442695, %v319_v56  ;;  %v320_v62 = vsub.f32 0.0, %v304_v57  ;;  %v1676_v63 = vpop.f32.mrb[8].mxu0 }
 0x106   :  { %1840 = vpow2.f32 %v343_v59  ;;  %v345_v0 = vmul.f32 1.442695, %v322_v60  ;;  %v2200_v1 = vadd.f32 %v1676_v63, %v2165_v25  ;;  %v252_v2 = vpop.f32.mrb[9].mxu0 }
 0x107   :  { %1842 = vpow2.f32 %v339_v61  ;;  %v341_v3 = vmul.f32 1.442695, %v320_v62  ;;  %v2203_v4 = vadd.f32 %v2165_v25, %v252_v2  ;;  %v1677_v5 = vpop.f32.mrb[10].mxu0 }
 0x108   :  { %v1835_v6 = vpop.eup %1834  ;;  %1844 = vpow2.f32 %v345_v0  ;;  %v309_v8 = vand.u32 2147483647, %v2200_v1  ;;  %v2207_v9 = vadd.f32 %v1677_v5, %v2165_v25  ;;  %v255_v10 = vpop.f32.mrb[11].mxu0 }
 0x109   :  { %v1837_v11 = vpop.eup %1836  ;;  %v365_v12 = vadd.f32 1.0, %v1835_v6  ;;  %1846 = vpow2.f32 %v341_v3  ;;  %v307_v13 = vand.u32 2147483647, %v2203_v4  ;;  %v2212_v19 = vadd.f32 %v2165_v25, %v255_v10 }
 0x10a   :  { %v1839_v14 = vpop.eup %1838  ;;  %v325_v15 = vsub.f32 0.0, %v309_v8  ;;  %v310_v16 = vand.u32 2147483647, %v2207_v9  ;;  %v363_v22 = vadd.f32 1.0, %v1837_v11  ;;  %v286_v8 = vmax.f32 %v2175_v32, 0.0 }
 0x10b   :  { %1848 = vlog2.f32 %v365_v12  ;;  %v366_v17 = vadd.f32 1.0, %v1839_v14  ;;  %v323_v18 = vsub.f32 0.0, %v307_v13  ;;  %v308_v26 = vand.u32 2147483647, %v2212_v19 }
 0x10c   :  { %1850 = vpow2.f32 %v333_v7  ;;  %v351_v20 = vmul.f32 1.442695, %v325_v15  ;;  %v326_v21 = vsub.f32 0.0, %v310_v16 }
 0x10d   :  { %1852 = vlog2.f32 %v366_v17  ;;  %v347_v23 = vmul.f32 1.442695, %v323_v18  ;;  %v1680_v28 = vpop.f32.mrb[12].mxu0  ;;  %v324_v34 = vsub.f32 0.0, %v308_v26 }
 0x10e   :  { %1854 = vpow2.f32 %v351_v20  ;;  %v353_v30 = vmul.f32 1.442695, %v326_v21  ;;  %v2216_v31 = vadd.f32 %v1680_v28, %v2165_v25  ;;  %v268_v33 = vpop.f32.mrb[13].mxu0 }
 0x10f   :  { %1856 = vpow2.f32 %v347_v23  ;;  %v2219_v35 = vadd.f32 %v2165_v25, %v268_v33  ;;  %v1681_v36 = vpop.f32.mrb[14].mxu0  ;;  %v349_v49 = vmul.f32 1.442695, %v324_v34  ;;  %v289_v33 = vmax.f32 %v2183_v44, 0.0 }
 0x110   :  { %v1841_v37 = vpop.eup %1840  ;;  %1858 = vpow2.f32 %v353_v30  ;;  %v313_v38 = vand.u32 2147483647, %v2216_v31  ;;  %v2223_v39 = vadd.f32 %v1681_v36, %v2165_v25  ;;  %v271_v41 = vpop.f32.mrb[15].mxu0  ;;  %v290_v34 = vmax.f32 %v2191_v50, 0.0 }
 0x111   :  { %v1843_v42 = vpop.eup %1842  ;;  %v369_v43 = vadd.f32 1.0, %v1841_v37  ;;  %v311_v45 = vand.u32 2147483647, %v2219_v35  ;;  %1860 = vlog2.f32 %v363_v22  ;;  %v2228_v57 = vadd.f32 %v2165_v25, %v271_v41 }
 0x112   :  { %v1845_v47 = vpop.eup %1844  ;;  %v367_v48 = vadd.f32 1.0, %v1843_v42  ;;  %v329_v51 = vsub.f32 0.0, %v313_v38  ;;  %v314_v52 = vand.u32 2147483647, %v2223_v39  ;;  %v285_v25 = vmax.f32 %v2168_v27, 0.0 }
 0x113   :  { %v1847_v54 = vpop.eup %1846  ;;  %1862 = vlog2.f32 %v369_v43  ;;  %v370_v55 = vadd.f32 1.0, %v1845_v47  ;;  %v327_v56 = vsub.f32 0.0, %v311_v45  ;;  %v312_v63 = vand.u32 2147483647, %v2228_v57 }
 0x114   :  { %1864 = vlog2.f32 %v367_v48  ;;  %v368_v58 = vadd.f32 1.0, %v1847_v54  ;;  %v359_v59 = vmul.f32 1.442695, %v329_v51  ;;  %v330_v60 = vsub.f32 0.0, %v314_v52 }
 0x115   :  { %v1849_v61 = vpop.eup %1848  ;;  %1866 = vlog2.f32 %v370_v55  ;;  %v355_v62 = vmul.f32 1.442695, %v327_v56  ;;  %v328_v6 = vsub.f32 0.0, %v312_v63  ;;  %v287_v38 = vmax.f32 %v2186_v46, 0.0 }
 0x116   :  { %v1851_v0 = vpop.eup %1850  ;;  %v384_v2 = vmul.f32 0.6931472, %v1849_v61  ;;  %1868 = vlog2.f32 %v368_v58  ;;  %v361_v3 = vmul.f32 1.442695, %v330_v60  ;;  %v288_v41 = vmax.f32 %v2195_v53, 0.0 }
 0x117   :  { %v1853_v5 = vpop.eup %1852  ;;  %1870 = vpow2.f32 %v349_v49  ;;  %v357_v16 = vmul.f32 1.442695, %v328_v6  ;;  %v364_v18 = vadd.f32 1.0, %v1851_v0  ;;  %v293_v61 = vmax.f32 %v2200_v1, 0.0 }
 0x118   :  { %v1855_v7 = vpop.eup %1854  ;;  %v386_v10 = vmul.f32 0.6931472, %v1853_v5  ;;  %1872 = vpow2.f32 %v359_v59  ;;  %v2233_v14 = vadd.f32 %v384_v2, %v285_v25 }
 0x119   :  { %v1857_v11 = vpop.eup %1856  ;;  %v373_v12 = vadd.f32 1.0, %v1855_v7  ;;  %1874 = vpow2.f32 %v355_v62  ;;  %v294_v62 = vmax.f32 %v2207_v9, 0.0  ;;  %v284_v7 = vmax.f32 %v2180_v40, 0.0  ;;  %v1803_v40 = vld [vmem:[%s2574_s7 + $0x8] sm:$0xff]  }
 0x11a   :  { %v1859_v13 = vpop.eup %1858  ;;  %v2235_v15 = vadd.f32 %v386_v10, %v286_v8  ;;  %1876 = vpow2.f32 %v361_v3  ;;  %v371_v21 = vadd.f32 1.0, %v1857_v11  ;;  %v283_v3 = vmax.f32 %v2171_v29, 0.0 }
 0x11b   :  { %v1861_v17 = vpop.eup %1860  ;;  %1878 = vlog2.f32 %v373_v12  ;;  %v374_v20 = vadd.f32 1.0, %v1859_v13 }
 0x11c   :  { %v428_v27 = vpack.c.bf16 %v2235_v15, %v2233_v14  ;;  %v380_v0 = vmul.f32 0.6931472, %v1861_v17  ;;  %v291_v17 = vmax.f32 %v2203_v4, 0.0  ;;  %v298_v4 = vmax.f32 %v2223_v39, 0.0 }
 0x11d   :  { %v1863_v32 = vpop.eup %1862  ;;  %1880 = vlog2.f32 %v374_v20  ;;  %v292_v20 = vmax.f32 %v2212_v19, 0.0  ;;  %v295_v14 = vmax.f32 %v2219_v35, 0.0  ;;  %v1806_v35 = vld [vmem:[%s2574_s7 + $0x20] sm:$0xff]  }
 0x11e   :  { %v1865_v22 = vpop.eup %1864  ;;  %v392_v23 = vmul.f32 0.6931472, %v1863_v32  ;;  %1882 = vpow2.f32 %v357_v16  ;;  %v411_v11 = vadd.f32 %v380_v0, %v283_v3 }
 0x11f   :  { %v1867_v26 = vpop.eup %1866  ;;  %v388_v28 = vmul.f32 0.6931472, %v1865_v22  ;;  %1884 = vlog2.f32 %v364_v18 }
 0x120   :  { %v1869_v30 = vpop.eup %1868  ;;  %v394_v36 = vmul.f32 0.6931472, %v1867_v26  ;;  %1886 = vlog2.f32 %v371_v21  ;;  %v2243_v45 = vadd.f32 %v392_v23, %v289_v33  ;;  %v1804_v33 = vld [vmem:[%s2574_s7 + $0x10] sm:$0xff]  }
 0x121   :  { %v1871_v37 = vpop.eup %1870  ;;  %v390_v42 = vmul.f32 0.6931472, %v1869_v30  ;;  %v415_v51 = vadd.f32 %v388_v28, %v287_v38  ;;  %v297_v28 = vmax.f32 %v2216_v31, 0.0  ;;  %v296_v31 = vmax.f32 %v2228_v57, 0.0  ;;  %v1807_v57 = vld [vmem:[%s2574_s7 + $0x28] sm:$0xff]  }
 0x122   :  { %v1873_v43 = vpop.eup %1872  ;;  %v2245_v47 = vadd.f32 %v394_v36, %v290_v34  ;;  %v372_v48 = vadd.f32 1.0, %v1871_v37 }
 0x123   :  { %v1875_v49 = vpop.eup %1874  ;;  %v416_v52 = vadd.f32 %v390_v42, %v288_v41  ;;  %v377_v44 = vadd.f32 1.0, %v1873_v43  ;;  %v1808_v43 = vld [vmem:[%s2574_s7 + $0x30] sm:$0xff]  }
 0x124   :  { %v1877_v54 = vpop.eup %1876  ;;  %1888 = vlog2.f32 %v372_v48  ;;  %v375_v50 = vadd.f32 1.0, %v1875_v49  ;;  %v430_v55 = vpack.c.bf16 %v2245_v47, %v2243_v45  ;;  %v49_v45 = vld [vmem:[%s2576_s1] sm:$0xff]   ;;  %v1809_v47 = vld [vmem:[%s2574_s7 + $0x38] sm:$0xff]   ;;  %v51_v48 = vld [vmem:[%s2576_s1 + $0x8] sm:$0xff]  }
 0x125   :  { %v1879_v46 = vpop.eup %1878  ;;  %1890 = vlog2.f32 %v377_v44  ;;  %v378_v53 = vadd.f32 1.0, %v1877_v54  ;;  %v429_v56 = vpack.c.bf16 %v416_v52, %v415_v51  ;;  %v53_v49 = vld [vmem:[%s2576_s1 + $0x10] sm:$0xff]   ;;  %v55_v51 = vld [vmem:[%s2576_s1 + $0x18] sm:$0xff]   ;;  %v57_v52 = vld [vmem:[%s2576_s1 + $0x20] sm:$0xff]  }
 0x126   :  { %v400_v58 = vmul.f32 0.6931472, %v1879_v46  ;;  %1892 = vlog2.f32 %v375_v50  ;;  %v59_v44 = vld [vmem:[%s2576_s1 + $0x28] sm:$0xff]   ;;  %v1816_v54 = vld [vmem:[%s2577_s6] sm:$0xff]   ;;  %v61_v50 = vld [vmem:[%s2576_s1 + $0x30] sm:$0xff]  }
 0x127   :  { %v1881_v59 = vpop.eup %1880  ;;  %1894 = vlog2.f32 %v378_v53  ;;  %1714 = vmatprep.subr.bf16.mxu0 %v1816_v54  ;;  %v1817_v46 = vld [vmem:[%s2577_s6 + $0x8] sm:$0xff]   ;;  %v1820_v53 = vld [vmem:[%s2577_s6 + $0x10] sm:$0xff]  }
 0x128   :  { %v1883_v60 = vpop.eup %1882  ;;  %v402_v63 = vmul.f32 0.6931472, %v1881_v59  ;;  %v421_v25 = vadd.f32 %v400_v58, %v293_v61  ;;  %1715 = vmatpush3.bf16.msra.mxu0 %v1816_v54  ;;  %v1822_v58 = vld [vmem:[%s2577_s6 + $0x20] sm:$0xff]   ;;  %v1823_v59 = vld [vmem:[%s2577_s6 + $0x28] sm:$0xff]   ;;  %v1825_v61 = vld [vmem:[%s2577_s6 + $0x38] sm:$0xff]  }
 0x129   :  { %v1885_v2 = vpop.eup %1884  ;;  %v376_v5 = vadd.f32 1.0, %v1883_v60  ;;  %1716 = vmatprep.subr.bf16.mxu0 %v1817_v46  ;;  %v1824_v60 = vld [vmem:[%s2577_s6 + $0x30] sm:$0xff]  }
 0x12a   :  { %v1887_v6 = vpop.eup %1886  ;;  %v422_v8 = vadd.f32 %v402_v63, %v294_v62  ;;  %v382_v10 = vmul.f32 0.6931472, %v1885_v2  ;;  %v2335_v62 = vld [vmem:[%s2578_s5] ss:$0 sm:$0xff] }
 0x12b   :  { %1896 = vlog2.f32 %v376_v5  ;;  %v396_v16 = vmul.f32 0.6931472, %v1887_v6 }
 0x12c   :  { %v412_v12 = vadd.f32 %v382_v10, %v284_v7  ;;  %v432_v13 = vpack.c.bf16 %v422_v8, %v421_v25  ;;  %1717 = vmatpush3.bf16.msra.mxu0 %v1817_v46 }
 0x12d   :  { %v419_v23 = vadd.f32 %v396_v16, %v291_v17  ;;  %1718 = vmatprep.subr.bf16.mxu0 %v1820_v53 }
 0x12e   :  { %v1889_v1 = vpop.eup %1888  ;;  %v427_v18 = vpack.c.bf16 %v412_v12, %v411_v11 }
 0x12f   :  { %v1891_v9 = vpop.eup %1890  ;;  %v398_v29 = vmul.f32 0.6931472, %v1889_v1 }
 0x130   :  { %v1893_v21 = vpop.eup %1892  ;;  %v408_v32 = vmul.f32 0.6931472, %v1891_v9  ;;  %1698 = vmatprep.mubr.bf16.mxu1 %v427_v18  ;;  %1719 = vmatpush3.bf16.msra.mxu0 %v1820_v53 }
 0x131   :  { %v1895_v22 = vpop.eup %1894  ;;  %v420_v26 = vadd.f32 %v398_v29, %v292_v20  ;;  %1699 = vmatmul.mubr.bf16.vlgmr.msra.gmra.mrb[0].mxu1 %v428_v27  ;;  %v404_v36 = vmul.f32 0.6931472, %v1893_v21 }
 0x132   :  { %v410_v19 = vmul.f32 0.6931472, %v1895_v22  ;;  %1702 = vmatprep.mubr.bf16.mxu1 %v429_v56  ;;  %1747 = vmatpush3.bf16.msra.mxu1 %v2159_v24  ;;  %v425_v34 = vadd.f32 %v408_v32, %v297_v28  ;;  %v1805_v24 = vld [vmem:[%s2574_s7 + $0x18] sm:$0xff]  }
 0x133   :  { %v431_v30 = vpack.c.bf16 %v420_v26, %v419_v23  ;;  %1748 = vmatprep.subr.bf16.mxu1 %v1803_v40  ;;  %v423_v27 = vadd.f32 %v404_v36, %v295_v14  ;;  %v1821_v56 = vld [vmem:[%s2577_s6 + $0x18] sm:$0xff]  }
 0x134   :  { %v426_v37 = vadd.f32 %v410_v19, %v298_v4  ;;  %1720 = vmatprep.subr.bf16.mxu0 %v1821_v56 }
 0x135   :  { %v1897_v38 = vpop.eup %1896  ;;  %1721 = vmatpush3.bf16.msra.mxu0 %v1821_v56 }
 0x136   :  { %v406_v15 = vmul.f32 0.6931472, %v1897_v38  ;;  %v434_v39 = vpack.c.bf16 %v426_v37, %v425_v34  ;;  %1749 = vmatpush3.bf16.msra.mxu1 %v1803_v40  ;;  %1722 = vmatprep.subr.bf16.mxu0 %v1822_v58 }
 0x137   :  { %1750 = vmatprep.subr.bf16.mxu1 %v1804_v33 }
 0x138   :  { %v424_v41 = vadd.f32 %v406_v15, %v296_v31 }
 0x139   :  { %1703 = vmatmul.mubr.bf16.gmra.mrb[4].mxu1 %v430_v55  ;;  %v63_v55 = vld [vmem:[%s2576_s1 + $0x38] sm:$0xff]   ;;  %1723 = vmatpush3.bf16.msra.mxu0 %v1822_v58 }
 0x13a   :  { %1706 = vmatprep.mubr.bf16.mxu1 %v431_v30  ;;  %v433_v42 = vpack.c.bf16 %v424_v41, %v423_v27  ;;  %1751 = vmatpush3.bf16.msra.mxu1 %v1804_v33 }
 0x13b   :  { %1752 = vmatprep.subr.bf16.mxu1 %v1805_v24  ;;  %1724 = vmatprep.subr.bf16.mxu0 %v1823_v59 }
 0x13d   :  { %1725 = vmatpush3.bf16.msra.mxu0 %v1823_v59 }
 0x13e   :  { %1753 = vmatpush3.bf16.msra.mxu1 %v1805_v24  ;;  %1726 = vmatprep.subr.bf16.mxu0 %v1824_v60 }
 0x13f   :  { %1754 = vmatprep.subr.bf16.mxu1 %v1806_v35 }
 0x141   :  { %1707 = vmatmul.mubr.bf16.gmra.mrb[8].mxu1 %v432_v13  ;;  %1727 = vmatpush3.bf16.msra.mxu0 %v1824_v60 }
 0x142   :  { %1710 = vmatprep.mubr.bf16.mxu1 %v433_v42  ;;  %1755 = vmatpush3.bf16.msra.mxu1 %v1806_v35 }
 0x143   :  { %1756 = vmatprep.subr.bf16.mxu1 %v1807_v57  ;;  %1728 = vmatprep.subr.bf16.mxu0 %v1825_v61 }
 0x145   :  { %1729 = vmatpush3.bf16.msra.mxu0 %v1825_v61 }
 0x146   :  { %1757 = vmatpush3.bf16.msra.mxu1 %v1807_v57 }
 0x147   :  { %1758 = vmatprep.subr.bf16.mxu1 %v1808_v43 }
 0x149   :  { %1711 = vmatmul.mubr.bf16.gmra.mrb[12].mxu1 %v434_v39 }
 0x14a   :  { %1759 = vmatpush3.bf16.msra.mxu1 %v1808_v43  ;;  %1762 = vmatprep.mubr.bf16.mxu1 %v49_v45 }
 0x14b   :  { %1760 = vmatprep.subr.bf16.mxu1 %v1809_v47 }
 0x14e   :  { %1761 = vmatpush3.bf16.msra.mxu1 %v1809_v47 }
 0x151   :  { %1763 = vmatmul.mubr.bf16.vlgmr.msra.gmra.mrb[16].mxu1 %v51_v48 }
 0x152   :  { %1766 = vmatprep.mubr.bf16.mxu1 %v53_v49 }
 0x159   :  { %1767 = vmatmul.mubr.bf16.gmra.mrb[20].mxu1 %v55_v51 }
 0x15a   :  { %1770 = vmatprep.mubr.bf16.mxu1 %v57_v52 }
 0x161   :  { %1771 = vmatmul.mubr.bf16.gmra.mrb[24].mxu1 %v59_v44 }
 0x162   :  { %1774 = vmatprep.mubr.bf16.mxu1 %v61_v50 }
 0x169   :  { %1775 = vmatmul.mubr.bf16.gmra.mrb[28].mxu1 %v63_v55 }
 0x204   :  { %v1700_v63 = vpop.f32.mrb[0].mxu1 }
 0x205   :  { %v2338_v0 = vadd.f32 %v1700_v63, %v2335_v62  ;;  %v539_v2 = vpop.f32.mrb[1].mxu1 }
 0x206   :  { %v2341_v3 = vadd.f32 %v2335_v62, %v539_v2  ;;  %v1701_v5 = vpop.f32.mrb[2].mxu1 }
 0x207   :  { %v620_v6 = vand.u32 2147483647, %v2338_v0  ;;  %v2345_v7 = vadd.f32 %v1701_v5, %v2335_v62  ;;  %v542_v25 = vpop.f32.mrb[3].mxu1 }
 0x208   :  { %v618_v8 = vand.u32 2147483647, %v2341_v3  ;;  %v2349_v10 = vadd.f32 %v2335_v62, %v542_v25 }
 0x209   :  { %v636_v11 = vsub.f32 0.0, %v620_v6  ;;  %v621_v12 = vand.u32 2147483647, %v2345_v7 }
 0x20a   :  { %v634_v13 = vsub.f32 0.0, %v618_v8  ;;  %v619_v16 = vand.u32 2147483647, %v2349_v10 }
 0x20b   :  { %v654_v1 = vmul.f32 1.442695, %v636_v11  ;;  %v637_v18 = vsub.f32 0.0, %v621_v12 }
 0x20c   :  { %v650_v9 = vmul.f32 1.442695, %v634_v13  ;;  %v635_v17 = vsub.f32 0.0, %v619_v16  ;;  %v1704_v20 = vpop.f32.mrb[4].mxu1 }
 0x20d   :  { %1898 = vpow2.f32 %v654_v1  ;;  %v656_v29 = vmul.f32 1.442695, %v637_v18  ;;  %v2354_v40 = vadd.f32 %v1704_v20, %v2335_v62  ;;  %v555_v21 = vpop.f32.mrb[5].mxu1  ;;  %v604_v20 = vmax.f32 %v2338_v0, 0.0 }
 0x20e   :  { %1900 = vpow2.f32 %v650_v9  ;;  %v652_v32 = vmul.f32 1.442695, %v635_v17  ;;  %v2357_v22 = vadd.f32 %v2335_v62, %v555_v21  ;;  %v1705_v23 = vpop.f32.mrb[6].mxu1 }
 0x20f   :  { %1902 = vpow2.f32 %v656_v29  ;;  %v624_v26 = vand.u32 2147483647, %v2354_v40  ;;  %v2361_v28 = vadd.f32 %v1705_v23, %v2335_v62  ;;  %v558_v4 = vpop.f32.mrb[7].mxu1 }
 0x210   :  { %1904 = vpow2.f32 %v652_v32  ;;  %v622_v19 = vand.u32 2147483647, %v2357_v22  ;;  %v2365_v30 = vadd.f32 %v2335_v62, %v558_v4 }
 0x211   :  { %v640_v33 = vsub.f32 0.0, %v624_v26  ;;  %v625_v34 = vand.u32 2147483647, %v2361_v28 }
 0x212   :  { %v638_v36 = vsub.f32 0.0, %v622_v19  ;;  %v623_v37 = vand.u32 2147483647, %v2365_v30 }
 0x213   :  { %v662_v38 = vmul.f32 1.442695, %v640_v33  ;;  %v641_v14 = vsub.f32 0.0, %v625_v34 }
 0x214   :  { %v658_v31 = vmul.f32 1.442695, %v638_v36  ;;  %v639_v15 = vsub.f32 0.0, %v623_v37  ;;  %v1708_v39 = vpop.f32.mrb[8].mxu1 }
 0x215   :  { %1906 = vpow2.f32 %v662_v38  ;;  %v664_v24 = vmul.f32 1.442695, %v641_v14  ;;  %v2370_v27 = vadd.f32 %v1708_v39, %v2335_v62  ;;  %v571_v41 = vpop.f32.mrb[9].mxu1 }
 0x216   :  { %1908 = vpow2.f32 %v658_v31  ;;  %v660_v42 = vmul.f32 1.442695, %v639_v15  ;;  %v2373_v35 = vadd.f32 %v2335_v62, %v571_v41  ;;  %v1709_v57 = vpop.f32.mrb[10].mxu1  ;;  %v602_v31 = vmax.f32 %v2341_v3, 0.0 }
 0x217   :  { %v1899_v43 = vpop.eup %1898  ;;  %1910 = vpow2.f32 %v664_v24  ;;  %v628_v45 = vand.u32 2147483647, %v2370_v27  ;;  %v2377_v47 = vadd.f32 %v1709_v57, %v2335_v62  ;;  %v574_v48 = vpop.f32.mrb[11].mxu1  ;;  %v605_v57 = vmax.f32 %v2345_v7, 0.0 }
 0x218   :  { %v1901_v49 = vpop.eup %1900  ;;  %v684_v51 = vadd.f32 1.0, %v1899_v43  ;;  %1912 = vpow2.f32 %v660_v42  ;;  %v626_v52 = vand.u32 2147483647, %v2373_v35  ;;  %v2382_v58 = vadd.f32 %v2335_v62, %v574_v48 }
 0x219   :  { %v1903_v44 = vpop.eup %1902  ;;  %v682_v54 = vadd.f32 1.0, %v1901_v49  ;;  %v644_v50 = vsub.f32 0.0, %v628_v45  ;;  %v629_v55 = vand.u32 2147483647, %v2377_v47 }
 0x21a   :  { %v1905_v46 = vpop.eup %1904  ;;  %1914 = vlog2.f32 %v684_v51  ;;  %v685_v53 = vadd.f32 1.0, %v1903_v44  ;;  %v642_v56 = vsub.f32 0.0, %v626_v52  ;;  %v627_v2 = vand.u32 2147483647, %v2382_v58 }
 0x21b   :  { %1916 = vlog2.f32 %v682_v54  ;;  %v683_v59 = vadd.f32 1.0, %v1905_v46  ;;  %v670_v60 = vmul.f32 1.442695, %v644_v50  ;;  %v645_v61 = vsub.f32 0.0, %v629_v55 }
 0x21c   :  { %1918 = vlog2.f32 %v685_v53  ;;  %v666_v63 = vmul.f32 1.442695, %v642_v56  ;;  %v1712_v5 = vpop.f32.mrb[12].mxu1  ;;  %v643_v11 = vsub.f32 0.0, %v627_v2  ;;  %v603_v54 = vmax.f32 %v2349_v10, 0.0 }
 0x21d   :  { %1920 = vlog2.f32 %v683_v59  ;;  %v672_v6 = vmul.f32 1.442695, %v645_v61  ;;  %v2386_v25 = vadd.f32 %v1712_v5, %v2335_v62  ;;  %v587_v8 = vpop.f32.mrb[13].mxu1 }
 0x21e   :  { %1922 = vpow2.f32 %v670_v60  ;;  %v2389_v12 = vadd.f32 %v2335_v62, %v587_v8  ;;  %v1713_v13 = vpop.f32.mrb[14].mxu1  ;;  %v668_v23 = vmul.f32 1.442695, %v643_v11 }
 0x21f   :  { %v1907_v16 = vpop.eup %1906  ;;  %1924 = vpow2.f32 %v666_v63  ;;  %v632_v1 = vand.u32 2147483647, %v2386_v25  ;;  %v2393_v18 = vadd.f32 %v1713_v13, %v2335_v62  ;;  %v590_v9 = vpop.f32.mrb[15].mxu1 }
 0x220   :  { %v1909_v17 = vpop.eup %1908  ;;  %v688_v29 = vadd.f32 1.0, %v1907_v16  ;;  %1926 = vpow2.f32 %v672_v6  ;;  %v630_v4 = vand.u32 2147483647, %v2389_v12  ;;  %v2399_v36 = vadd.f32 %v2335_v62, %v590_v9 }
 0x221   :  { %v1911_v21 = vpop.eup %1910  ;;  %v686_v32 = vadd.f32 1.0, %v1909_v17  ;;  %v648_v26 = vsub.f32 0.0, %v632_v1  ;;  %v633_v34 = vand.u32 2147483647, %v2393_v18  ;;  %v608_v1 = vmax.f32 %v2354_v40, 0.0 }
 0x222   :  { %v1913_v19 = vpop.eup %1912  ;;  %1928 = vlog2.f32 %v688_v29  ;;  %v689_v33 = vadd.f32 1.0, %v1911_v21  ;;  %v646_v0 = vsub.f32 0.0, %v630_v4  ;;  %v631_v39 = vand.u32 2147483647, %v2399_v36 }
 0x223   :  { %1930 = vlog2.f32 %v686_v32  ;;  %v687_v37 = vadd.f32 1.0, %v1913_v19  ;;  %v678_v38 = vmul.f32 1.442695, %v648_v26  ;;  %v649_v15 = vsub.f32 0.0, %v633_v34 }
 0x224   :  { %v1915_v14 = vpop.eup %1914  ;;  %1932 = vlog2.f32 %v689_v33  ;;  %v2403_v24 = vpop.f32.mrb[16].mxu1  ;;  %v674_v62 = vmul.f32 1.442695, %v646_v0  ;;  %v647_v51 = vsub.f32 0.0, %v631_v39  ;;  %v606_v32 = vmax.f32 %v2357_v22, 0.0 }
 0x225   :  { %v1917_v41 = vpop.eup %1916  ;;  %v703_v42 = vmul.f32 0.6931472, %v1915_v14  ;;  %1934 = vlog2.f32 %v687_v37  ;;  %v2406_v43 = vpop.f32.mrb[17].mxu1  ;;  %v680_v49 = vmul.f32 1.442695, %v649_v15  ;;  %v607_v22 = vmax.f32 %v2365_v30, 0.0 }
 0x226   :  { %v1919_v45 = vpop.eup %1918  ;;  %v699_v48 = vmul.f32 0.6931472, %v1917_v41  ;;  %1936 = vpow2.f32 %v668_v23  ;;  %v2408_v3 = vpop.f32.mrb[18].mxu1  ;;  %v1206_v50 = vand.u32 2147483647, %v2403_v24 }
 0x227   :  { %v1921_v52 = vpop.eup %1920  ;;  %v705_v44 = vmul.f32 0.6931472, %v1919_v45  ;;  %1938 = vpow2.f32 %v678_v38  ;;  %v2412_v55 = vpop.f32.mrb[19].mxu1  ;;  %v732_v46 = vadd.f32 %v703_v42, %v604_v20  ;;  %v676_v56 = vmul.f32 1.442695, %v647_v51 }
 0x228   :  { %v1923_v7 = vpop.eup %1922  ;;  %v701_v53 = vmul.f32 0.6931472, %v1921_v52  ;;  %1940 = vpow2.f32 %v674_v62  ;;  %v1222_v63 = vsub.f32 0.0, %v1206_v50  ;;  %v730_v5 = vadd.f32 %v699_v48, %v602_v31 }
 0x229   :  { %v1925_v59 = vpop.eup %1924  ;;  %v733_v60 = vadd.f32 %v705_v44, %v605_v57  ;;  %v692_v61 = vadd.f32 1.0, %v1923_v7  ;;  %1942 = vpow2.f32 %v680_v49  ;;  %v1204_v17 = vand.u32 2147483647, %v2406_v43 }
 0x22a   :  { %v1927_v2 = vpop.eup %1926  ;;  %v731_v6 = vadd.f32 %v701_v53, %v603_v54  ;;  %v690_v8 = vadd.f32 1.0, %v1925_v59  ;;  %1944 = vpow2.f32 %v676_v56  ;;  %v1240_v13 = vmul.f32 1.442695, %v1222_v63 }
 0x22b   :  { %v747_v10 = vpack.c.bf16 %v733_v60, %v732_v46  ;;  %1946 = vlog2.f32 %v692_v61  ;;  %v693_v11 = vadd.f32 1.0, %v1927_v2  ;;  %v1207_v23 = vand.u32 2147483647, %v2408_v3 }
 0x22c   :  { %v1929_v16 = vpop.eup %1928  ;;  %1948 = vlog2.f32 %v690_v8  ;;  %v746_v9 = vpack.c.bf16 %v731_v6, %v730_v5  ;;  %v2416_v20 = vpop.f32.mrb[20].mxu1  ;;  %v1220_v40 = vsub.f32 0.0, %v1204_v17  ;;  %v1205_v33 = vand.u32 2147483647, %v2412_v55 }
 0x22d   :  { %v1931_v29 = vpop.eup %1930  ;;  %v711_v21 = vmul.f32 0.6931472, %v1929_v16  ;;  %1950 = vlog2.f32 %v693_v11  ;;  %v2420_v26 = vpop.f32.mrb[21].mxu1  ;;  %v609_v38 = vmax.f32 %v2361_v28, 0.0  ;;  %v1223_v14 = vsub.f32 0.0, %v1207_v23 }
 0x22e   :  { %v1933_v4 = vpop.eup %1932  ;;  %v707_v19 = vmul.f32 0.6931472, %v1931_v29  ;;  %1730 = vmatprep.mubr.bf16.mxu0 %v746_v9  ;;  %1952 = vpow2.f32 %v1240_v13  ;;  %v2423_v34 = vpop.f32.mrb[22].mxu1  ;;  %v1236_v42 = vmul.f32 1.442695, %v1220_v40  ;;  %v1221_v57 = vsub.f32 0.0, %v1205_v33 }
 0x22f   :  { %v1935_v37 = vpop.eup %1934  ;;  %v713_v0 = vmul.f32 0.6931472, %v1933_v4  ;;  %1731 = vmatmul.mubr.bf16.vlgmr.msra.gmra.mrb[16].mxu0 %v747_v10  ;;  %v2427_v31 = vpop.f32.mrb[23].mxu1  ;;  %v736_v39 = vadd.f32 %v711_v21, %v608_v1  ;;  %v1210_v51 = vand.u32 2147483647, %v2416_v20  ;;  %v612_v9 = vmax.f32 %v2370_v27, 0.0 }
 0x230   :  { %v1937_v15 = vpop.eup %1936  ;;  %v709_v41 = vmul.f32 0.6931472, %v1935_v37  ;;  %v734_v45 = vadd.f32 %v707_v19, %v606_v32  ;;  %1954 = vpow2.f32 %v1236_v42  ;;  %v1242_v30 = vmul.f32 1.442695, %v1223_v14 }
 0x231   :  { %v1939_v62 = vpop.eup %1938  ;;  %v737_v48 = vadd.f32 %v713_v0, %v609_v38  ;;  %v691_v49 = vadd.f32 1.0, %v1937_v15  ;;  %v1226_v46 = vsub.f32 0.0, %v1210_v51  ;;  %v1238_v60 = vmul.f32 1.442695, %v1221_v57 }
 0x232   :  { %v1941_v52 = vpop.eup %1940  ;;  %v735_v28 = vadd.f32 %v709_v41, %v607_v22  ;;  %v696_v44 = vadd.f32 1.0, %v1939_v62  ;;  %v1208_v6 = vand.u32 2147483647, %v2420_v26  ;;  %v1211_v13 = vand.u32 2147483647, %v2423_v34 }
 0x233   :  { %v1943_v54 = vpop.eup %1942  ;;  %1956 = vlog2.f32 %v691_v49  ;;  %v694_v50 = vadd.f32 1.0, %v1941_v52  ;;  %v749_v7 = vpack.c.bf16 %v737_v48, %v736_v39  ;;  %v1248_v5 = vmul.f32 1.442695, %v1226_v46 }
 0x234   :  { %v1945_v53 = vpop.eup %1944  ;;  %1958 = vlog2.f32 %v696_v44  ;;  %v697_v56 = vadd.f32 1.0, %v1943_v54  ;;  %v748_v59 = vpack.c.bf16 %v735_v28, %v734_v45  ;;  %v2430_v61 = vpop.f32.mrb[24].mxu1  ;;  %v1224_v17 = vsub.f32 0.0, %v1208_v6 }
 0x235   :  { %v1947_v63 = vpop.eup %1946  ;;  %1960 = vlog2.f32 %v694_v50  ;;  %v695_v2 = vadd.f32 1.0, %v1945_v53  ;;  %v2433_v8 = vpop.f32.mrb[25].mxu1  ;;  %v613_v32 = vmax.f32 %v2377_v47, 0.0  ;;  %v1227_v4 = vsub.f32 0.0, %v1211_v13 }
 0x236   :  { %v1949_v10 = vpop.eup %1948  ;;  %v719_v11 = vmul.f32 0.6931472, %v1947_v63  ;;  %1962 = vlog2.f32 %v697_v56  ;;  %1734 = vmatprep.mubr.bf16.mxu0 %v748_v59  ;;  %v2436_v16 = vpop.f32.mrb[26].mxu1  ;;  %v1244_v33 = vmul.f32 1.442695, %v1224_v17  ;;  %v610_v42 = vmax.f32 %v2373_v35, 0.0 }
 0x237   :  { %v1951_v1 = vpop.eup %1950  ;;  %1964 = vlog2.f32 %v695_v2  ;;  %1735 = vmatmul.mubr.bf16.gmra.mrb[20].mxu0 %v749_v7  ;;  %v2439_v29 = vpop.f32.mrb[27].mxu1  ;;  %v1250_v38 = vmul.f32 1.442695, %v1227_v4  ;;  %v1209_v27 = vand.u32 2147483647, %v2427_v31  ;;  %v611_v48 = vmax.f32 %v2382_v58, 0.0 }
 0x238   :  { %v1953_v21 = vpop.eup %1952  ;;  %v721_v23 = vmul.f32 0.6931472, %v1951_v1  ;;  %1966 = vpow2.f32 %v1242_v30  ;;  %v740_v19 = vadd.f32 %v719_v11, %v612_v9  ;;  %v715_v0 = vmul.f32 0.6931472, %v1949_v10 }
 0x239   :  { %v1270_v40 = vadd.f32 1.0, %v1953_v21  ;;  %1968 = vpow2.f32 %v1238_v60  ;;  %v1214_v22 = vand.u32 2147483647, %v2430_v61  ;;  %v1225_v47 = vsub.f32 0.0, %v1209_v27 }
 0x23a   :  { %v741_v37 = vadd.f32 %v721_v23, %v613_v32  ;;  %1970 = vpow2.f32 %v1248_v5  ;;  %v1955_v14 = vpop.eup %1954  ;;  %v1212_v39 = vand.u32 2147483647, %v2433_v8  ;;  %v738_v28 = vadd.f32 %v715_v0, %v610_v42 }
 0x23b   :  { %1972 = vlog2.f32 %v1270_v40  ;;  %v1268_v57 = vadd.f32 1.0, %v1955_v14  ;;  %v1230_v62 = vsub.f32 0.0, %v1214_v22  ;;  %v1246_v51 = vmul.f32 1.442695, %v1225_v47 }
 0x23c   :  { %v751_v15 = vpack.c.bf16 %v741_v37, %v740_v19  ;;  %1974 = vpow2.f32 %v1244_v33  ;;  %v1228_v30 = vsub.f32 0.0, %v1212_v39  ;;  %v616_v35 = vmax.f32 %v2386_v25, 0.0  ;;  %v2455_v33 = vld [vmem:[%s2579_s8] ss:$0 sm:$0xff] }
 0x23d   :  { %v1957_v41 = vpop.eup %1956  ;;  %1976 = vpow2.f32 %v1250_v38  ;;  %v1256_v46 = vmul.f32 1.442695, %v1230_v62  ;;  %v614_v56 = vmax.f32 %v2389_v12, 0.0  ;;  %v617_v59 = vmax.f32 %v2393_v18, 0.0 }
 0x23e   :  { %v1959_v45 = vpop.eup %1958  ;;  %v717_v49 = vmul.f32 0.6931472, %v1957_v41  ;;  %1978 = vlog2.f32 %v1268_v57  ;;  %v615_v63 = vmax.f32 %v2399_v36, 0.0  ;;  %v1190_v6 = vmax.f32 %v2403_v24, 0.0 }
 0x23f   :  { %v1961_v52 = vpop.eup %1960  ;;  %v727_v44 = vmul.f32 0.6931472, %v1959_v45  ;;  %1980 = vpow2.f32 %v1246_v51  ;;  %v1252_v9 = vmul.f32 1.442695, %v1228_v30  ;;  %v1188_v37 = vmax.f32 %v2406_v43, 0.0 }
 0x240   :  { %v1963_v54 = vpop.eup %1962  ;;  %v739_v50 = vadd.f32 %v717_v49, %v611_v48  ;;  %v723_v7 = vmul.f32 0.6931472, %v1961_v52  ;;  %1982 = vpow2.f32 %v1256_v46  ;;  %v1191_v42 = vmax.f32 %v2408_v3, 0.0 }
 0x241   :  { %v1965_v53 = vpop.eup %1964  ;;  %v729_v58 = vmul.f32 0.6931472, %v1963_v54  ;;  %v744_v11 = vadd.f32 %v727_v44, %v616_v35  ;;  %v1189_v62 = vmax.f32 %v2412_v55, 0.0  ;;  %v1194_v44 = vmax.f32 %v2416_v20, 0.0 }
 0x242   :  { %v1967_v60 = vpop.eup %1966  ;;  %v725_v2 = vmul.f32 0.6931472, %v1965_v53  ;;  %v750_v5 = vpack.c.bf16 %v739_v50, %v738_v28  ;;  %v742_v21 = vadd.f32 %v723_v7, %v614_v56  ;;  %v1192_v55 = vmax.f32 %v2420_v26, 0.0 }
 0x243   :  { %v1969_v10 = vpop.eup %1968  ;;  %v745_v13 = vadd.f32 %v729_v58, %v617_v59  ;;  %v1271_v1 = vadd.f32 1.0, %v1967_v60  ;;  %v1215_v58 = vand.u32 2147483647, %v2436_v16  ;;  %v1195_v20 = vmax.f32 %v2423_v34, 0.0 }
 0x244   :  { %v1971_v17 = vpop.eup %1970  ;;  %v743_v25 = vadd.f32 %v725_v2, %v615_v63  ;;  %1738 = vmatprep.mubr.bf16.mxu0 %v750_v5  ;;  %v1269_v12 = vadd.f32 1.0, %v1969_v10  ;;  %v1193_v10 = vmax.f32 %v2427_v31, 0.0  ;;  %v1198_v34 = vmax.f32 %v2430_v61, 0.0 }
 0x245   :  { %v1973_v18 = vpop.eup %1972  ;;  %1739 = vmatmul.mubr.bf16.gmra.mrb[24].mxu0 %v751_v15  ;;  %v753_v32 = vpack.c.bf16 %v745_v13, %v744_v11  ;;  %1984 = vlog2.f32 %v1271_v1  ;;  %v1274_v36 = vadd.f32 1.0, %v1971_v17  ;;  %v1231_v26 = vsub.f32 0.0, %v1215_v58 }
 0x246   :  { %v1975_v23 = vpop.eup %1974  ;;  %v752_v4 = vpack.c.bf16 %v743_v25, %v742_v21  ;;  %1986 = vlog2.f32 %v1269_v12  ;;  %v1289_v24 = vmul.f32 0.6931472, %v1973_v18  ;;  %v1196_v31 = vmax.f32 %v2433_v8, 0.0 }
 0x247   :  { %v1977_v19 = vpop.eup %1976  ;;  %1988 = vlog2.f32 %v1274_v36  ;;  %v1272_v40 = vadd.f32 1.0, %v1975_v23  ;;  %v1258_v21 = vmul.f32 1.442695, %v1231_v26  ;;  %v2475_v23 = vpop.f32.mrb[28].mxu1 }
 0x248   :  { %1742 = vmatprep.mubr.bf16.mxu0 %v752_v4  ;;  %1990 = vpow2.f32 %v1252_v9  ;;  %v1318_v38 = vadd.f32 %v1289_v24, %v1190_v6  ;;  %v1979_v27 = vpop.eup %1978  ;;  %v1275_v0 = vadd.f32 1.0, %v1977_v19  ;;  %v1213_v6 = vand.u32 2147483647, %v2439_v29 }
 0x249   :  { %1992 = vlog2.f32 %v1272_v40  ;;  %v1981_v22 = vpop.eup %1980  ;;  %v1285_v15 = vmul.f32 0.6931472, %v1979_v27  ;;  %v1218_v61 = vand.u32 2147483647, %v2475_v23  ;;  %v2479_v40 = vpop.f32.mrb[29].mxu1 }
 0x24a   :  { %v1340_v14 = vmul.f32 %v2455_v33, %v1318_v38  ;;  %1994 = vlog2.f32 %v1275_v0  ;;  %v1273_v39 = vadd.f32 1.0, %v1981_v22  ;;  %v1983_v41 = vpop.eup %1982  ;;  %v1229_v17 = vsub.f32 0.0, %v1213_v6  ;;  %v2482_v38 = vpop.f32.mrb[30].mxu1 }
 0x24b   :  { %v1316_v47 = vadd.f32 %v1285_v15, %v1188_v37  ;;  %v1278_v51 = vadd.f32 1.0, %v1983_v41  ;;  %v1216_v37 = vand.u32 2147483647, %v2479_v40  ;;  %v1234_v27 = vsub.f32 0.0, %v1218_v61  ;;  %v2484_v0 = vpop.f32.mrb[31].mxu1 }
 0x24c   :  { %1358 = vadd.xlane.f32.xlu1 %v1340_v14  ;;  %1996 = vlog2.f32 %v1273_v39  ;;  %v1254_v36 = vmul.f32 1.442695, %v1229_v17  ;;  %v1217_v22 = vand.u32 2147483647, %v2484_v0 }
 0x24d   :  { %1743 = vmatmul.mubr.bf16.gmra.mrb[28].mxu0 %v753_v32  ;;  %v1338_v57 = vmul.f32 %v2455_v33, %v1316_v47  ;;  %1998 = vlog2.f32 %v1278_v51  ;;  %v1232_v8 = vsub.f32 0.0, %v1216_v37  ;;  %v1264_v47 = vmul.f32 1.442695, %v1234_v27 }
 0x24e   :  { %v1233_v41 = vsub.f32 0.0, %v1217_v22 }
 0x24f   :  { %v1985_v43 = vpop.eup %1984  ;;  %v1260_v39 = vmul.f32 1.442695, %v1232_v8 }
 0x250   :  { %v1987_v45 = vpop.eup %1986  ;;  %1354 = vadd.xlane.f32.xlu1 %v1338_v57  ;;  %v1291_v48 = vmul.f32 0.6931472, %v1985_v43  ;;  %v1262_v43 = vmul.f32 1.442695, %v1233_v41 }
 0x251   :  { %v1989_v49 = vpop.eup %1988  ;;  %v1287_v52 = vmul.f32 0.6931472, %v1987_v45 }
 0x252   :  { %v1991_v28 = vpop.eup %1990  ;;  %v1319_v30 = vadd.f32 %v1291_v48, %v1191_v42  ;;  %v1297_v54 = vmul.f32 0.6931472, %v1989_v49  ;;  %v1219_v42 = vand.u32 2147483647, %v2482_v38 }
 0x253   :  { %v1993_v50 = vpop.eup %1992  ;;  %v1317_v7 = vadd.f32 %v1287_v52, %v1189_v62  ;;  %v1276_v46 = vadd.f32 1.0, %v1991_v28 }
 0x254   :  { %v1341_v3 = vmul.f32 %v2455_v33, %v1319_v30  ;;  %v1322_v35 = vadd.f32 %v1297_v54, %v1194_v44  ;;  %v1293_v56 = vmul.f32 0.6931472, %v1993_v50  ;;  %v1995_v59 = vpop.eup %1994  ;;  %v1235_v49 = vsub.f32 0.0, %v1219_v42 }
 0x255   :  { %v1339_v53 = vmul.f32 %v2455_v33, %v1317_v7  ;;  %2000 = vlog2.f32 %v1276_v46  ;;  %v1299_v2 = vmul.f32 0.6931472, %v1995_v59  ;;  %v1199_v46 = vmax.f32 %v2436_v16, 0.0 }
 0x256   :  { %1360 = vadd.xlane.f32.xlu1 %v1341_v3  ;;  %v1344_v60 = vmul.f32 %v2455_v33, %v1322_v35  ;;  %v1320_v63 = vadd.f32 %v1293_v56, %v1192_v55  ;;  %v1997_v5 = vpop.eup %1996  ;;  %2002 = vpow2.f32 %v1258_v21  ;;  %v1266_v52 = vmul.f32 1.442695, %v1235_v49 }
 0x257   :  { %v1323_v13 = vadd.f32 %v1299_v2, %v1195_v20  ;;  %v1295_v1 = vmul.f32 0.6931472, %v1997_v5  ;;  %v1999_v9 = vpop.eup %1998  ;;  %2004 = vpow2.f32 %v1254_v36  ;;  %v1197_v56 = vmax.f32 %v2439_v29, 0.0 }
 0x258   :  { %v1342_v11 = vmul.f32 %v2455_v33, %v1320_v63  ;;  %v1305_v18 = vmul.f32 0.6931472, %v1999_v9  ;;  %2006 = vpow2.f32 %v1264_v47  ;;  %v1202_v5 = vmax.f32 %v2475_v23, 0.0 }
 0x259   :  { %v1345_v25 = vmul.f32 %v2455_v33, %v1323_v13  ;;  %v1321_v12 = vadd.f32 %v1295_v1, %v1193_v10  ;;  %2008 = vpow2.f32 %v1260_v39  ;;  %v1201_v1 = vmax.f32 %v2484_v0, 0.0 }
 0x25a   :  { %1356 = vadd.xlane.f32.xlu1 %v1339_v53  ;;  %v1326_v24 = vadd.f32 %v1305_v18, %v1198_v34  ;;  %2010 = vpow2.f32 %v1262_v43  ;;  %v1203_v18 = vmax.f32 %v2482_v38, 0.0 }
 0x25b   :  { %v1343_v4 = vmul.f32 %v2455_v33, %v1321_v12 }
 0x25c   :  { %v1348_v14 = vmul.f32 %v2455_v33, %v1326_v24 }
 0x25e   :  { %1366 = vadd.xlane.f32.xlu1 %v1344_v60 }
 0x25f   :  { %v2001_v32 = vpop.eup %2000 }
 0x260   :  { %v1301_v19 = vmul.f32 0.6931472, %v2001_v32  ;;  %v2003_v57 = vpop.eup %2002 }
 0x261   :  { %v2005_v45 = vpop.eup %2004  ;;  %v1279_v48 = vadd.f32 1.0, %v2003_v57  ;;  %v2028_v57 = vld [vmem:[%s2576_s1 + $0x18] sm:$0xff]  }
 0x262   :  { %1362 = vadd.xlane.f32.xlu1 %v1342_v11  ;;  %v1324_v15 = vadd.f32 %v1301_v19, %v1196_v31  ;;  %v1277_v51 = vadd.f32 1.0, %v2005_v45  ;;  %v2007_v28 = vpop.eup %2006  ;;  %v1200_v11 = vmax.f32 %v2479_v40, 0.0  ;;  %v2027_v40 = vld [vmem:[%s2576_s1] sm:$0xff]   ;;  %v921_v43 = vunpack.c.l.bf16 %v2028_v57  ;;  %v2029_v45 = vld [vmem:[%s2576_s1 + $0x10] sm:$0xff]  }
 0x263   :  { %2012 = vlog2.f32 %v1279_v48  ;;  %v2009_v44 = vpop.eup %2008  ;;  %v1282_v30 = vadd.f32 1.0, %v2007_v28  ;;  %v915_v37 = vunpack.c.l.bf16 %v2027_v40  ;;  %v919_v48 = vunpack.c.l.bf16 %v2029_v45 }
 0x264   :  { %v1346_v62 = vmul.f32 %v2455_v33, %v1324_v15  ;;  %2014 = vlog2.f32 %v1277_v51  ;;  %v2011_v54 = vpop.eup %2010  ;;  %v1280_v50 = vadd.f32 1.0, %v2009_v44  ;;  %v916_v15 = vunpack.c.h.bf16 %v2027_v40 }
 0x265   :  { %2016 = vpow2.f32 %v1266_v52  ;;  %v1281_v7 = vadd.f32 1.0, %v2011_v54  ;;  %v922_v51 = vunpack.c.h.bf16 %v2028_v57  ;;  %v920_v54 = vunpack.c.h.bf16 %v2029_v45 }
 0x266   :  { %1368 = vadd.xlane.f32.xlu1 %v1345_v25  ;;  %2018 = vlog2.f32 %v1282_v30 }
 0x267   :  { %2020 = vlog2.f32 %v1280_v50 }
 0x268   :  { %2022 = vlog2.f32 %v1281_v7 }
 0x26a   :  { %1364 = vadd.xlane.f32.xlu1 %v1343_v4  ;;  %v2026_v4 = vld [vmem:[%s2576_s1 + $0x8] sm:$0xff]  }
 0x26b   :  { %v917_v24 = vunpack.c.l.bf16 %v2026_v4  ;;  %v918_v22 = vunpack.c.h.bf16 %v2026_v4 }
 0x26d   :  { %v2013_v3 = vpop.eup %2012 }
 0x26e   :  { %1374 = vadd.xlane.f32.xlu1 %v1348_v14  ;;  %v2015_v55 = vpop.eup %2014  ;;  %v1307_v53 = vmul.f32 0.6931472, %v2013_v3  ;;  %v2030_v3 = vld [vmem:[%s2576_s1 + $0x28] sm:$0xff]  }
 0x26f   :  { %v2017_v35 = vpop.eup %2016  ;;  %v1303_v60 = vmul.f32 0.6931472, %v2015_v55 }
 0x270   :  { %v1327_v59 = vadd.f32 %v1307_v53, %v1199_v46  ;;  %v1283_v58 = vadd.f32 1.0, %v2017_v35  ;;  %v2019_v63 = vpop.eup %2018  ;;  %v925_v46 = vunpack.c.l.bf16 %v2030_v3 }
 0x271   :  { %v1325_v2 = vadd.f32 %v1303_v60, %v1197_v56  ;;  %v2021_v6 = vpop.eup %2020  ;;  %v1313_v26 = vmul.f32 0.6931472, %v2019_v63  ;;  %v926_v63 = vunpack.c.h.bf16 %v2030_v3 }
 0x272   :  { %1370 = vadd.xlane.f32.xlu1 %v1346_v62  ;;  %v1349_v20 = vmul.f32 %v2455_v33, %v1327_v59  ;;  %2024 = vlog2.f32 %v1283_v58  ;;  %v2023_v10 = vpop.eup %2022  ;;  %v1309_v13 = vmul.f32 0.6931472, %v2021_v6  ;;  %v2031_v59 = vld [vmem:[%s2576_s1 + $0x20] sm:$0xff]   ;;  %v2032_v6 = vld [vmem:[%s2576_s1 + $0x38] sm:$0xff]  }
 0x273   :  { %v1347_v16 = vmul.f32 %v2455_v33, %v1325_v2  ;;  %v1330_v29 = vadd.f32 %v1313_v26, %v1202_v5  ;;  %v1311_v9 = vmul.f32 0.6931472, %v2023_v10  ;;  %v923_v58 = vunpack.c.l.bf16 %v2031_v59 }
 0x274   :  { %v1328_v21 = vadd.f32 %v1309_v13, %v1200_v11  ;;  %v924_v5 = vunpack.c.h.bf16 %v2031_v59  ;;  %v929_v26 = vunpack.c.l.bf16 %v2032_v6  ;;  %v2033_v11 = vld [vmem:[%s2576_s1 + $0x30] sm:$0xff]  }
 0x275   :  { %v1352_v17 = vmul.f32 %v2455_v33, %v1330_v29  ;;  %v1329_v25 = vadd.f32 %v1311_v9, %v1201_v1  ;;  %v927_v29 = vunpack.c.l.bf16 %v2033_v11  ;;  %v928_v1 = vunpack.c.h.bf16 %v2033_v11 }
 0x276   :  { %1376 = vadd.xlane.f32.xlu1 %v1349_v20  ;;  %v1350_v34 = vmul.f32 %v2455_v33, %v1328_v21  ;;  %v930_v9 = vunpack.c.h.bf16 %v2032_v6 }
 0x277   :  { %v1351_v32 = vmul.f32 %v2455_v33, %v1329_v25 }
 0x27a   :  { %1372 = vadd.xlane.f32.xlu1 %v1347_v16 }
 0x27c   :  { %v2025_v12 = vpop.eup %2024 }
 0x27d   :  { %v1315_v36 = vmul.f32 0.6931472, %v2025_v12 }
 0x27e   :  { %1382 = vadd.xlane.f32.xlu1 %v1352_v17 }
 0x27f   :  { %v1331_v31 = vadd.f32 %v1315_v36, %v1203_v18 }
 0x281   :  { %v1353_v23 = vmul.f32 %v2455_v33, %v1331_v31 }
 0x282   :  { %1378 = vadd.xlane.f32.xlu1 %v1350_v34 }
 0x286   :  { %1380 = vadd.xlane.f32.xlu1 %v1351_v32 }
 0x28a   :  { %1384 = vadd.xlane.f32.xlu1 %v1353_v23 }
 0x2d9   :  { %v1359_v34 = vpop.xlane.xlu1 %1358 }
 0x2dd   :  { %v1355_v25 = vpop.xlane.xlu1 %1354 }
 0x2e3   :  { %v1361_v12 = vpop.xlane.xlu1 %1360 }
 0x2e7   :  { %v1357_v18 = vpop.xlane.xlu1 %1356 }
 0x2eb   :  { %v1367_v32 = vpop.xlane.xlu1 %1366 }
 0x2ef   :  { %v1363_v36 = vpop.xlane.xlu1 %1362 }
 0x2f3   :  { %v1369_v4 = vpop.xlane.xlu1 %1368 }
 0x302   :  { %v1732_v19 = vpop.f32.mrb[16].mxu0 }
 0x303   :  { %v852_v61 = vpop.f32.mrb[17].mxu0  ;;  %v933_v38 = vmul.f32 %v1732_v19, %v917_v24  ;;  %v1365_v19 = vpop.xlane.xlu1 %1364 }
 0x304   :  { %v1733_v27 = vpop.f32.mrb[18].mxu0  ;;  %v931_v8 = vmul.f32 %v915_v37, %v852_v61 }
 0x305   :  { %951 = vadd.xlane.f32.xlu0 %v933_v38  ;;  %v855_v0 = vpop.f32.mrb[19].mxu0  ;;  %v934_v14 = vmul.f32 %v1733_v27, %v918_v22  ;;  %v1418_v38 = vlaneseq }
 0x306   :  { %v932_v42 = vmul.f32 %v916_v15, %v855_v0 }
 0x307   :  { %v2526_v37 = vpop.xlane.xlu1 %1374  ;;  %v2528_v0 = vand.u32 127, %v1418_v38 }
 0x309   :  { %947 = vadd.xlane.f32.xlu0 %v931_v8  ;;  %v1445_v45 = vadd.s32 4294967264, %v2528_v0  ;;  %v1459_v59 = vadd.s32 4294967248, %v2528_v0  ;;  %v1480_v6 = vadd.s32 4294967224, %v2528_v0 }
 0x30a   :  { %v1736_v33 = vpop.f32.mrb[20].mxu0 }
 0x30b   :  { %v868_v47 = vpop.f32.mrb[21].mxu0  ;;  %v937_v62 = vmul.f32 %v1736_v33, %v921_v43  ;;  %v1371_v8 = vpop.xlane.xlu1 %1370  ;;  %v1424_v33 = vadd.s32 4294967288, %v2528_v0 }
 0x30c   :  { %v1737_v39 = vpop.f32.mrb[22].mxu0  ;;  %v935_v49 = vmul.f32 %v919_v48, %v868_v47 }
 0x30d   :  { %953 = vadd.xlane.f32.xlu0 %v934_v14  ;;  %v871_v41 = vpop.f32.mrb[23].mxu0  ;;  %v938_v30 = vmul.f32 %v1737_v39, %v922_v51  ;;  %v2531_v14 = vshrl.u32 %v1418_v38, 7  ;;  %v1452_v51 = vadd.s32 4294967256, %v2528_v0 }
 0x30e   :  { %v936_v7 = vmul.f32 %v920_v54, %v871_v41 }
 0x30f   :  { %v1427_v47 = vsub.s32 %v1424_v33, %v2531_v14  ;;  %v2534_v41 = vpop.xlane.xlu1 %1376  ;;  %v1422_v57 = vsub.s32 %v2528_v0, %v2531_v14  ;;  %v1508_v33 = vadd.s32 4294967192, %v2528_v0 }
 0x311   :  { %949 = vadd.xlane.f32.xlu0 %v932_v42  ;;  %v1431_v42 = vadd.s32 4294967280, %v2528_v0 }
 0x315   :  { %959 = vadd.xlane.f32.xlu0 %v937_v62  ;;  %v1438_v62 = vadd.s32 4294967272, %v2528_v0 }
 0x317   :  { %v1441_v54 = vsub.s32 %v1438_v62, %v2531_v14 }
 0x318   :  { %v1740_v52 = vpop.f32.mrb[24].mxu0 }
 0x319   :  { %v884_v28 = vpop.f32.mrb[25].mxu0  ;;  %955 = vadd.xlane.f32.xlu0 %v935_v49  ;;  %v941_v56 = vmul.f32 %v1740_v52, %v925_v46  ;;  %v1434_v52 = vsub.s32 %v1431_v42, %v2531_v14 }
 0x31a   :  { %v1741_v44 = vpop.f32.mrb[26].mxu0  ;;  %v939_v60 = vmul.f32 %v923_v58, %v884_v28  ;;  %v1466_v58 = vadd.s32 4294967240, %v2528_v0 }
 0x31b   :  { %v887_v50 = vpop.f32.mrb[27].mxu0  ;;  %v942_v2 = vmul.f32 %v1741_v44, %v926_v63  ;;  %v1473_v63 = vadd.s32 4294967232, %v2528_v0 }
 0x31c   :  { %v940_v16 = vmul.f32 %v924_v5, %v887_v50  ;;  %v1448_v50 = vsub.s32 %v1445_v45, %v2531_v14 }
 0x31d   :  { %961 = vadd.xlane.f32.xlu0 %v938_v30  ;;  %v1373_v30 = vpop.xlane.xlu1 %1372 }
 0x320   :  { %v1744_v55 = vpop.f32.mrb[28].mxu0 }
 0x321   :  { %v900_v53 = vpop.f32.mrb[29].mxu0  ;;  %957 = vadd.xlane.f32.xlu0 %v936_v7  ;;  %v945_v10 = vmul.f32 %v1744_v55, %v929_v26  ;;  %v1383_v26 = vpop.xlane.xlu1 %1382 }
 0x322   :  { %v1745_v35 = vpop.f32.mrb[30].mxu0  ;;  %v943_v13 = vmul.f32 %v927_v29, %v900_v53  ;;  %v1455_v53 = vsub.s32 %v1452_v51, %v2531_v14  ;;  %v1515_v51 = vadd.s32 4294967184, %v2528_v0 }
 0x323   :  { %v903_v20 = vpop.f32.mrb[31].mxu0  ;;  %v946_v21 = vmul.f32 %v1745_v35, %v930_v9  ;;  %v1476_v9 = vsub.s32 %v1473_v63, %v2531_v14 }
 0x324   :  { %v944_v17 = vmul.f32 %v928_v1, %v903_v20 }
 0x325   :  { %967 = vadd.xlane.f32.xlu0 %v941_v56 }
 0x329   :  { %963 = vadd.xlane.f32.xlu0 %v939_v60 }
 0x32d   :  { %969 = vadd.xlane.f32.xlu0 %v942_v2 }
 0x331   :  { %965 = vadd.xlane.f32.xlu0 %v940_v16 }
 0x335   :  { %975 = vadd.xlane.f32.xlu0 %v945_v10  ;;  %v1462_v10 = vsub.s32 %v1459_v59, %v2531_v14 }
 0x339   :  { %971 = vadd.xlane.f32.xlu0 %v943_v13  ;;  %v1469_v13 = vsub.s32 %v1466_v58, %v2531_v14 }
 0x33d   :  { %973 = vadd.xlane.f32.xlu0 %v944_v17 }
 0x341   :  { %977 = vadd.xlane.f32.xlu0 %v946_v21 }
 0x392   :  { %v952_v31 = vpop.xlane.xlu0 %951 }
 0x393   :  { %v1388_v28 = vadd.f32 %v1359_v34, %v952_v31  ;;  %v1487_v31 = vadd.s32 4294967216, %v2528_v0 }
 0x395   :  { %v1435_v56 = vrot.slane %v1388_v28, %v1434_v52 }
 0x396   :  { %v948_v23 = vpop.xlane.xlu0 %947 }
 0x397   :  { %v1386_v43 = vadd.f32 %v1355_v25, %v948_v23 }
 0x399   :  { %v1423_v44 = vrot.slane %v1386_v43, %v1422_v57 }
 0x39a   :  { %v954_v24 = vpop.xlane.xlu0 %953 }
 0x39b   :  { %v1389_v46 = vadd.f32 %v1361_v12, %v954_v24  ;;  %v1483_v12 = vsub.s32 %v1480_v6, %v2531_v14 }
 0x39d   :  { %v1442_v5 = vrot.slane %v1389_v46, %v1441_v54 }
 0x39e   :  { %v950_v61 = vpop.xlane.xlu0 %949 }
 0x39f   :  { %v1387_v39 = vadd.f32 %v1357_v18, %v950_v61 }
 0x3a1   :  { %v1428_v49 = vrot.slane %v1387_v39, %v1427_v47 }
 0x3a2   :  { %v960_v40 = vpop.xlane.xlu0 %959 }
 0x3a3   :  { %v1430_v55 = vsel %vm1429_vm0, %v1428_v49, %v1423_v44  ;;  %v1392_v11 = vadd.f32 %v1367_v32, %v960_v40  ;;  %v1379_v32 = vpop.xlane.xlu1 %1378  ;;  %v1501_v40 = vadd.s32 4294967200, %v2528_v0 }
 0x3a4   :  { %v1437_v20 = vsel %vm1436_vm1, %v1435_v56, %v1430_v55 }
 0x3a5   :  { %v1444_v29 = vsel %vm1443_vm2, %v1442_v5, %v1437_v20  ;;  %v1504_v39 = vsub.s32 %v1501_v40, %v2531_v14 }
 0x3a6   :  { %v956_v27 = vpop.xlane.xlu0 %955 }
 0x3a7   :  { %v1390_v7 = vadd.f32 %v1363_v36, %v956_v27  ;;  %v1463_v36 = vrot.slane %v1392_v11, %v1462_v10  ;;  %v1381_v45 = vpop.xlane.xlu1 %1380 }
 0x3a9   :  { %v1449_v60 = vrot.slane %v1390_v7, %v1448_v50 }
 0x3aa   :  { %v962_v22 = vpop.xlane.xlu0 %961 }
 0x3ab   :  { %v1451_v1 = vsel %vm1450_vm3, %v1449_v60, %v1444_v29  ;;  %v1393_v34 = vadd.f32 %v1369_v4, %v962_v22  ;;  %v1490_v4 = vsub.s32 %v1487_v31, %v2531_v14  ;;  %v1385_v55 = vpop.xlane.xlu1 %1384 }
 0x3ad   :  { %v1470_v38 = vrot.slane %v1393_v34, %v1469_v13 }
 0x3ae   :  { %v958_v15 = vpop.xlane.xlu0 %957 }
 0x3af   :  { %v1391_v35 = vadd.f32 %v1365_v19, %v958_v15  ;;  %v1494_v19 = vadd.s32 4294967208, %v2528_v0 }
 0x3b1   :  { %v1456_v16 = vrot.slane %v1391_v35, %v1455_v53  ;;  %v1497_v47 = vsub.s32 %v1494_v19, %v2531_v14 }
 0x3b2   :  { %v968_v48 = vpop.xlane.xlu0 %967 }
 0x3b3   :  { %v1458_v25 = vsel %vm1457_vm4, %v1456_v16, %v1451_v1 }
 0x3b4   :  { %v1465_v23 = vsel %vm1464_vm5, %v1463_v36, %v1458_v25 }
 0x3b5   :  { %v1472_v22 = vsel %vm1471_vm6, %v1470_v38, %v1465_v23 }
 0x3b6   :  { %v964_v3 = vpop.xlane.xlu0 %963 }
 0x3b7   :  { %v1394_v17 = vadd.f32 %v1371_v8, %v964_v3  ;;  %v1396_v8 = vadd.f32 %v2526_v37, %v968_v48  ;;  %v1511_v37 = vsub.s32 %v1508_v33, %v2531_v14  ;;  %v1522_v48 = vadd.s32 4294967176, %v2528_v0 }
 0x3b9   :  { %v1477_v24 = vrot.slane %v1394_v17, %v1476_v9  ;;  %v1491_v49 = vrot.slane %v1396_v8, %v1490_v4  ;;  %v1525_v46 = vsub.s32 %v1522_v48, %v2531_v14 }
 0x3ba   :  { %v970_v2 = vpop.xlane.xlu0 %969 }
 0x3bb   :  { %v1479_v15 = vsel %vm1478_vm7, %v1477_v24, %v1472_v22  ;;  %v1397_v57 = vadd.f32 %v2534_v41, %v970_v2  ;;  %v1518_v41 = vsub.s32 %v1515_v51, %v2531_v14 }
 0x3be   :  { %v966_v21 = vpop.xlane.xlu0 %965 }
 0x3bf   :  { %v1395_v18 = vadd.f32 %v1373_v30, %v966_v21  ;;  %v1498_v30 = vrot.slane %v1397_v57, %v1497_v47 }
 0x3c1   :  { %v1484_v27 = vrot.slane %v1395_v18, %v1483_v12 }
 0x3c2   :  { %v976_v61 = vpop.xlane.xlu0 %975 }
 0x3c3   :  { %v1486_v43 = vsel %vm1485_vm8, %v1484_v27, %v1479_v15  ;;  %v1400_v50 = vadd.f32 %v1383_v26, %v976_v61 }
 0x3c4   :  { %v1493_v52 = vsel %vm1492_vm9, %v1491_v49, %v1486_v43 }
 0x3c5   :  { %v1500_v7 = vsel %vm1499_vm10, %v1498_v30, %v1493_v52  ;;  %v1519_v59 = vrot.slane %v1400_v50, %v1518_v41 }
 0x3c6   :  { %v972_v42 = vpop.xlane.xlu0 %971 }
 0x3c7   :  { %v1398_v62 = vadd.f32 %v1379_v32, %v972_v42 }
 0x3c9   :  { %v1505_v28 = vrot.slane %v1398_v62, %v1504_v39 }
 0x3ca   :  { %v974_v44 = vpop.xlane.xlu0 %973 }
 0x3cb   :  { %v1399_v54 = vadd.f32 %v1381_v45, %v974_v44  ;;  %v1507_v53 = vsel %vm1506_vm11, %v1505_v28, %v1500_v7 }
 0x3cd   :  { %v1512_v3 = vrot.slane %v1399_v54, %v1511_v37 }
 0x3ce   :  { %v978_v35 = vpop.xlane.xlu0 %977 }
 0x3cf   :  { %v1514_v56 = vsel %vm1513_vm12, %v1512_v3, %v1507_v53  ;;  %v1401_v0 = vadd.f32 %v1385_v55, %v978_v35 }
 0x3d0   :  { %v1521_v20 = vsel %vm1520_vm13, %v1519_v59, %v1514_v56 }
 0x3d1   :  { %v1526_v58 = vrot.slane %v1401_v0, %v1525_v46 }
 0x3d3   :  { %v1528_v60 = vsel %vm1527_vm14, %v1526_v58, %v1521_v20 }
 0x3d4   :  { %1530 = vst [vmem:[%s2580_s9] sm:$0x1] %v1528_v60 }

// kernel: _forward.1
= control target key start
LH: loop header
LB: loop body
LE: loop exit
PB: predicated region body
PF: predicated region fallthrough
CT: control target
= control target key end

     0   :  { %vm1429_vm0 = vcmask 130112   ;;  %vm1436_vm1 = vcmask 195712   ;;  %vm1443_vm2 = vcmask 261312   ;;  %vm1450_vm3 = vcmask 326912   ;;  %s2571_s2 = inlined_call_operand.vmem [shape: bf16[128,128], index: 2, kind: input, shape index: {}]   ;;  %s2572_s0 = inlined_call_operand.vmem [shape: bf16[128,128], index: 0, kind: input, shape index: {}]   ;;  %s2573_s4 = inlined_call_operand.vmem [shape: bf16[128,128], index: 4, kind: input, shape index: {}]   ;;  %s2574_s7 = inlined_call_operand.vmem [shape: bf16[128,128], index: 7, kind: input, shape index: {}]   ;;  %s2575_s3 = inlined_call_operand.vmem [shape: f32[1,128], index: 3, kind: input, shape index: {}]   ;;  %s2576_s1 = inlined_call_operand.vmem [shape: bf16[128,128], index: 1, kind: input, shape index: {}]   ;;  %s2577_s6 = inlined_call_operand.vmem [shape: bf16[128,128], index: 6, kind: input, shape index: {}]   ;;  %s2578_s5 = inlined_call_operand.vmem [shape: f32[1,128], index: 5, kind: input, shape index: {}]   ;;  %s2579_s8 = inlined_call_operand.vmem [shape: f32[1,128], index: 8, kind: input, shape index: {}]   ;;  %s2580_s9 = inlined_call_operand.vmem [shape: f32[1,1,128], index: 9, kind: output, shape index: {}]  }
   0x1   :  { %v1778_v0 = vld [vmem:[%s2571_s2] sm:$0xff]   ;;  %v1779_v1 = vld [vmem:[%s2571_s2 + $0x8] sm:$0xff]   ;;  %v1780_v2 = vld [vmem:[%s2571_s2 + $0x10] sm:$0xff]   ;;  %vm1457_vm4 = vcmask 392512   ;;  %vm1464_vm5 = vcmask 458112   ;;  %vm1471_vm6 = vcmask 523712  }
   0x2   :  { %1650 = vmatprep.subr.bf16.mxu0 %v1778_v0  ;;  %v1781_v3 = vld [vmem:[%s2571_s2 + $0x18] sm:$0xff]   ;;  %v1786_v4 = vld [vmem:[%s2572_s0] sm:$0xff]   ;;  %v1783_v6 = vld [vmem:[%s2571_s2 + $0x28] sm:$0xff]   ;;  %vm1478_vm7 = vcmask 589312   ;;  %vm1485_vm8 = vcmask 654912   ;;  %vm1492_vm9 = vcmask 720512  }
   0x3   :  { %1651 = vmatpush3.bf16.msra.mxu0 %v1778_v0  ;;  %1666 = vmatprep.mubr.bf16.mxu0 %v1786_v4  ;;  %v1782_v5 = vld [vmem:[%s2571_s2 + $0x20] sm:$0xff]   ;;  %v1784_v7 = vld [vmem:[%s2571_s2 + $0x30] sm:$0xff]   ;;  %v1785_v8 = vld [vmem:[%s2571_s2 + $0x38] sm:$0xff]   ;;  %vm1499_vm10 = vcmask 786112   ;;  %vm1506_vm11 = vcmask 851712   ;;  %vm1513_vm12 = vcmask 917312  }
   0x4   :  { %1652 = vmatprep.subr.bf16.mxu0 %v1779_v1  ;;  %v1787_v9 = vld [vmem:[%s2572_s0 + $0x8] sm:$0xff]   ;;  %v1788_v10 = vld [vmem:[%s2572_s0 + $0x10] sm:$0xff]   ;;  %v1789_v11 = vld [vmem:[%s2572_s0 + $0x18] sm:$0xff]   ;;  %vm1520_vm13 = vcmask 982912   ;;  %vm1527_vm14 = vcmask 1048512  }
   0x5   :  { %v1790_v12 = vld [vmem:[%s2572_s0 + $0x20] sm:$0xff]   ;;  %v1791_v13 = vld [vmem:[%s2572_s0 + $0x28] sm:$0xff]   ;;  %v1792_v14 = vld [vmem:[%s2572_s0 + $0x30] sm:$0xff]  }
   0x6   :  { %v1793_v15 = vld [vmem:[%s2572_s0 + $0x38] sm:$0xff]   ;;  %v1794_v16 = vld [vmem:[%s2573_s4] sm:$0xff]   ;;  %v1795_v17 = vld [vmem:[%s2573_s4 + $0x8] sm:$0xff]  }
   0x7   :  { %1653 = vmatpush3.bf16.msra.mxu0 %v1779_v1  ;;  %1682 = vmatprep.subr.bf16.mxu1 %v1794_v16  ;;  %v1796_v18 = vld [vmem:[%s2573_s4 + $0x10] sm:$0xff]   ;;  %v1797_v19 = vld [vmem:[%s2573_s4 + $0x18] sm:$0xff]   ;;  %v1798_v20 = vld [vmem:[%s2573_s4 + $0x20] sm:$0xff]  }
   0x8   :  { %1654 = vmatprep.subr.bf16.mxu0 %v1780_v2  ;;  %1683 = vmatpush3.bf16.msra.mxu1 %v1794_v16  ;;  %v1799_v21 = vld [vmem:[%s2573_s4 + $0x28] sm:$0xff]   ;;  %v1800_v22 = vld [vmem:[%s2573_s4 + $0x30] sm:$0xff]   ;;  %v1801_v23 = vld [vmem:[%s2573_s4 + $0x38] sm:$0xff]  }
   0x9   :  { %1684 = vmatprep.subr.bf16.mxu1 %v1795_v17  ;;  %v2159_v24 = vld [vmem:[%s2574_s7] sm:$0xff]  }
   0xa   :  { %v2165_v25 = vld [vmem:[%s2575_s3] ss:$0 sm:$0xff] }
   0xb   :  { %1655 = vmatpush3.bf16.msra.mxu0 %v1780_v2 }
   0xc   :  { %1656 = vmatprep.subr.bf16.mxu0 %v1781_v3  ;;  %1685 = vmatpush3.bf16.msra.mxu1 %v1795_v17 }
   0xd   :  { %1686 = vmatprep.subr.bf16.mxu1 %v1796_v18 }
   0xf   :  { %1657 = vmatpush3.bf16.msra.mxu0 %v1781_v3 }
  0x10   :  { %1658 = vmatprep.subr.bf16.mxu0 %v1782_v5  ;;  %1687 = vmatpush3.bf16.msra.mxu1 %v1796_v18 }
  0x11   :  { %1688 = vmatprep.subr.bf16.mxu1 %v1797_v19 }
  0x13   :  { %1659 = vmatpush3.bf16.msra.mxu0 %v1782_v5 }
  0x14   :  { %1660 = vmatprep.subr.bf16.mxu0 %v1783_v6  ;;  %1689 = vmatpush3.bf16.msra.mxu1 %v1797_v19 }
  0x15   :  { %1690 = vmatprep.subr.bf16.mxu1 %v1798_v20 }
  0x17   :  { %1661 = vmatpush3.bf16.msra.mxu0 %v1783_v6 }
  0x18   :  { %1662 = vmatprep.subr.bf16.mxu0 %v1784_v7  ;;  %1691 = vmatpush3.bf16.msra.mxu1 %v1798_v20 }
  0x19   :  { %1692 = vmatprep.subr.bf16.mxu1 %v1799_v21 }
  0x1b   :  { %1663 = vmatpush3.bf16.msra.mxu0 %v1784_v7 }
  0x1c   :  { %1664 = vmatprep.subr.bf16.mxu0 %v1785_v8  ;;  %1693 = vmatpush3.bf16.msra.mxu1 %v1799_v21 }
  0x1d   :  { %1694 = vmatprep.subr.bf16.mxu1 %v1800_v22 }
  0x1f   :  { %1665 = vmatpush3.bf16.msra.mxu0 %v1785_v8 }
  0x20   :  { %1695 = vmatpush3.bf16.msra.mxu1 %v1800_v22 }
  0x21   :  { %1696 = vmatprep.subr.bf16.mxu1 %v1801_v23 }
  0x22   :  { %1667 = vmatmul.mubr.bf16.vlgmr.msra.gmra.mrb[0].mxu0 %v1787_v9 }
  0x23   :  { %1670 = vmatprep.mubr.bf16.mxu0 %v1788_v10 }
  0x24   :  { %1697 = vmatpush3.bf16.msra.mxu1 %v1801_v23 }
  0x25   :  { %1746 = vmatprep.subr.bf16.mxu1 %v2159_v24 }
  0x2a   :  { %1671 = vmatmul.mubr.bf16.gmra.mrb[4].mxu0 %v1789_v11 }
  0x2b   :  { %1674 = vmatprep.mubr.bf16.mxu0 %v1790_v12 }
  0x32   :  { %1675 = vmatmul.mubr.bf16.gmra.mrb[8].mxu0 %v1791_v13 }
  0x33   :  { %1678 = vmatprep.mubr.bf16.mxu0 %v1792_v14 }
  0x3a   :  { %1679 = vmatmul.mubr.bf16.gmra.mrb[12].mxu0 %v1793_v15 }
  0xf5   :  { %v1668_v26 = vpop.f32.mrb[0].mxu0 }
  0xf6   :  { %v2168_v27 = vadd.f32 %v1668_v26, %v2165_v25  ;;  %v220_v28 = vpop.f32.mrb[1].mxu0 }
  0xf7   :  { %v2171_v29 = vadd.f32 %v2165_v25, %v220_v28  ;;  %v1669_v30 = vpop.f32.mrb[2].mxu0 }
  0xf8   :  { %v301_v31 = vand.u32 2147483647, %v2168_v27  ;;  %v2175_v32 = vadd.f32 %v1669_v30, %v2165_v25  ;;  %v223_v33 = vpop.f32.mrb[3].mxu0 }
  0xf9   :  { %v299_v34 = vand.u32 2147483647, %v2171_v29  ;;  %v2180_v40 = vadd.f32 %v2165_v25, %v223_v33 }
  0xfa   :  { %v317_v35 = vsub.f32 0.0, %v301_v31  ;;  %v302_v36 = vand.u32 2147483647, %v2175_v32 }
  0xfb   :  { %v315_v37 = vsub.f32 0.0, %v299_v34  ;;  %v300_v48 = vand.u32 2147483647, %v2180_v40 }
  0xfc   :  { %v335_v38 = vmul.f32 1.442695, %v317_v35  ;;  %v318_v39 = vsub.f32 0.0, %v302_v36 }
  0xfd   :  { %v331_v41 = vmul.f32 1.442695, %v315_v37  ;;  %v1672_v42 = vpop.f32.mrb[4].mxu0  ;;  %v316_v58 = vsub.f32 0.0, %v300_v48 }
  0xfe   :  { %1834 = vpow2.f32 %v335_v38  ;;  %v337_v43 = vmul.f32 1.442695, %v318_v39  ;;  %v2183_v44 = vadd.f32 %v1672_v42, %v2165_v25  ;;  %v236_v45 = vpop.f32.mrb[5].mxu0 }
  0xff   :  { %1836 = vpow2.f32 %v331_v41  ;;  %v2186_v46 = vadd.f32 %v2165_v25, %v236_v45  ;;  %v1673_v47 = vpop.f32.mrb[6].mxu0  ;;  %v333_v7 = vmul.f32 1.442695, %v316_v58 }
 0x100   :  { %1838 = vpow2.f32 %v337_v43  ;;  %v305_v49 = vand.u32 2147483647, %v2183_v44  ;;  %v2191_v50 = vadd.f32 %v1673_v47, %v2165_v25  ;;  %v239_v51 = vpop.f32.mrb[7].mxu0 }
 0x101   :  { %v303_v52 = vand.u32 2147483647, %v2186_v46  ;;  %v2195_v53 = vadd.f32 %v2165_v25, %v239_v51 }
 0x102   :  { %v321_v54 = vsub.f32 0.0, %v305_v49  ;;  %v306_v55 = vand.u32 2147483647, %v2191_v50 }
 0x103   :  { %v319_v56 = vsub.f32 0.0, %v303_v52  ;;  %v304_v57 = vand.u32 2147483647, %v2195_v53 }
 0x104   :  { %v343_v59 = vmul.f32 1.442695, %v321_v54  ;;  %v322_v60 = vsub.f32 0.0, %v306_v55 }
 0x105   :  { %v339_v61 = vmul.f32 1.442695, %v319_v56  ;;  %v320_v62 = vsub.f32 0.0, %v304_v57  ;;  %v1676_v63 = vpop.f32.mrb[8].mxu0 }
 0x106   :  { %1840 = vpow2.f32 %v343_v59  ;;  %v345_v0 = vmul.f32 1.442695, %v322_v60  ;;  %v2200_v1 = vadd.f32 %v1676_v63, %v2165_v25  ;;  %v252_v2 = vpop.f32.mrb[9].mxu0 }
 0x107   :  { %1842 = vpow2.f32 %v339_v61  ;;  %v341_v3 = vmul.f32 1.442695, %v320_v62  ;;  %v2203_v4 = vadd.f32 %v2165_v25, %v252_v2  ;;  %v1677_v5 = vpop.f32.mrb[10].mxu0 }
 0x108   :  { %v1835_v6 = vpop.eup %1834  ;;  %1844 = vpow2.f32 %v345_v0  ;;  %v309_v8 = vand.u32 2147483647, %v2200_v1  ;;  %v2207_v9 = vadd.f32 %v1677_v5, %v2165_v25  ;;  %v255_v10 = vpop.f32.mrb[11].mxu0 }
 0x109   :  { %v1837_v11 = vpop.eup %1836  ;;  %v365_v12 = vadd.f32 1.0, %v1835_v6  ;;  %1846 = vpow2.f32 %v341_v3  ;;  %v307_v13 = vand.u32 2147483647, %v2203_v4  ;;  %v2212_v19 = vadd.f32 %v2165_v25, %v255_v10 }
 0x10a   :  { %v1839_v14 = vpop.eup %1838  ;;  %v325_v15 = vsub.f32 0.0, %v309_v8  ;;  %v310_v16 = vand.u32 2147483647, %v2207_v9  ;;  %v363_v22 = vadd.f32 1.0, %v1837_v11  ;;  %v286_v8 = vmax.f32 %v2175_v32, 0.0 }
 0x10b   :  { %1848 = vlog2.f32 %v365_v12  ;;  %v366_v17 = vadd.f32 1.0, %v1839_v14  ;;  %v323_v18 = vsub.f32 0.0, %v307_v13  ;;  %v308_v26 = vand.u32 2147483647, %v2212_v19 }
 0x10c   :  { %1850 = vpow2.f32 %v333_v7  ;;  %v351_v20 = vmul.f32 1.442695, %v325_v15  ;;  %v326_v21 = vsub.f32 0.0, %v310_v16 }
 0x10d   :  { %1852 = vlog2.f32 %v366_v17  ;;  %v347_v23 = vmul.f32 1.442695, %v323_v18  ;;  %v1680_v28 = vpop.f32.mrb[12].mxu0  ;;  %v324_v34 = vsub.f32 0.0, %v308_v26 }
 0x10e   :  { %1854 = vpow2.f32 %v351_v20  ;;  %v353_v30 = vmul.f32 1.442695, %v326_v21  ;;  %v2216_v31 = vadd.f32 %v1680_v28, %v2165_v25  ;;  %v268_v33 = vpop.f32.mrb[13].mxu0 }
 0x10f   :  { %1856 = vpow2.f32 %v347_v23  ;;  %v2219_v35 = vadd.f32 %v2165_v25, %v268_v33  ;;  %v1681_v36 = vpop.f32.mrb[14].mxu0  ;;  %v349_v49 = vmul.f32 1.442695, %v324_v34  ;;  %v289_v33 = vmax.f32 %v2183_v44, 0.0 }
 0x110   :  { %v1841_v37 = vpop.eup %1840  ;;  %1858 = vpow2.f32 %v353_v30  ;;  %v313_v38 = vand.u32 2147483647, %v2216_v31  ;;  %v2223_v39 = vadd.f32 %v1681_v36, %v2165_v25  ;;  %v271_v41 = vpop.f32.mrb[15].mxu0  ;;  %v290_v34 = vmax.f32 %v2191_v50, 0.0 }
 0x111   :  { %v1843_v42 = vpop.eup %1842  ;;  %v369_v43 = vadd.f32 1.0, %v1841_v37  ;;  %v311_v45 = vand.u32 2147483647, %v2219_v35  ;;  %1860 = vlog2.f32 %v363_v22  ;;  %v2228_v57 = vadd.f32 %v2165_v25, %v271_v41 }
 0x112   :  { %v1845_v47 = vpop.eup %1844  ;;  %v367_v48 = vadd.f32 1.0, %v1843_v42  ;;  %v329_v51 = vsub.f32 0.0, %v313_v38  ;;  %v314_v52 = vand.u32 2147483647, %v2223_v39  ;;  %v285_v25 = vmax.f32 %v2168_v27, 0.0 }
 0x113   :  { %v1847_v54 = vpop.eup %1846  ;;  %1862 = vlog2.f32 %v369_v43  ;;  %v370_v55 = vadd.f32 1.0, %v1845_v47  ;;  %v327_v56 = vsub.f32 0.0, %v311_v45  ;;  %v312_v63 = vand.u32 2147483647, %v2228_v57 }
 0x114   :  { %1864 = vlog2.f32 %v367_v48  ;;  %v368_v58 = vadd.f32 1.0, %v1847_v54  ;;  %v359_v59 = vmul.f32 1.442695, %v329_v51  ;;  %v330_v60 = vsub.f32 0.0, %v314_v52 }
 0x115   :  { %v1849_v61 = vpop.eup %1848  ;;  %1866 = vlog2.f32 %v370_v55  ;;  %v355_v62 = vmul.f32 1.442695, %v327_v56  ;;  %v328_v6 = vsub.f32 0.0, %v312_v63  ;;  %v287_v38 = vmax.f32 %v2186_v46, 0.0 }
 0x116   :  { %v1851_v0 = vpop.eup %1850  ;;  %v384_v2 = vmul.f32 0.6931472, %v1849_v61  ;;  %1868 = vlog2.f32 %v368_v58  ;;  %v361_v3 = vmul.f32 1.442695, %v330_v60  ;;  %v288_v41 = vmax.f32 %v2195_v53, 0.0 }
 0x117   :  { %v1853_v5 = vpop.eup %1852  ;;  %1870 = vpow2.f32 %v349_v49  ;;  %v357_v16 = vmul.f32 1.442695, %v328_v6  ;;  %v364_v18 = vadd.f32 1.0, %v1851_v0  ;;  %v293_v61 = vmax.f32 %v2200_v1, 0.0 }
 0x118   :  { %v1855_v7 = vpop.eup %1854  ;;  %v386_v10 = vmul.f32 0.6931472, %v1853_v5  ;;  %1872 = vpow2.f32 %v359_v59  ;;  %v2233_v14 = vadd.f32 %v384_v2, %v285_v25 }
 0x119   :  { %v1857_v11 = vpop.eup %1856  ;;  %v373_v12 = vadd.f32 1.0, %v1855_v7  ;;  %1874 = vpow2.f32 %v355_v62  ;;  %v294_v62 = vmax.f32 %v2207_v9, 0.0  ;;  %v284_v7 = vmax.f32 %v2180_v40, 0.0  ;;  %v1803_v40 = vld [vmem:[%s2574_s7 + $0x8] sm:$0xff]  }
 0x11a   :  { %v1859_v13 = vpop.eup %1858  ;;  %v2235_v15 = vadd.f32 %v386_v10, %v286_v8  ;;  %1876 = vpow2.f32 %v361_v3  ;;  %v371_v21 = vadd.f32 1.0, %v1857_v11  ;;  %v283_v3 = vmax.f32 %v2171_v29, 0.0 }
 0x11b   :  { %v1861_v17 = vpop.eup %1860  ;;  %1878 = vlog2.f32 %v373_v12  ;;  %v374_v20 = vadd.f32 1.0, %v1859_v13 }
 0x11c   :  { %v428_v27 = vpack.c.bf16 %v2235_v15, %v2233_v14  ;;  %v380_v0 = vmul.f32 0.6931472, %v1861_v17  ;;  %v291_v17 = vmax.f32 %v2203_v4, 0.0  ;;  %v298_v4 = vmax.f32 %v2223_v39, 0.0 }
 0x11d   :  { %v1863_v32 = vpop.eup %1862  ;;  %1880 = vlog2.f32 %v374_v20  ;;  %v292_v20 = vmax.f32 %v2212_v19, 0.0  ;;  %v295_v14 = vmax.f32 %v2219_v35, 0.0  ;;  %v1806_v35 = vld [vmem:[%s2574_s7 + $0x20] sm:$0xff]  }
 0x11e   :  { %v1865_v22 = vpop.eup %1864  ;;  %v392_v23 = vmul.f32 0.6931472, %v1863_v32  ;;  %1882 = vpow2.f32 %v357_v16  ;;  %v411_v11 = vadd.f32 %v380_v0, %v283_v3 }
 0x11f   :  { %v1867_v26 = vpop.eup %1866  ;;  %v388_v28 = vmul.f32 0.6931472, %v1865_v22  ;;  %1884 = vlog2.f32 %v364_v18 }
 0x120   :  { %v1869_v30 = vpop.eup %1868  ;;  %v394_v36 = vmul.f32 0.6931472, %v1867_v26  ;;  %1886 = vlog2.f32 %v371_v21  ;;  %v2243_v45 = vadd.f32 %v392_v23, %v289_v33  ;;  %v1804_v33 = vld [vmem:[%s2574_s7 + $0x10] sm:$0xff]  }
 0x121   :  { %v1871_v37 = vpop.eup %1870  ;;  %v390_v42 = vmul.f32 0.6931472, %v1869_v30  ;;  %v415_v51 = vadd.f32 %v388_v28, %v287_v38  ;;  %v297_v28 = vmax.f32 %v2216_v31, 0.0  ;;  %v296_v31 = vmax.f32 %v2228_v57, 0.0  ;;  %v1807_v57 = vld [vmem:[%s2574_s7 + $0x28] sm:$0xff]  }
 0x122   :  { %v1873_v43 = vpop.eup %1872  ;;  %v2245_v47 = vadd.f32 %v394_v36, %v290_v34  ;;  %v372_v48 = vadd.f32 1.0, %v1871_v37 }
 0x123   :  { %v1875_v49 = vpop.eup %1874  ;;  %v416_v52 = vadd.f32 %v390_v42, %v288_v41  ;;  %v377_v44 = vadd.f32 1.0, %v1873_v43  ;;  %v1808_v43 = vld [vmem:[%s2574_s7 + $0x30] sm:$0xff]  }
 0x124   :  { %v1877_v54 = vpop.eup %1876  ;;  %1888 = vlog2.f32 %v372_v48  ;;  %v375_v50 = vadd.f32 1.0, %v1875_v49  ;;  %v430_v55 = vpack.c.bf16 %v2245_v47, %v2243_v45  ;;  %v49_v45 = vld [vmem:[%s2576_s1] sm:$0xff]   ;;  %v1809_v47 = vld [vmem:[%s2574_s7 + $0x38] sm:$0xff]   ;;  %v51_v48 = vld [vmem:[%s2576_s1 + $0x8] sm:$0xff]  }
 0x125   :  { %v1879_v46 = vpop.eup %1878  ;;  %1890 = vlog2.f32 %v377_v44  ;;  %v378_v53 = vadd.f32 1.0, %v1877_v54  ;;  %v429_v56 = vpack.c.bf16 %v416_v52, %v415_v51  ;;  %v53_v49 = vld [vmem:[%s2576_s1 + $0x10] sm:$0xff]   ;;  %v55_v51 = vld [vmem:[%s2576_s1 + $0x18] sm:$0xff]   ;;  %v57_v52 = vld [vmem:[%s2576_s1 + $0x20] sm:$0xff]  }
 0x126   :  { %v400_v58 = vmul.f32 0.6931472, %v1879_v46  ;;  %1892 = vlog2.f32 %v375_v50  ;;  %v59_v44 = vld [vmem:[%s2576_s1 + $0x28] sm:$0xff]   ;;  %v1816_v54 = vld [vmem:[%s2577_s6] sm:$0xff]   ;;  %v61_v50 = vld [vmem:[%s2576_s1 + $0x30] sm:$0xff]  }
 0x127   :  { %v1881_v59 = vpop.eup %1880  ;;  %1894 = vlog2.f32 %v378_v53  ;;  %1714 = vmatprep.subr.bf16.mxu0 %v1816_v54  ;;  %v1817_v46 = vld [vmem:[%s2577_s6 + $0x8] sm:$0xff]   ;;  %v1820_v53 = vld [vmem:[%s2577_s6 + $0x10] sm:$0xff]  }
 0x128   :  { %v1883_v60 = vpop.eup %1882  ;;  %v402_v63 = vmul.f32 0.6931472, %v1881_v59  ;;  %v421_v25 = vadd.f32 %v400_v58, %v293_v61  ;;  %1715 = vmatpush3.bf16.msra.mxu0 %v1816_v54  ;;  %v1822_v58 = vld [vmem:[%s2577_s6 + $0x20] sm:$0xff]   ;;  %v1823_v59 = vld [vmem:[%s2577_s6 + $0x28] sm:$0xff]   ;;  %v1825_v61 = vld [vmem:[%s2577_s6 + $0x38] sm:$0xff]  }
 0x129   :  { %v1885_v2 = vpop.eup %1884  ;;  %v376_v5 = vadd.f32 1.0, %v1883_v60  ;;  %1716 = vmatprep.subr.bf16.mxu0 %v1817_v46  ;;  %v1824_v60 = vld [vmem:[%s2577_s6 + $0x30] sm:$0xff]  }
 0x12a   :  { %v1887_v6 = vpop.eup %1886  ;;  %v422_v8 = vadd.f32 %v402_v63, %v294_v62  ;;  %v382_v10 = vmul.f32 0.6931472, %v1885_v2  ;;  %v2335_v62 = vld [vmem:[%s2578_s5] ss:$0 sm:$0xff] }
 0x12b   :  { %1896 = vlog2.f32 %v376_v5  ;;  %v396_v16 = vmul.f32 0.6931472, %v1887_v6 }
 0x12c   :  { %v412_v12 = vadd.f32 %v382_v10, %v284_v7  ;;  %v432_v13 = vpack.c.bf16 %v422_v8, %v421_v25  ;;  %1717 = vmatpush3.bf16.msra.mxu0 %v1817_v46 }
 0x12d   :  { %v419_v23 = vadd.f32 %v396_v16, %v291_v17  ;;  %1718 = vmatprep.subr.bf16.mxu0 %v1820_v53 }
 0x12e   :  { %v1889_v1 = vpop.eup %1888  ;;  %v427_v18 = vpack.c.bf16 %v412_v12, %v411_v11 }
 0x12f   :  { %v1891_v9 = vpop.eup %1890  ;;  %v398_v29 = vmul.f32 0.6931472, %v1889_v1 }
 0x130   :  { %v1893_v21 = vpop.eup %1892  ;;  %v408_v32 = vmul.f32 0.6931472, %v1891_v9  ;;  %1698 = vmatprep.mubr.bf16.mxu1 %v427_v18  ;;  %1719 = vmatpush3.bf16.msra.mxu0 %v1820_v53 }
 0x131   :  { %v1895_v22 = vpop.eup %1894  ;;  %v420_v26 = vadd.f32 %v398_v29, %v292_v20  ;;  %1699 = vmatmul.mubr.bf16.vlgmr.msra.gmra.mrb[0].mxu1 %v428_v27  ;;  %v404_v36 = vmul.f32 0.6931472, %v1893_v21 }
 0x132   :  { %v410_v19 = vmul.f32 0.6931472, %v1895_v22  ;;  %1702 = vmatprep.mubr.bf16.mxu1 %v429_v56  ;;  %1747 = vmatpush3.bf16.msra.mxu1 %v2159_v24  ;;  %v425_v34 = vadd.f32 %v408_v32, %v297_v28  ;;  %v1805_v24 = vld [vmem:[%s2574_s7 + $0x18] sm:$0xff]  }
 0x133   :  { %v431_v30 = vpack.c.bf16 %v420_v26, %v419_v23  ;;  %1748 = vmatprep.subr.bf16.mxu1 %v1803_v40  ;;  %v423_v27 = vadd.f32 %v404_v36, %v295_v14  ;;  %v1821_v56 = vld [vmem:[%s2577_s6 + $0x18] sm:$0xff]  }
 0x134   :  { %v426_v37 = vadd.f32 %v410_v19, %v298_v4  ;;  %1720 = vmatprep.subr.bf16.mxu0 %v1821_v56 }
 0x135   :  { %v1897_v38 = vpop.eup %1896  ;;  %1721 = vmatpush3.bf16.msra.mxu0 %v1821_v56 }
 0x136   :  { %v406_v15 = vmul.f32 0.6931472, %v1897_v38  ;;  %v434_v39 = vpack.c.bf16 %v426_v37, %v425_v34  ;;  %1749 = vmatpush3.bf16.msra.mxu1 %v1803_v40  ;;  %1722 = vmatprep.subr.bf16.mxu0 %v1822_v58 }
 0x137   :  { %1750 = vmatprep.subr.bf16.mxu1 %v1804_v33 }
 0x138   :  { %v424_v41 = vadd.f32 %v406_v15, %v296_v31 }
 0x139   :  { %1703 = vmatmul.mubr.bf16.gmra.mrb[4].mxu1 %v430_v55  ;;  %v63_v55 = vld [vmem:[%s2576_s1 + $0x38] sm:$0xff]   ;;  %1723 = vmatpush3.bf16.msra.mxu0 %v1822_v58 }
 0x13a   :  { %1706 = vmatprep.mubr.bf16.mxu1 %v431_v30  ;;  %v433_v42 = vpack.c.bf16 %v424_v41, %v423_v27  ;;  %1751 = vmatpush3.bf16.msra.mxu1 %v1804_v33 }
 0x13b   :  { %1752 = vmatprep.subr.bf16.mxu1 %v1805_v24  ;;  %1724 = vmatprep.subr.bf16.mxu0 %v1823_v59 }
 0x13d   :  { %1725 = vmatpush3.bf16.msra.mxu0 %v1823_v59 }
 0x13e   :  { %1753 = vmatpush3.bf16.msra.mxu1 %v1805_v24  ;;  %1726 = vmatprep.subr.bf16.mxu0 %v1824_v60 }
 0x13f   :  { %1754 = vmatprep.subr.bf16.mxu1 %v1806_v35 }
 0x141   :  { %1707 = vmatmul.mubr.bf16.gmra.mrb[8].mxu1 %v432_v13  ;;  %1727 = vmatpush3.bf16.msra.mxu0 %v1824_v60 }
 0x142   :  { %1710 = vmatprep.mubr.bf16.mxu1 %v433_v42  ;;  %1755 = vmatpush3.bf16.msra.mxu1 %v1806_v35 }
 0x143   :  { %1756 = vmatprep.subr.bf16.mxu1 %v1807_v57  ;;  %1728 = vmatprep.subr.bf16.mxu0 %v1825_v61 }
 0x145   :  { %1729 = vmatpush3.bf16.msra.mxu0 %v1825_v61 }
 0x146   :  { %1757 = vmatpush3.bf16.msra.mxu1 %v1807_v57 }
 0x147   :  { %1758 = vmatprep.subr.bf16.mxu1 %v1808_v43 }
 0x149   :  { %1711 = vmatmul.mubr.bf16.gmra.mrb[12].mxu1 %v434_v39 }
 0x14a   :  { %1759 = vmatpush3.bf16.msra.mxu1 %v1808_v43  ;;  %1762 = vmatprep.mubr.bf16.mxu1 %v49_v45 }
 0x14b   :  { %1760 = vmatprep.subr.bf16.mxu1 %v1809_v47 }
 0x14e   :  { %1761 = vmatpush3.bf16.msra.mxu1 %v1809_v47 }
 0x151   :  { %1763 = vmatmul.mubr.bf16.vlgmr.msra.gmra.mrb[16].mxu1 %v51_v48 }
 0x152   :  { %1766 = vmatprep.mubr.bf16.mxu1 %v53_v49 }
 0x159   :  { %1767 = vmatmul.mubr.bf16.gmra.mrb[20].mxu1 %v55_v51 }
 0x15a   :  { %1770 = vmatprep.mubr.bf16.mxu1 %v57_v52 }
 0x161   :  { %1771 = vmatmul.mubr.bf16.gmra.mrb[24].mxu1 %v59_v44 }
 0x162   :  { %1774 = vmatprep.mubr.bf16.mxu1 %v61_v50 }
 0x169   :  { %1775 = vmatmul.mubr.bf16.gmra.mrb[28].mxu1 %v63_v55 }
 0x204   :  { %v1700_v63 = vpop.f32.mrb[0].mxu1 }
 0x205   :  { %v2338_v0 = vadd.f32 %v1700_v63, %v2335_v62  ;;  %v539_v2 = vpop.f32.mrb[1].mxu1 }
 0x206   :  { %v2341_v3 = vadd.f32 %v2335_v62, %v539_v2  ;;  %v1701_v5 = vpop.f32.mrb[2].mxu1 }
 0x207   :  { %v620_v6 = vand.u32 2147483647, %v2338_v0  ;;  %v2345_v7 = vadd.f32 %v1701_v5, %v2335_v62  ;;  %v542_v25 = vpop.f32.mrb[3].mxu1 }
 0x208   :  { %v618_v8 = vand.u32 2147483647, %v2341_v3  ;;  %v2349_v10 = vadd.f32 %v2335_v62, %v542_v25 }
 0x209   :  { %v636_v11 = vsub.f32 0.0, %v620_v6  ;;  %v621_v12 = vand.u32 2147483647, %v2345_v7 }
 0x20a   :  { %v634_v13 = vsub.f32 0.0, %v618_v8  ;;  %v619_v16 = vand.u32 2147483647, %v2349_v10 }
 0x20b   :  { %v654_v1 = vmul.f32 1.442695, %v636_v11  ;;  %v637_v18 = vsub.f32 0.0, %v621_v12 }
 0x20c   :  { %v650_v9 = vmul.f32 1.442695, %v634_v13  ;;  %v635_v17 = vsub.f32 0.0, %v619_v16  ;;  %v1704_v20 = vpop.f32.mrb[4].mxu1 }
 0x20d   :  { %1898 = vpow2.f32 %v654_v1  ;;  %v656_v29 = vmul.f32 1.442695, %v637_v18  ;;  %v2354_v40 = vadd.f32 %v1704_v20, %v2335_v62  ;;  %v555_v21 = vpop.f32.mrb[5].mxu1  ;;  %v604_v20 = vmax.f32 %v2338_v0, 0.0 }
 0x20e   :  { %1900 = vpow2.f32 %v650_v9  ;;  %v652_v32 = vmul.f32 1.442695, %v635_v17  ;;  %v2357_v22 = vadd.f32 %v2335_v62, %v555_v21  ;;  %v1705_v23 = vpop.f32.mrb[6].mxu1 }
 0x20f   :  { %1902 = vpow2.f32 %v656_v29  ;;  %v624_v26 = vand.u32 2147483647, %v2354_v40  ;;  %v2361_v28 = vadd.f32 %v1705_v23, %v2335_v62  ;;  %v558_v4 = vpop.f32.mrb[7].mxu1 }
 0x210   :  { %1904 = vpow2.f32 %v652_v32  ;;  %v622_v19 = vand.u32 2147483647, %v2357_v22  ;;  %v2365_v30 = vadd.f32 %v2335_v62, %v558_v4 }
 0x211   :  { %v640_v33 = vsub.f32 0.0, %v624_v26  ;;  %v625_v34 = vand.u32 2147483647, %v2361_v28 }
 0x212   :  { %v638_v36 = vsub.f32 0.0, %v622_v19  ;;  %v623_v37 = vand.u32 2147483647, %v2365_v30 }
 0x213   :  { %v662_v38 = vmul.f32 1.442695, %v640_v33  ;;  %v641_v14 = vsub.f32 0.0, %v625_v34 }
 0x214   :  { %v658_v31 = vmul.f32 1.442695, %v638_v36  ;;  %v639_v15 = vsub.f32 0.0, %v623_v37  ;;  %v1708_v39 = vpop.f32.mrb[8].mxu1 }
 0x215   :  { %1906 = vpow2.f32 %v662_v38  ;;  %v664_v24 = vmul.f32 1.442695, %v641_v14  ;;  %v2370_v27 = vadd.f32 %v1708_v39, %v2335_v62  ;;  %v571_v41 = vpop.f32.mrb[9].mxu1 }
 0x216   :  { %1908 = vpow2.f32 %v658_v31  ;;  %v660_v42 = vmul.f32 1.442695, %v639_v15  ;;  %v2373_v35 = vadd.f32 %v2335_v62, %v571_v41  ;;  %v1709_v57 = vpop.f32.mrb[10].mxu1  ;;  %v602_v31 = vmax.f32 %v2341_v3, 0.0 }
 0x217   :  { %v1899_v43 = vpop.eup %1898  ;;  %1910 = vpow2.f32 %v664_v24  ;;  %v628_v45 = vand.u32 2147483647, %v2370_v27  ;;  %v2377_v47 = vadd.f32 %v1709_v57, %v2335_v62  ;;  %v574_v48 = vpop.f32.mrb[11].mxu1  ;;  %v605_v57 = vmax.f32 %v2345_v7, 0.0 }
 0x218   :  { %v1901_v49 = vpop.eup %1900  ;;  %v684_v51 = vadd.f32 1.0, %v1899_v43  ;;  %1912 = vpow2.f32 %v660_v42  ;;  %v626_v52 = vand.u32 2147483647, %v2373_v35  ;;  %v2382_v58 = vadd.f32 %v2335_v62, %v574_v48 }
 0x219   :  { %v1903_v44 = vpop.eup %1902  ;;  %v682_v54 = vadd.f32 1.0, %v1901_v49  ;;  %v644_v50 = vsub.f32 0.0, %v628_v45  ;;  %v629_v55 = vand.u32 2147483647, %v2377_v47 }
 0x21a   :  { %v1905_v46 = vpop.eup %1904  ;;  %1914 = vlog2.f32 %v684_v51  ;;  %v685_v53 = vadd.f32 1.0, %v1903_v44  ;;  %v642_v56 = vsub.f32 0.0, %v626_v52  ;;  %v627_v2 = vand.u32 2147483647, %v2382_v58 }
 0x21b   :  { %1916 = vlog2.f32 %v682_v54  ;;  %v683_v59 = vadd.f32 1.0, %v1905_v46  ;;  %v670_v60 = vmul.f32 1.442695, %v644_v50  ;;  %v645_v61 = vsub.f32 0.0, %v629_v55 }
 0x21c   :  { %1918 = vlog2.f32 %v685_v53  ;;  %v666_v63 = vmul.f32 1.442695, %v642_v56  ;;  %v1712_v5 = vpop.f32.mrb[12].mxu1  ;;  %v643_v11 = vsub.f32 0.0, %v627_v2  ;;  %v603_v54 = vmax.f32 %v2349_v10, 0.0 }
 0x21d   :  { %1920 = vlog2.f32 %v683_v59  ;;  %v672_v6 = vmul.f32 1.442695, %v645_v61  ;;  %v2386_v25 = vadd.f32 %v1712_v5, %v2335_v62  ;;  %v587_v8 = vpop.f32.mrb[13].mxu1 }
 0x21e   :  { %1922 = vpow2.f32 %v670_v60  ;;  %v2389_v12 = vadd.f32 %v2335_v62, %v587_v8  ;;  %v1713_v13 = vpop.f32.mrb[14].mxu1  ;;  %v668_v23 = vmul.f32 1.442695, %v643_v11 }
 0x21f   :  { %v1907_v16 = vpop.eup %1906  ;;  %1924 = vpow2.f32 %v666_v63  ;;  %v632_v1 = vand.u32 2147483647, %v2386_v25  ;;  %v2393_v18 = vadd.f32 %v1713_v13, %v2335_v62  ;;  %v590_v9 = vpop.f32.mrb[15].mxu1 }
 0x220   :  { %v1909_v17 = vpop.eup %1908  ;;  %v688_v29 = vadd.f32 1.0, %v1907_v16  ;;  %1926 = vpow2.f32 %v672_v6  ;;  %v630_v4 = vand.u32 2147483647, %v2389_v12  ;;  %v2399_v36 = vadd.f32 %v2335_v62, %v590_v9 }
 0x221   :  { %v1911_v21 = vpop.eup %1910  ;;  %v686_v32 = vadd.f32 1.0, %v1909_v17  ;;  %v648_v26 = vsub.f32 0.0, %v632_v1  ;;  %v633_v34 = vand.u32 2147483647, %v2393_v18  ;;  %v608_v1 = vmax.f32 %v2354_v40, 0.0 }
 0x222   :  { %v1913_v19 = vpop.eup %1912  ;;  %1928 = vlog2.f32 %v688_v29  ;;  %v689_v33 = vadd.f32 1.0, %v1911_v21  ;;  %v646_v0 = vsub.f32 0.0, %v630_v4  ;;  %v631_v39 = vand.u32 2147483647, %v2399_v36 }
 0x223   :  { %1930 = vlog2.f32 %v686_v32  ;;  %v687_v37 = vadd.f32 1.0, %v1913_v19  ;;  %v678_v38 = vmul.f32 1.442695, %v648_v26  ;;  %v649_v15 = vsub.f32 0.0, %v633_v34 }
 0x224   :  { %v1915_v14 = vpop.eup %1914  ;;  %1932 = vlog2.f32 %v689_v33  ;;  %v2403_v24 = vpop.f32.mrb[16].mxu1  ;;  %v674_v62 = vmul.f32 1.442695, %v646_v0  ;;  %v647_v51 = vsub.f32 0.0, %v631_v39  ;;  %v606_v32 = vmax.f32 %v2357_v22, 0.0 }
 0x225   :  { %v1917_v41 = vpop.eup %1916  ;;  %v703_v42 = vmul.f32 0.6931472, %v1915_v14  ;;  %1934 = vlog2.f32 %v687_v37  ;;  %v2406_v43 = vpop.f32.mrb[17].mxu1  ;;  %v680_v49 = vmul.f32 1.442695, %v649_v15  ;;  %v607_v22 = vmax.f32 %v2365_v30, 0.0 }
 0x226   :  { %v1919_v45 = vpop.eup %1918  ;;  %v699_v48 = vmul.f32 0.6931472, %v1917_v41  ;;  %1936 = vpow2.f32 %v668_v23  ;;  %v2408_v3 = vpop.f32.mrb[18].mxu1  ;;  %v1206_v50 = vand.u32 2147483647, %v2403_v24 }
 0x227   :  { %v1921_v52 = vpop.eup %1920  ;;  %v705_v44 = vmul.f32 0.6931472, %v1919_v45  ;;  %1938 = vpow2.f32 %v678_v38  ;;  %v2412_v55 = vpop.f32.mrb[19].mxu1  ;;  %v732_v46 = vadd.f32 %v703_v42, %v604_v20  ;;  %v676_v56 = vmul.f32 1.442695, %v647_v51 }
 0x228   :  { %v1923_v7 = vpop.eup %1922  ;;  %v701_v53 = vmul.f32 0.6931472, %v1921_v52  ;;  %1940 = vpow2.f32 %v674_v62  ;;  %v1222_v63 = vsub.f32 0.0, %v1206_v50  ;;  %v730_v5 = vadd.f32 %v699_v48, %v602_v31 }
 0x229   :  { %v1925_v59 = vpop.eup %1924  ;;  %v733_v60 = vadd.f32 %v705_v44, %v605_v57  ;;  %v692_v61 = vadd.f32 1.0, %v1923_v7  ;;  %1942 = vpow2.f32 %v680_v49  ;;  %v1204_v17 = vand.u32 2147483647, %v2406_v43 }
 0x22a   :  { %v1927_v2 = vpop.eup %1926  ;;  %v731_v6 = vadd.f32 %v701_v53, %v603_v54  ;;  %v690_v8 = vadd.f32 1.0, %v1925_v59  ;;  %1944 = vpow2.f32 %v676_v56  ;;  %v1240_v13 = vmul.f32 1.442695, %v1222_v63 }
 0x22b   :  { %v747_v10 = vpack.c.bf16 %v733_v60, %v732_v46  ;;  %1946 = vlog2.f32 %v692_v61  ;;  %v693_v11 = vadd.f32 1.0, %v1927_v2  ;;  %v1207_v23 = vand.u32 2147483647, %v2408_v3 }
 0x22c   :  { %v1929_v16 = vpop.eup %1928  ;;  %1948 = vlog2.f32 %v690_v8  ;;  %v746_v9 = vpack.c.bf16 %v731_v6, %v730_v5  ;;  %v2416_v20 = vpop.f32.mrb[20].mxu1  ;;  %v1220_v40 = vsub.f32 0.0, %v1204_v17  ;;  %v1205_v33 = vand.u32 2147483647, %v2412_v55 }
 0x22d   :  { %v1931_v29 = vpop.eup %1930  ;;  %v711_v21 = vmul.f32 0.6931472, %v1929_v16  ;;  %1950 = vlog2.f32 %v693_v11  ;;  %v2420_v26 = vpop.f32.mrb[21].mxu1  ;;  %v609_v38 = vmax.f32 %v2361_v28, 0.0  ;;  %v1223_v14 = vsub.f32 0.0, %v1207_v23 }
 0x22e   :  { %v1933_v4 = vpop.eup %1932  ;;  %v707_v19 = vmul.f32 0.6931472, %v1931_v29  ;;  %1730 = vmatprep.mubr.bf16.mxu0 %v746_v9  ;;  %1952 = vpow2.f32 %v1240_v13  ;;  %v2423_v34 = vpop.f32.mrb[22].mxu1  ;;  %v1236_v42 = vmul.f32 1.442695, %v1220_v40  ;;  %v1221_v57 = vsub.f32 0.0, %v1205_v33 }
 0x22f   :  { %v1935_v37 = vpop.eup %1934  ;;  %v713_v0 = vmul.f32 0.6931472, %v1933_v4  ;;  %1731 = vmatmul.mubr.bf16.vlgmr.msra.gmra.mrb[16].mxu0 %v747_v10  ;;  %v2427_v31 = vpop.f32.mrb[23].mxu1  ;;  %v736_v39 = vadd.f32 %v711_v21, %v608_v1  ;;  %v1210_v51 = vand.u32 2147483647, %v2416_v20  ;;  %v612_v9 = vmax.f32 %v2370_v27, 0.0 }
 0x230   :  { %v1937_v15 = vpop.eup %1936  ;;  %v709_v41 = vmul.f32 0.6931472, %v1935_v37  ;;  %v734_v45 = vadd.f32 %v707_v19, %v606_v32  ;;  %1954 = vpow2.f32 %v1236_v42  ;;  %v1242_v30 = vmul.f32 1.442695, %v1223_v14 }
 0x231   :  { %v1939_v62 = vpop.eup %1938  ;;  %v737_v48 = vadd.f32 %v713_v0, %v609_v38  ;;  %v691_v49 = vadd.f32 1.0, %v1937_v15  ;;  %v1226_v46 = vsub.f32 0.0, %v1210_v51  ;;  %v1238_v60 = vmul.f32 1.442695, %v1221_v57 }
 0x232   :  { %v1941_v52 = vpop.eup %1940  ;;  %v735_v28 = vadd.f32 %v709_v41, %v607_v22  ;;  %v696_v44 = vadd.f32 1.0, %v1939_v62  ;;  %v1208_v6 = vand.u32 2147483647, %v2420_v26  ;;  %v1211_v13 = vand.u32 2147483647, %v2423_v34 }
 0x233   :  { %v1943_v54 = vpop.eup %1942  ;;  %1956 = vlog2.f32 %v691_v49  ;;  %v694_v50 = vadd.f32 1.0, %v1941_v52  ;;  %v749_v7 = vpack.c.bf16 %v737_v48, %v736_v39  ;;  %v1248_v5 = vmul.f32 1.442695, %v1226_v46 }
 0x234   :  { %v1945_v53 = vpop.eup %1944  ;;  %1958 = vlog2.f32 %v696_v44  ;;  %v697_v56 = vadd.f32 1.0, %v1943_v54  ;;  %v748_v59 = vpack.c.bf16 %v735_v28, %v734_v45  ;;  %v2430_v61 = vpop.f32.mrb[24].mxu1  ;;  %v1224_v17 = vsub.f32 0.0, %v1208_v6 }
 0x235   :  { %v1947_v63 = vpop.eup %1946  ;;  %1960 = vlog2.f32 %v694_v50  ;;  %v695_v2 = vadd.f32 1.0, %v1945_v53  ;;  %v2433_v8 = vpop.f32.mrb[25].mxu1  ;;  %v613_v32 = vmax.f32 %v2377_v47, 0.0  ;;  %v1227_v4 = vsub.f32 0.0, %v1211_v13 }
 0x236   :  { %v1949_v10 = vpop.eup %1948  ;;  %v719_v11 = vmul.f32 0.6931472, %v1947_v63  ;;  %1962 = vlog2.f32 %v697_v56  ;;  %1734 = vmatprep.mubr.bf16.mxu0 %v748_v59  ;;  %v2436_v16 = vpop.f32.mrb[26].mxu1  ;;  %v1244_v33 = vmul.f32 1.442695, %v1224_v17  ;;  %v610_v42 = vmax.f32 %v2373_v35, 0.0 }
 0x237   :  { %v1951_v1 = vpop.eup %1950  ;;  %1964 = vlog2.f32 %v695_v2  ;;  %1735 = vmatmul.mubr.bf16.gmra.mrb[20].mxu0 %v749_v7  ;;  %v2439_v29 = vpop.f32.mrb[27].mxu1  ;;  %v1250_v38 = vmul.f32 1.442695, %v1227_v4  ;;  %v1209_v27 = vand.u32 2147483647, %v2427_v31  ;;  %v611_v48 = vmax.f32 %v2382_v58, 0.0 }
 0x238   :  { %v1953_v21 = vpop.eup %1952  ;;  %v721_v23 = vmul.f32 0.6931472, %v1951_v1  ;;  %1966 = vpow2.f32 %v1242_v30  ;;  %v740_v19 = vadd.f32 %v719_v11, %v612_v9  ;;  %v715_v0 = vmul.f32 0.6931472, %v1949_v10 }
 0x239   :  { %v1270_v40 = vadd.f32 1.0, %v1953_v21  ;;  %1968 = vpow2.f32 %v1238_v60  ;;  %v1214_v22 = vand.u32 2147483647, %v2430_v61  ;;  %v1225_v47 = vsub.f32 0.0, %v1209_v27 }
 0x23a   :  { %v741_v37 = vadd.f32 %v721_v23, %v613_v32  ;;  %1970 = vpow2.f32 %v1248_v5  ;;  %v1955_v14 = vpop.eup %1954  ;;  %v1212_v39 = vand.u32 2147483647, %v2433_v8  ;;  %v738_v28 = vadd.f32 %v715_v0, %v610_v42 }
 0x23b   :  { %1972 = vlog2.f32 %v1270_v40  ;;  %v1268_v57 = vadd.f32 1.0, %v1955_v14  ;;  %v1230_v62 = vsub.f32 0.0, %v1214_v22  ;;  %v1246_v51 = vmul.f32 1.442695, %v1225_v47 }
 0x23c   :  { %v751_v15 = vpack.c.bf16 %v741_v37, %v740_v19  ;;  %1974 = vpow2.f32 %v1244_v33  ;;  %v1228_v30 = vsub.f32 0.0, %v1212_v39  ;;  %v616_v35 = vmax.f32 %v2386_v25, 0.0  ;;  %v2455_v33 = vld [vmem:[%s2579_s8] ss:$0 sm:$0xff] }
 0x23d   :  { %v1957_v41 = vpop.eup %1956  ;;  %1976 = vpow2.f32 %v1250_v38  ;;  %v1256_v46 = vmul.f32 1.442695, %v1230_v62  ;;  %v614_v56 = vmax.f32 %v2389_v12, 0.0  ;;  %v617_v59 = vmax.f32 %v2393_v18, 0.0 }
 0x23e   :  { %v1959_v45 = vpop.eup %1958  ;;  %v717_v49 = vmul.f32 0.6931472, %v1957_v41  ;;  %1978 = vlog2.f32 %v1268_v57  ;;  %v615_v63 = vmax.f32 %v2399_v36, 0.0  ;;  %v1190_v6 = vmax.f32 %v2403_v24, 0.0 }
 0x23f   :  { %v1961_v52 = vpop.eup %1960  ;;  %v727_v44 = vmul.f32 0.6931472, %v1959_v45  ;;  %1980 = vpow2.f32 %v1246_v51  ;;  %v1252_v9 = vmul.f32 1.442695, %v1228_v30  ;;  %v1188_v37 = vmax.f32 %v2406_v43, 0.0 }
 0x240   :  { %v1963_v54 = vpop.eup %1962  ;;  %v739_v50 = vadd.f32 %v717_v49, %v611_v48  ;;  %v723_v7 = vmul.f32 0.6931472, %v1961_v52  ;;  %1982 = vpow2.f32 %v1256_v46  ;;  %v1191_v42 = vmax.f32 %v2408_v3, 0.0 }
 0x241   :  { %v1965_v53 = vpop.eup %1964  ;;  %v729_v58 = vmul.f32 0.6931472, %v1963_v54  ;;  %v744_v11 = vadd.f32 %v727_v44, %v616_v35  ;;  %v1189_v62 = vmax.f32 %v2412_v55, 0.0  ;;  %v1194_v44 = vmax.f32 %v2416_v20, 0.0 }
 0x242   :  { %v1967_v60 = vpop.eup %1966  ;;  %v725_v2 = vmul.f32 0.6931472, %v1965_v53  ;;  %v750_v5 = vpack.c.bf16 %v739_v50, %v738_v28  ;;  %v742_v21 = vadd.f32 %v723_v7, %v614_v56  ;;  %v1192_v55 = vmax.f32 %v2420_v26, 0.0 }
 0x243   :  { %v1969_v10 = vpop.eup %1968  ;;  %v745_v13 = vadd.f32 %v729_v58, %v617_v59  ;;  %v1271_v1 = vadd.f32 1.0, %v1967_v60  ;;  %v1215_v58 = vand.u32 2147483647, %v2436_v16  ;;  %v1195_v20 = vmax.f32 %v2423_v34, 0.0 }
 0x244   :  { %v1971_v17 = vpop.eup %1970  ;;  %v743_v25 = vadd.f32 %v725_v2, %v615_v63  ;;  %1738 = vmatprep.mubr.bf16.mxu0 %v750_v5  ;;  %v1269_v12 = vadd.f32 1.0, %v1969_v10  ;;  %v1193_v10 = vmax.f32 %v2427_v31, 0.0  ;;  %v1198_v34 = vmax.f32 %v2430_v61, 0.0 }
 0x245   :  { %v1973_v18 = vpop.eup %1972  ;;  %1739 = vmatmul.mubr.bf16.gmra.mrb[24].mxu0 %v751_v15  ;;  %v753_v32 = vpack.c.bf16 %v745_v13, %v744_v11  ;;  %1984 = vlog2.f32 %v1271_v1  ;;  %v1274_v36 = vadd.f32 1.0, %v1971_v17  ;;  %v1231_v26 = vsub.f32 0.0, %v1215_v58 }
 0x246   :  { %v1975_v23 = vpop.eup %1974  ;;  %v752_v4 = vpack.c.bf16 %v743_v25, %v742_v21  ;;  %1986 = vlog2.f32 %v1269_v12  ;;  %v1289_v24 = vmul.f32 0.6931472, %v1973_v18  ;;  %v1196_v31 = vmax.f32 %v2433_v8, 0.0 }
 0x247   :  { %v1977_v19 = vpop.eup %1976  ;;  %1988 = vlog2.f32 %v1274_v36  ;;  %v1272_v40 = vadd.f32 1.0, %v1975_v23  ;;  %v1258_v21 = vmul.f32 1.442695, %v1231_v26  ;;  %v2475_v23 = vpop.f32.mrb[28].mxu1 }
 0x248   :  { %1742 = vmatprep.mubr.bf16.mxu0 %v752_v4  ;;  %1990 = vpow2.f32 %v1252_v9  ;;  %v1318_v38 = vadd.f32 %v1289_v24, %v1190_v6  ;;  %v1979_v27 = vpop.eup %1978  ;;  %v1275_v0 = vadd.f32 1.0, %v1977_v19  ;;  %v1213_v6 = vand.u32 2147483647, %v2439_v29 }
 0x249   :  { %1992 = vlog2.f32 %v1272_v40  ;;  %v1981_v22 = vpop.eup %1980  ;;  %v1285_v15 = vmul.f32 0.6931472, %v1979_v27  ;;  %v1218_v61 = vand.u32 2147483647, %v2475_v23  ;;  %v2479_v40 = vpop.f32.mrb[29].mxu1 }
 0x24a   :  { %v1340_v14 = vmul.f32 %v2455_v33, %v1318_v38  ;;  %1994 = vlog2.f32 %v1275_v0  ;;  %v1273_v39 = vadd.f32 1.0, %v1981_v22  ;;  %v1983_v41 = vpop.eup %1982  ;;  %v1229_v17 = vsub.f32 0.0, %v1213_v6  ;;  %v2482_v38 = vpop.f32.mrb[30].mxu1 }
 0x24b   :  { %v1316_v47 = vadd.f32 %v1285_v15, %v1188_v37  ;;  %v1278_v51 = vadd.f32 1.0, %v1983_v41  ;;  %v1216_v37 = vand.u32 2147483647, %v2479_v40  ;;  %v1234_v27 = vsub.f32 0.0, %v1218_v61  ;;  %v2484_v0 = vpop.f32.mrb[31].mxu1 }
 0x24c   :  { %1358 = vadd.xlane.f32.xlu1 %v1340_v14  ;;  %1996 = vlog2.f32 %v1273_v39  ;;  %v1254_v36 = vmul.f32 1.442695, %v1229_v17  ;;  %v1217_v22 = vand.u32 2147483647, %v2484_v0 }
 0x24d   :  { %1743 = vmatmul.mubr.bf16.gmra.mrb[28].mxu0 %v753_v32  ;;  %v1338_v57 = vmul.f32 %v2455_v33, %v1316_v47  ;;  %1998 = vlog2.f32 %v1278_v51  ;;  %v1232_v8 = vsub.f32 0.0, %v1216_v37  ;;  %v1264_v47 = vmul.f32 1.442695, %v1234_v27 }
 0x24e   :  { %v1233_v41 = vsub.f32 0.0, %v1217_v22 }
 0x24f   :  { %v1985_v43 = vpop.eup %1984  ;;  %v1260_v39 = vmul.f32 1.442695, %v1232_v8 }
 0x250   :  { %v1987_v45 = vpop.eup %1986  ;;  %1354 = vadd.xlane.f32.xlu1 %v1338_v57  ;;  %v1291_v48 = vmul.f32 0.6931472, %v1985_v43  ;;  %v1262_v43 = vmul.f32 1.442695, %v1233_v41 }
 0x251   :  { %v1989_v49 = vpop.eup %1988  ;;  %v1287_v52 = vmul.f32 0.6931472, %v1987_v45 }
 0x252   :  { %v1991_v28 = vpop.eup %1990  ;;  %v1319_v30 = vadd.f32 %v1291_v48, %v1191_v42  ;;  %v1297_v54 = vmul.f32 0.6931472, %v1989_v49  ;;  %v1219_v42 = vand.u32 2147483647, %v2482_v38 }
 0x253   :  { %v1993_v50 = vpop.eup %1992  ;;  %v1317_v7 = vadd.f32 %v1287_v52, %v1189_v62  ;;  %v1276_v46 = vadd.f32 1.0, %v1991_v28 }
 0x254   :  { %v1341_v3 = vmul.f32 %v2455_v33, %v1319_v30  ;;  %v1322_v35 = vadd.f32 %v1297_v54, %v1194_v44  ;;  %v1293_v56 = vmul.f32 0.6931472, %v1993_v50  ;;  %v1995_v59 = vpop.eup %1994  ;;  %v1235_v49 = vsub.f32 0.0, %v1219_v42 }
 0x255   :  { %v1339_v53 = vmul.f32 %v2455_v33, %v1317_v7  ;;  %2000 = vlog2.f32 %v1276_v46  ;;  %v1299_v2 = vmul.f32 0.6931472, %v1995_v59  ;;  %v1199_v46 = vmax.f32 %v2436_v16, 0.0 }
 0x256   :  { %1360 = vadd.xlane.f32.xlu1 %v1341_v3  ;;  %v1344_v60 = vmul.f32 %v2455_v33, %v1322_v35  ;;  %v1320_v63 = vadd.f32 %v1293_v56, %v1192_v55  ;;  %v1997_v5 = vpop.eup %1996  ;;  %2002 = vpow2.f32 %v1258_v21  ;;  %v1266_v52 = vmul.f32 1.442695, %v1235_v49 }
 0x257   :  { %v1323_v13 = vadd.f32 %v1299_v2, %v1195_v20  ;;  %v1295_v1 = vmul.f32 0.6931472, %v1997_v5  ;;  %v1999_v9 = vpop.eup %1998  ;;  %2004 = vpow2.f32 %v1254_v36  ;;  %v1197_v56 = vmax.f32 %v2439_v29, 0.0 }
 0x258   :  { %v1342_v11 = vmul.f32 %v2455_v33, %v1320_v63  ;;  %v1305_v18 = vmul.f32 0.6931472, %v1999_v9  ;;  %2006 = vpow2.f32 %v1264_v47  ;;  %v1202_v5 = vmax.f32 %v2475_v23, 0.0 }
 0x259   :  { %v1345_v25 = vmul.f32 %v2455_v33, %v1323_v13  ;;  %v1321_v12 = vadd.f32 %v1295_v1, %v1193_v10  ;;  %2008 = vpow2.f32 %v1260_v39  ;;  %v1201_v1 = vmax.f32 %v2484_v0, 0.0 }
 0x25a   :  { %1356 = vadd.xlane.f32.xlu1 %v1339_v53  ;;  %v1326_v24 = vadd.f32 %v1305_v18, %v1198_v34  ;;  %2010 = vpow2.f32 %v1262_v43  ;;  %v1203_v18 = vmax.f32 %v2482_v38, 0.0 }
 0x25b   :  { %v1343_v4 = vmul.f32 %v2455_v33, %v1321_v12 }
 0x25c   :  { %v1348_v14 = vmul.f32 %v2455_v33, %v1326_v24 }
 0x25e   :  { %1366 = vadd.xlane.f32.xlu1 %v1344_v60 }
 0x25f   :  { %v2001_v32 = vpop.eup %2000 }
 0x260   :  { %v1301_v19 = vmul.f32 0.6931472, %v2001_v32  ;;  %v2003_v57 = vpop.eup %2002 }
 0x261   :  { %v2005_v45 = vpop.eup %2004  ;;  %v1279_v48 = vadd.f32 1.0, %v2003_v57  ;;  %v2028_v57 = vld [vmem:[%s2576_s1 + $0x18] sm:$0xff]  }
 0x262   :  { %1362 = vadd.xlane.f32.xlu1 %v1342_v11  ;;  %v1324_v15 = vadd.f32 %v1301_v19, %v1196_v31  ;;  %v1277_v51 = vadd.f32 1.0, %v2005_v45  ;;  %v2007_v28 = vpop.eup %2006  ;;  %v1200_v11 = vmax.f32 %v2479_v40, 0.0  ;;  %v2027_v40 = vld [vmem:[%s2576_s1] sm:$0xff]   ;;  %v921_v43 = vunpack.c.l.bf16 %v2028_v57  ;;  %v2029_v45 = vld [vmem:[%s2576_s1 + $0x10] sm:$0xff]  }
 0x263   :  { %2012 = vlog2.f32 %v1279_v48  ;;  %v2009_v44 = vpop.eup %2008  ;;  %v1282_v30 = vadd.f32 1.0, %v2007_v28  ;;  %v915_v37 = vunpack.c.l.bf16 %v2027_v40  ;;  %v919_v48 = vunpack.c.l.bf16 %v2029_v45 }
 0x264   :  { %v1346_v62 = vmul.f32 %v2455_v33, %v1324_v15  ;;  %2014 = vlog2.f32 %v1277_v51  ;;  %v2011_v54 = vpop.eup %2010  ;;  %v1280_v50 = vadd.f32 1.0, %v2009_v44  ;;  %v916_v15 = vunpack.c.h.bf16 %v2027_v40 }
 0x265   :  { %2016 = vpow2.f32 %v1266_v52  ;;  %v1281_v7 = vadd.f32 1.0, %v2011_v54  ;;  %v922_v51 = vunpack.c.h.bf16 %v2028_v57  ;;  %v920_v54 = vunpack.c.h.bf16 %v2029_v45 }
 0x266   :  { %1368 = vadd.xlane.f32.xlu1 %v1345_v25  ;;  %2018 = vlog2.f32 %v1282_v30 }
 0x267   :  { %2020 = vlog2.f32 %v1280_v50 }
 0x268   :  { %2022 = vlog2.f32 %v1281_v7 }
 0x26a   :  { %1364 = vadd.xlane.f32.xlu1 %v1343_v4  ;;  %v2026_v4 = vld [vmem:[%s2576_s1 + $0x8] sm:$0xff]  }
 0x26b   :  { %v917_v24 = vunpack.c.l.bf16 %v2026_v4  ;;  %v918_v22 = vunpack.c.h.bf16 %v2026_v4 }
 0x26d   :  { %v2013_v3 = vpop.eup %2012 }
 0x26e   :  { %1374 = vadd.xlane.f32.xlu1 %v1348_v14  ;;  %v2015_v55 = vpop.eup %2014  ;;  %v1307_v53 = vmul.f32 0.6931472, %v2013_v3  ;;  %v2030_v3 = vld [vmem:[%s2576_s1 + $0x28] sm:$0xff]  }
 0x26f   :  { %v2017_v35 = vpop.eup %2016  ;;  %v1303_v60 = vmul.f32 0.6931472, %v2015_v55 }
 0x270   :  { %v1327_v59 = vadd.f32 %v1307_v53, %v1199_v46  ;;  %v1283_v58 = vadd.f32 1.0, %v2017_v35  ;;  %v2019_v63 = vpop.eup %2018  ;;  %v925_v46 = vunpack.c.l.bf16 %v2030_v3 }
 0x271   :  { %v1325_v2 = vadd.f32 %v1303_v60, %v1197_v56  ;;  %v2021_v6 = vpop.eup %2020  ;;  %v1313_v26 = vmul.f32 0.6931472, %v2019_v63  ;;  %v926_v63 = vunpack.c.h.bf16 %v2030_v3 }
 0x272   :  { %1370 = vadd.xlane.f32.xlu1 %v1346_v62  ;;  %v1349_v20 = vmul.f32 %v2455_v33, %v1327_v59  ;;  %2024 = vlog2.f32 %v1283_v58  ;;  %v2023_v10 = vpop.eup %2022  ;;  %v1309_v13 = vmul.f32 0.6931472, %v2021_v6  ;;  %v2031_v59 = vld [vmem:[%s2576_s1 + $0x20] sm:$0xff]   ;;  %v2032_v6 = vld [vmem:[%s2576_s1 + $0x38] sm:$0xff]  }
 0x273   :  { %v1347_v16 = vmul.f32 %v2455_v33, %v1325_v2  ;;  %v1330_v29 = vadd.f32 %v1313_v26, %v1202_v5  ;;  %v1311_v9 = vmul.f32 0.6931472, %v2023_v10  ;;  %v923_v58 = vunpack.c.l.bf16 %v2031_v59 }
 0x274   :  { %v1328_v21 = vadd.f32 %v1309_v13, %v1200_v11  ;;  %v924_v5 = vunpack.c.h.bf16 %v2031_v59  ;;  %v929_v26 = vunpack.c.l.bf16 %v2032_v6  ;;  %v2033_v11 = vld [vmem:[%s2576_s1 + $0x30] sm:$0xff]  }
 0x275   :  { %v1352_v17 = vmul.f32 %v2455_v33, %v1330_v29  ;;  %v1329_v25 = vadd.f32 %v1311_v9, %v1201_v1  ;;  %v927_v29 = vunpack.c.l.bf16 %v2033_v11  ;;  %v928_v1 = vunpack.c.h.bf16 %v2033_v11 }
 0x276   :  { %1376 = vadd.xlane.f32.xlu1 %v1349_v20  ;;  %v1350_v34 = vmul.f32 %v2455_v33, %v1328_v21  ;;  %v930_v9 = vunpack.c.h.bf16 %v2032_v6 }
 0x277   :  { %v1351_v32 = vmul.f32 %v2455_v33, %v1329_v25 }
 0x27a   :  { %1372 = vadd.xlane.f32.xlu1 %v1347_v16 }
 0x27c   :  { %v2025_v12 = vpop.eup %2024 }
 0x27d   :  { %v1315_v36 = vmul.f32 0.6931472, %v2025_v12 }
 0x27e   :  { %1382 = vadd.xlane.f32.xlu1 %v1352_v17 }
 0x27f   :  { %v1331_v31 = vadd.f32 %v1315_v36, %v1203_v18 }
 0x281   :  { %v1353_v23 = vmul.f32 %v2455_v33, %v1331_v31 }
 0x282   :  { %1378 = vadd.xlane.f32.xlu1 %v1350_v34 }
 0x286   :  { %1380 = vadd.xlane.f32.xlu1 %v1351_v32 }
 0x28a   :  { %1384 = vadd.xlane.f32.xlu1 %v1353_v23 }
 0x2d9   :  { %v1359_v34 = vpop.xlane.xlu1 %1358 }
 0x2dd   :  { %v1355_v25 = vpop.xlane.xlu1 %1354 }
 0x2e3   :  { %v1361_v12 = vpop.xlane.xlu1 %1360 }
 0x2e7   :  { %v1357_v18 = vpop.xlane.xlu1 %1356 }
 0x2eb   :  { %v1367_v32 = vpop.xlane.xlu1 %1366 }
 0x2ef   :  { %v1363_v36 = vpop.xlane.xlu1 %1362 }
 0x2f3   :  { %v1369_v4 = vpop.xlane.xlu1 %1368 }
 0x302   :  { %v1732_v19 = vpop.f32.mrb[16].mxu0 }
 0x303   :  { %v852_v61 = vpop.f32.mrb[17].mxu0  ;;  %v933_v38 = vmul.f32 %v1732_v19, %v917_v24  ;;  %v1365_v19 = vpop.xlane.xlu1 %1364 }
 0x304   :  { %v1733_v27 = vpop.f32.mrb[18].mxu0  ;;  %v931_v8 = vmul.f32 %v915_v37, %v852_v61 }
 0x305   :  { %951 = vadd.xlane.f32.xlu0 %v933_v38  ;;  %v855_v0 = vpop.f32.mrb[19].mxu0  ;;  %v934_v14 = vmul.f32 %v1733_v27, %v918_v22  ;;  %v1418_v38 = vlaneseq }
 0x306   :  { %v932_v42 = vmul.f32 %v916_v15, %v855_v0 }
 0x307   :  { %v2526_v37 = vpop.xlane.xlu1 %1374  ;;  %v2528_v0 = vand.u32 127, %v1418_v38 }
 0x309   :  { %947 = vadd.xlane.f32.xlu0 %v931_v8  ;;  %v1445_v45 = vadd.s32 4294967264, %v2528_v0  ;;  %v1459_v59 = vadd.s32 4294967248, %v2528_v0  ;;  %v1480_v6 = vadd.s32 4294967224, %v2528_v0 }
 0x30a   :  { %v1736_v33 = vpop.f32.mrb[20].mxu0 }
 0x30b   :  { %v868_v47 = vpop.f32.mrb[21].mxu0  ;;  %v937_v62 = vmul.f32 %v1736_v33, %v921_v43  ;;  %v1371_v8 = vpop.xlane.xlu1 %1370  ;;  %v1424_v33 = vadd.s32 4294967288, %v2528_v0 }
 0x30c   :  { %v1737_v39 = vpop.f32.mrb[22].mxu0  ;;  %v935_v49 = vmul.f32 %v919_v48, %v868_v47 }
 0x30d   :  { %953 = vadd.xlane.f32.xlu0 %v934_v14  ;;  %v871_v41 = vpop.f32.mrb[23].mxu0  ;;  %v938_v30 = vmul.f32 %v1737_v39, %v922_v51  ;;  %v2531_v14 = vshrl.u32 %v1418_v38, 7  ;;  %v1452_v51 = vadd.s32 4294967256, %v2528_v0 }
 0x30e   :  { %v936_v7 = vmul.f32 %v920_v54, %v871_v41 }
 0x30f   :  { %v1427_v47 = vsub.s32 %v1424_v33, %v2531_v14  ;;  %v2534_v41 = vpop.xlane.xlu1 %1376  ;;  %v1422_v57 = vsub.s32 %v2528_v0, %v2531_v14  ;;  %v1508_v33 = vadd.s32 4294967192, %v2528_v0 }
 0x311   :  { %949 = vadd.xlane.f32.xlu0 %v932_v42  ;;  %v1431_v42 = vadd.s32 4294967280, %v2528_v0 }
 0x315   :  { %959 = vadd.xlane.f32.xlu0 %v937_v62  ;;  %v1438_v62 = vadd.s32 4294967272, %v2528_v0 }
 0x317   :  { %v1441_v54 = vsub.s32 %v1438_v62, %v2531_v14 }
 0x318   :  { %v1740_v52 = vpop.f32.mrb[24].mxu0 }
 0x319   :  { %v884_v28 = vpop.f32.mrb[25].mxu0  ;;  %955 = vadd.xlane.f32.xlu0 %v935_v49  ;;  %v941_v56 = vmul.f32 %v1740_v52, %v925_v46  ;;  %v1434_v52 = vsub.s32 %v1431_v42, %v2531_v14 }
 0x31a   :  { %v1741_v44 = vpop.f32.mrb[26].mxu0  ;;  %v939_v60 = vmul.f32 %v923_v58, %v884_v28  ;;  %v1466_v58 = vadd.s32 4294967240, %v2528_v0 }
 0x31b   :  { %v887_v50 = vpop.f32.mrb[27].mxu0  ;;  %v942_v2 = vmul.f32 %v1741_v44, %v926_v63  ;;  %v1473_v63 = vadd.s32 4294967232, %v2528_v0 }
 0x31c   :  { %v940_v16 = vmul.f32 %v924_v5, %v887_v50  ;;  %v1448_v50 = vsub.s32 %v1445_v45, %v2531_v14 }
 0x31d   :  { %961 = vadd.xlane.f32.xlu0 %v938_v30  ;;  %v1373_v30 = vpop.xlane.xlu1 %1372 }
 0x320   :  { %v1744_v55 = vpop.f32.mrb[28].mxu0 }
 0x321   :  { %v900_v53 = vpop.f32.mrb[29].mxu0  ;;  %957 = vadd.xlane.f32.xlu0 %v936_v7  ;;  %v945_v10 = vmul.f32 %v1744_v55, %v929_v26  ;;  %v1383_v26 = vpop.xlane.xlu1 %1382 }
 0x322   :  { %v1745_v35 = vpop.f32.mrb[30].mxu0  ;;  %v943_v13 = vmul.f32 %v927_v29, %v900_v53  ;;  %v1455_v53 = vsub.s32 %v1452_v51, %v2531_v14  ;;  %v1515_v51 = vadd.s32 4294967184, %v2528_v0 }
 0x323   :  { %v903_v20 = vpop.f32.mrb[31].mxu0  ;;  %v946_v21 = vmul.f32 %v1745_v35, %v930_v9  ;;  %v1476_v9 = vsub.s32 %v1473_v63, %v2531_v14 }
 0x324   :  { %v944_v17 = vmul.f32 %v928_v1, %v903_v20 }
 0x325   :  { %967 = vadd.xlane.f32.xlu0 %v941_v56 }
 0x329   :  { %963 = vadd.xlane.f32.xlu0 %v939_v60 }
 0x32d   :  { %969 = vadd.xlane.f32.xlu0 %v942_v2 }
 0x331   :  { %965 = vadd.xlane.f32.xlu0 %v940_v16 }
 0x335   :  { %975 = vadd.xlane.f32.xlu0 %v945_v10  ;;  %v1462_v10 = vsub.s32 %v1459_v59, %v2531_v14 }
 0x339   :  { %971 = vadd.xlane.f32.xlu0 %v943_v13  ;;  %v1469_v13 = vsub.s32 %v1466_v58, %v2531_v14 }
 0x33d   :  { %973 = vadd.xlane.f32.xlu0 %v944_v17 }
 0x341   :  { %977 = vadd.xlane.f32.xlu0 %v946_v21 }
 0x392   :  { %v952_v31 = vpop.xlane.xlu0 %951 }
 0x393   :  { %v1388_v28 = vadd.f32 %v1359_v34, %v952_v31  ;;  %v1487_v31 = vadd.s32 4294967216, %v2528_v0 }
 0x395   :  { %v1435_v56 = vrot.slane %v1388_v28, %v1434_v52 }
 0x396   :  { %v948_v23 = vpop.xlane.xlu0 %947 }
 0x397   :  { %v1386_v43 = vadd.f32 %v1355_v25, %v948_v23 }
 0x399   :  { %v1423_v44 = vrot.slane %v1386_v43, %v1422_v57 }
 0x39a   :  { %v954_v24 = vpop.xlane.xlu0 %953 }
 0x39b   :  { %v1389_v46 = vadd.f32 %v1361_v12, %v954_v24  ;;  %v1483_v12 = vsub.s32 %v1480_v6, %v2531_v14 }
 0x39d   :  { %v1442_v5 = vrot.slane %v1389_v46, %v1441_v54 }
 0x39e   :  { %v950_v61 = vpop.xlane.xlu0 %949 }
 0x39f   :  { %v1387_v39 = vadd.f32 %v1357_v18, %v950_v61 }
 0x3a1   :  { %v1428_v49 = vrot.slane %v1387_v39, %v1427_v47 }
 0x3a2   :  { %v960_v40 = vpop.xlane.xlu0 %959 }
 0x3a3   :  { %v1430_v55 = vsel %vm1429_vm0, %v1428_v49, %v1423_v44  ;;  %v1392_v11 = vadd.f32 %v1367_v32, %v960_v40  ;;  %v1379_v32 = vpop.xlane.xlu1 %1378  ;;  %v1501_v40 = vadd.s32 4294967200, %v2528_v0 }
 0x3a4   :  { %v1437_v20 = vsel %vm1436_vm1, %v1435_v56, %v1430_v55 }
 0x3a5   :  { %v1444_v29 = vsel %vm1443_vm2, %v1442_v5, %v1437_v20  ;;  %v1504_v39 = vsub.s32 %v1501_v40, %v2531_v14 }
 0x3a6   :  { %v956_v27 = vpop.xlane.xlu0 %955 }
 0x3a7   :  { %v1390_v7 = vadd.f32 %v1363_v36, %v956_v27  ;;  %v1463_v36 = vrot.slane %v1392_v11, %v1462_v10  ;;  %v1381_v45 = vpop.xlane.xlu1 %1380 }
 0x3a9   :  { %v1449_v60 = vrot.slane %v1390_v7, %v1448_v50 }
 0x3aa   :  { %v962_v22 = vpop.xlane.xlu0 %961 }
 0x3ab   :  { %v1451_v1 = vsel %vm1450_vm3, %v1449_v60, %v1444_v29  ;;  %v1393_v34 = vadd.f32 %v1369_v4, %v962_v22  ;;  %v1490_v4 = vsub.s32 %v1487_v31, %v2531_v14  ;;  %v1385_v55 = vpop.xlane.xlu1 %1384 }
 0x3ad   :  { %v1470_v38 = vrot.slane %v1393_v34, %v1469_v13 }
 0x3ae   :  { %v958_v15 = vpop.xlane.xlu0 %957 }
 0x3af   :  { %v1391_v35 = vadd.f32 %v1365_v19, %v958_v15  ;;  %v1494_v19 = vadd.s32 4294967208, %v2528_v0 }
 0x3b1   :  { %v1456_v16 = vrot.slane %v1391_v35, %v1455_v53  ;;  %v1497_v47 = vsub.s32 %v1494_v19, %v2531_v14 }
 0x3b2   :  { %v968_v48 = vpop.xlane.xlu0 %967 }
 0x3b3   :  { %v1458_v25 = vsel %vm1457_vm4, %v1456_v16, %v1451_v1 }
 0x3b4   :  { %v1465_v23 = vsel %vm1464_vm5, %v1463_v36, %v1458_v25 }
 0x3b5   :  { %v1472_v22 = vsel %vm1471_vm6, %v1470_v38, %v1465_v23 }
 0x3b6   :  { %v964_v3 = vpop.xlane.xlu0 %963 }
 0x3b7   :  { %v1394_v17 = vadd.f32 %v1371_v8, %v964_v3  ;;  %v1396_v8 = vadd.f32 %v2526_v37, %v968_v48  ;;  %v1511_v37 = vsub.s32 %v1508_v33, %v2531_v14  ;;  %v1522_v48 = vadd.s32 4294967176, %v2528_v0 }
 0x3b9   :  { %v1477_v24 = vrot.slane %v1394_v17, %v1476_v9  ;;  %v1491_v49 = vrot.slane %v1396_v8, %v1490_v4  ;;  %v1525_v46 = vsub.s32 %v1522_v48, %v2531_v14 }
 0x3ba   :  { %v970_v2 = vpop.xlane.xlu0 %969 }
 0x3bb   :  { %v1479_v15 = vsel %vm1478_vm7, %v1477_v24, %v1472_v22  ;;  %v1397_v57 = vadd.f32 %v2534_v41, %v970_v2  ;;  %v1518_v41 = vsub.s32 %v1515_v51, %v2531_v14 }
 0x3be   :  { %v966_v21 = vpop.xlane.xlu0 %965 }
 0x3bf   :  { %v1395_v18 = vadd.f32 %v1373_v30, %v966_v21  ;;  %v1498_v30 = vrot.slane %v1397_v57, %v1497_v47 }
 0x3c1   :  { %v1484_v27 = vrot.slane %v1395_v18, %v1483_v12 }
 0x3c2   :  { %v976_v61 = vpop.xlane.xlu0 %975 }
 0x3c3   :  { %v1486_v43 = vsel %vm1485_vm8, %v1484_v27, %v1479_v15  ;;  %v1400_v50 = vadd.f32 %v1383_v26, %v976_v61 }
 0x3c4   :  { %v1493_v52 = vsel %vm1492_vm9, %v1491_v49, %v1486_v43 }
 0x3c5   :  { %v1500_v7 = vsel %vm1499_vm10, %v1498_v30, %v1493_v52  ;;  %v1519_v59 = vrot.slane %v1400_v50, %v1518_v41 }
 0x3c6   :  { %v972_v42 = vpop.xlane.xlu0 %971 }
 0x3c7   :  { %v1398_v62 = vadd.f32 %v1379_v32, %v972_v42 }
 0x3c9   :  { %v1505_v28 = vrot.slane %v1398_v62, %v1504_v39 }
 0x3ca   :  { %v974_v44 = vpop.xlane.xlu0 %973 }
 0x3cb   :  { %v1399_v54 = vadd.f32 %v1381_v45, %v974_v44  ;;  %v1507_v53 = vsel %vm1506_vm11, %v1505_v28, %v1500_v7 }
 0x3cd   :  { %v1512_v3 = vrot.slane %v1399_v54, %v1511_v37 }
 0x3ce   :  { %v978_v35 = vpop.xlane.xlu0 %977 }
 0x3cf   :  { %v1514_v56 = vsel %vm1513_vm12, %v1512_v3, %v1507_v53  ;;  %v1401_v0 = vadd.f32 %v1385_v55, %v978_v35 }
 0x3d0   :  { %v1521_v20 = vsel %vm1520_vm13, %v1519_v59, %v1514_v56 }
 0x3d1   :  { %v1526_v58 = vrot.slane %v1401_v0, %v1525_v46 }
 0x3d3   :  { %v1528_v60 = vsel %vm1527_vm14, %v1526_v58, %v1521_v20 }
 0x3d4   :  { %1530 = vst [vmem:[%s2580_s9] sm:$0x1] %v1528_v60 }

</bundles_post_ra>
